<compile_context>
chip_gen: v5e
topology: v5e:2x2
jax: 0.10.0
libtpu: 0.0.40
codegen_flags: <defaults>
</compile_context>

<pallas_src>
import math

import jax
import jax.numpy as jnp
from jax import lax
from jax.experimental import pallas as pl
from jax.experimental.pallas import tpu as pltpu


def mlstm_cell_kernel(qi_tbl, ki_tbl, q_ref, k_ref, v_ref, lfc_ref, a_ref,
                      lnw_ref, o_ref, m_scr, s_scr, acc_scr):
    eps = 1e-6        # mLSTM normalizer epsilon
    ln_eps = 1e-5     # group-norm epsilon

    t = pl.program_id(2)
    qi = qi_tbl[t]
    ki = ki_tbl[t]

    TQ = q_ref.shape[1]
    TK = k_ref.shape[1]
    DH = q_ref.shape[2]
    log_scale = -0.5 * math.log(DH)   # fold 1/sqrt(DH) into the exp argument

    # ---- init running statistics at the first KV tile of each query tile ----
    @pl.when(ki == 0)
    def _init():
        m_scr[...] = jnp.full(m_scr.shape, -jnp.inf, jnp.float32)
        s_scr[...] = jnp.zeros(s_scr.shape, jnp.float32)
        acc_scr[...] = jnp.zeros(acc_scr.shape, jnp.float32)

    def _accumulate(log_w):
        """Online (flash-style) update from stabilized log weights.

        log_w broadcasts against (TQ, TK); it is (1, TK) on interior tiles and
        the causally masked (TQ, TK) matrix on the diagonal tile.
        Returns the updated (m~, sum(C), C @ V) without writing scratch.
        """
        m_prev = m_scr[...]                                          # (TQ, 1)
        m_new = jnp.maximum(m_prev, jnp.max(log_w, axis=-1, keepdims=True))
        alpha = jnp.exp(m_prev - m_new)
        p = jnp.exp(log_w - m_new + log_scale)        # = D / sqrt(DH) in [0, 1]
        # QK^T: bf16 operands, f32 accumulation, contraction over the last dim
        # of both (no explicit transpose).
        qk = lax.dot_general(q_ref[0], k_ref[0], (((1,), (1,)), ((), ())),
                             preferred_element_type=jnp.float32)
        c = qk * p                                                   # (TQ, TK)
        s_new = alpha * s_scr[...] + jnp.sum(c, axis=-1, keepdims=True)
        acc_new = alpha * acc_scr[...] + jnp.dot(
            c.astype(jnp.bfloat16), v_ref[0], preferred_element_type=jnp.float32)
        return m_new, s_new, acc_new

    # ---- interior tiles: fully inside the causal triangle, no masking ----
    @pl.when(ki < qi)
    def _interior():
        m_new, s_new, acc_new = _accumulate(a_ref[0, 0])             # (1, TK)
        m_scr[...] = m_new
        s_scr[...] = s_new
        acc_scr[...] = acc_new

    # ---- diagonal tile: local causal mask, then finalize the query tile ----
    @pl.when(ki == qi)
    def _diag_and_finalize():
        a_k = a_ref[0, 0]                                            # (1, TK)
        row = lax.broadcasted_iota(jnp.int32, (TQ, TK), 0)
        col = lax.broadcasted_iota(jnp.int32, (TQ, TK), 1)
        log_w = jnp.where(row >= col, a_k, -jnp.inf)                 # (TQ, TK)
        m_new, s_new, acc_new = _accumulate(log_w)

        lfc_q = lfc_ref[0, 0]                                        # (TQ, 1)
        # exp(-max_log_D) == exp(-(lfc + m~)); single exp keeps the argument finite.
        normalizer = jnp.maximum(jnp.abs(s_new),
                                 jnp.exp(-(lfc_q + m_new))) + eps    # (TQ, 1)
        h = acc_new * pl.reciprocal(normalizer, approx=True)         # (TQ, DH)
        # MultiHeadLayerNorm == group norm per head over DH (+ residual weight)
        mean = jnp.mean(h, axis=-1, keepdims=True)
        var = jnp.mean(jnp.square(h - mean), axis=-1, keepdims=True)
        hn = (h - mean) * lax.rsqrt(var + ln_eps)
        o_ref[0] = (hn * lnw_ref[0]).astype(o_ref.dtype)


def _default_tile():
    # 256-wide tiles fill the 2x256x256 MXUs on v6e / v7x (and halve grid steps
    # and K/V HBM re-reads); earlier generations have 128x128 MXUs, keep 128.
    try:
        kind = jax.devices()[0].device_kind.lower()
    except Exception:
        kind = ""
    return 256 if ("v6" in kind or "v7" in kind) else 128


def mlstm_cell_forward(q, k, v, params, num_heads, tile=None):
    """Pallas forward of mLSTMCell. q, k, v: (B, S, H) float32."""
    B, S, H = q.shape
    NH = num_heads
    assert H % NH == 0
    DH = H // NH
    # (8, 128) layout constraints for the head-sliced / sequence-tiled blocks.
    assert NH == 1 or DH % 128 == 0, "per-head dim must be a multiple of 128"
    out_dtype = q.dtype

    if tile is None:
        tile = _default_tile()
    TQ = TK = min(tile, S)
    assert S % TQ == 0, "sequence length must divide into the tile size"
    NQ = S // TQ

    # ---- gate pre-activations WITHOUT materializing concat([q, k, v]) -------
    # i- and f-gate weights stacked -> 3 einsums instead of 6.
    wif = jnp.concatenate([params["igate_w"], params["fgate_w"]], axis=0)  # (2NH, 3H)
    bif = jnp.concatenate([params["igate_b"], params["fgate_b"]], axis=0)  # (2NH,)
    gates = (jnp.einsum('bsh,nh->bns', q, wif[:, :H])
             + jnp.einsum('bsh,nh->bns', k, wif[:, H:2 * H])
             + jnp.einsum('bsh,nh->bns', v, wif[:, 2 * H:])
             + bif[None, :, None])                                   # (B, 2NH, S)
    ig, fg = gates[:, :NH, :], gates[:, NH:, :]

    # logsigmoid + inclusive cumsum of the forget gate (tiny XLA glue).
    lfc = jnp.cumsum(jax.nn.log_sigmoid(fg), axis=-1)                # (B, NH, S)
    lfc_rows = lfc[..., None].astype(jnp.float32)                    # (B, NH, S, 1)
    a_cols = (ig - lfc)[:, :, None, :].astype(jnp.float32)           # (B, NH, 1, S)

    lnw = (1.0 + params["outnorm_w"]).reshape(NH, 1, DH).astype(jnp.float32)

    # bf16 storage for q/k/v: halves HBM traffic, MXU-native operands.
    qb = q.astype(jnp.bfloat16)
    kb = k.astype(jnp.bfloat16)
    vb = v.astype(jnp.bfloat16)

    # ---- flattened causal tile schedule (no wasted upper-triangle steps) ----
    pairs = [(i, j) for i in range(NQ) for j in range(i + 1)]
    qi_tbl = jnp.asarray([p[0] for p in pairs], dtype=jnp.int32)
    ki_tbl = jnp.asarray([p[1] for p in pairs], dtype=jnp.int32)
    T = len(pairs)

    out = pl.pallas_call(
        mlstm_cell_kernel,
        out_shape=jax.ShapeDtypeStruct((B, S, H), out_dtype),
        grid_spec=pltpu.PrefetchScalarGridSpec(
            num_scalar_prefetch=2,
            grid=(B, NH, T),
            in_specs=[
                pl.BlockSpec((1, TQ, DH), lambda b, h, t, qt, kt: (b, qt[t], h)),
                pl.BlockSpec((1, TK, DH), lambda b, h, t, qt, kt: (b, kt[t], h)),
                pl.BlockSpec((1, TK, DH), lambda b, h, t, qt, kt: (b, kt[t], h)),
                pl.BlockSpec((1, 1, TQ, 1), lambda b, h, t, qt, kt: (b, h, qt[t], 0)),
                pl.BlockSpec((1, 1, 1, TK), lambda b, h, t, qt, kt: (b, h, 0, kt[t])),
                pl.BlockSpec((1, 1, DH), lambda b, h, t, qt, kt: (h, 0, 0)),
            ],
            out_specs=pl.BlockSpec((1, TQ, DH), lambda b, h, t, qt, kt: (b, qt[t], h)),
            scratch_shapes=[
                pltpu.VMEM((TQ, 1), jnp.float32),     # running row max m~
                pltpu.VMEM((TQ, 1), jnp.float32),     # running row sum of C
                pltpu.VMEM((TQ, DH), jnp.float32),    # running C @ V accumulator
            ],
        ),
        compiler_params=pltpu.CompilerParams(
            dimension_semantics=("parallel", "parallel", "arbitrary"),
            vmem_limit_bytes=48 * 1024 * 1024,
        ),
    )(qi_tbl, ki_tbl, qb, kb, vb, lfc_rows, a_cols, lnw)
    return out


def reference_forward(q, k, v, params, num_heads, gate_qkv=None):
    """Pure-JAX f32 reference mirroring the PyTorch module (for validation)."""
    B, S, H = q.shape
    NH = num_heads
    DH = H // NH
    gq, gk, gv = (q, k, v) if gate_qkv is None else gate_qkv
    gate_in = jnp.concatenate([gq, gk, gv], axis=-1)
    ig = gate_in @ params["igate_w"].T + params["igate_b"]          # (B, S, NH)
    fg = gate_in @ params["fgate_w"].T + params["fgate_b"]
    ig = ig.transpose(0, 2, 1)[..., None]                           # (B, NH, S, 1)
    fg = fg.transpose(0, 2, 1)[..., None]
    qh = q.reshape(B, S, NH, DH).transpose(0, 2, 1, 3)
    kh = k.reshape(B, S, NH, DH).transpose(0, 2, 1, 3)
    vh = v.reshape(B, S, NH, DH).transpose(0, 2, 1, 3)

    log_fg = jax.nn.log_sigmoid(fg)
    lfc = jnp.cumsum(log_fg, axis=-2)                               # (B, NH, S, 1)
    mat = lfc - lfc.transpose(0, 1, 3, 2)                           # (B, NH, S, S)
    ltr = jnp.tril(jnp.ones((S, S), dtype=bool))
    log_fg_mat = jnp.where(ltr, mat, -jnp.inf)
    log_D = log_fg_mat + ig.transpose(0, 1, 3, 2)
    max_log_D = jnp.max(log_D, axis=-1, keepdims=True)
    D = jnp.exp(log_D - max_log_D)
    ks = kh / math.sqrt(DH)
    qk = jnp.einsum('bnsd,bntd->bnst', qh, ks)
    C = qk * D
    normalizer = jnp.maximum(jnp.abs(jnp.sum(C, -1, keepdims=True)),
                             jnp.exp(-max_log_D))
    Cn = C / (normalizer + 1e-6)
    h = jnp.einsum('bnst,bntd->bnsd', Cn, vh)
    mean = jnp.mean(h, -1, keepdims=True)
    var = jnp.mean((h - mean) ** 2, -1, keepdims=True)
    hn = (h - mean) / jnp.sqrt(var + 1e-5)
    w = (1.0 + params["outnorm_w"]).reshape(NH, DH)
    hn = hn * w[None, :, None, :]
    return hn.transpose(0, 2, 1, 3).reshape(B, S, H)


if __name__ == "__main__":
    # DH = 128 keeps per-head slices lane-aligned; S = 512 exercises the
    # flattened causal tile grid (interior + diagonal branches) on all chips.
    B, S, H, NH = 2, 512, 256, 2
    key = jax.random.PRNGKey(0)
    key_q, key_k, key_v, key_wi, key_bi, key_wf = jax.random.split(key, 6)

    q = jax.random.normal(key_q, (B, S, H), dtype=jnp.float32)
    k = jax.random.normal(key_k, (B, S, H), dtype=jnp.float32)
    v = jax.random.normal(key_v, (B, S, H), dtype=jnp.float32)

    # deterministic parameter init (shapes from mLSTMCell.__init__)
    params = {
        "igate_w": 0.1 * jax.random.normal(key_wi, (NH, 3 * H), dtype=jnp.float32),
        "igate_b": 0.1 * jax.random.normal(key_bi, (NH,), dtype=jnp.float32),
        "fgate_w": 0.1 * jax.random.normal(key_wf, (NH, 3 * H), dtype=jnp.float32),
        "fgate_b": jnp.linspace(3.0, 6.0, NH, dtype=jnp.float32),  # bias_linspace_init_
        "outnorm_w": jnp.zeros((H,), dtype=jnp.float32),           # residual weight
    }

    out = mlstm_cell_forward(q, k, v, params, NH)
    out = jax.block_until_ready(out)
    assert out.shape == (B, S, H)
    assert bool(jnp.all(jnp.isfinite(out)))

    # Structural check: feed the SAME bf16-quantized q/k/v to the f32 reference
    # (gate projections from full-precision inputs, exactly like the kernel
    # wrapper).  Remaining differences are only the in-kernel bf16 MXU
    # roundings, which are relative (non-amplifying).
    qb = q.astype(jnp.bfloat16).astype(jnp.float32)
    kb = k.astype(jnp.bfloat16).astype(jnp.float32)
    vb = v.astype(jnp.bfloat16).astype(jnp.float32)
    ref_bf = reference_forward(qb, kb, vb, params, NH, gate_qkv=(q, k, v))
    max_err = float(jnp.max(jnp.abs(out - ref_bf)))
    assert max_err < 5e-2, f"max abs error vs bf16-input reference: {max_err}"

    # End-to-end check against the all-f32 module reference.  The bf16 input
    # quantization of q/k can amplify on rows with near-cancelling qk, so use a
    # robust statistical metric here (the structural check above is the tight one).
    ref = reference_forward(q, k, v, params, NH)
    mean_err = float(jnp.mean(jnp.abs(out - ref)))
    assert mean_err < 3e-2, f"mean abs error vs f32 reference: {mean_err}"

    print("KERNEL_OK")
</pallas_src>

<mosaic_0001>
module attributes {stable_mosaic.version = 11 : i64} {
  func.func @mlstm_cell_kernel(%arg0: i32, %arg1: i32, %arg2: i32, %arg3: memref<10xi32, #tpu.memory_space<smem>>, %arg4: memref<10xi32, #tpu.memory_space<smem>>, %arg5: memref<1x128x128xbf16, #tpu.memory_space<vmem>>, %arg6: memref<1x128x128xbf16, #tpu.memory_space<vmem>>, %arg7: memref<1x128x128xbf16, #tpu.memory_space<vmem>>, %arg8: memref<1x1x128x1xf32, #tpu.memory_space<vmem>>, %arg9: memref<1x1x1x128xf32, #tpu.memory_space<vmem>>, %arg10: memref<1x1x128xf32, #tpu.memory_space<vmem>>, %arg11: memref<1x128x128xf32, #tpu.memory_space<vmem>>, %arg12: memref<128x1xf32, #tpu.memory_space<vmem>>, %arg13: memref<128x1xf32, #tpu.memory_space<vmem>>, %arg14: memref<128x128xf32, #tpu.memory_space<vmem>>) attributes {dimension_semantics = [#tpu.dimension_semantics<parallel>, #tpu.dimension_semantics<parallel>, #tpu.dimension_semantics<arbitrary>], iteration_bounds = array<i64: 2, 2, 10>, scalar_prefetch = 2 : i64, scratch_operands = 3 : i64, tpu.core_type = #tpu.core_type<tc>, window_params = [{transform_indices = @transform_0, window_bounds = array<i64: 1, 128, 128>}, {transform_indices = @transform_1, window_bounds = array<i64: 1, 128, 128>}, {transform_indices = @transform_2, window_bounds = array<i64: 1, 128, 128>}, {transform_indices = @transform_3, window_bounds = array<i64: 1, 1, 128, 1>}, {transform_indices = @transform_4, window_bounds = array<i64: 1, 1, 1, 128>}, {transform_indices = @transform_5, window_bounds = array<i64: 1, 1, 128>}, {transform_indices = @transform_6, window_bounds = array<i64: 1, 128, 128>}]} {
    %0 = arith.index_cast %arg2 : i32 to index
    %1 = memref.load %arg3[%0] : memref<10xi32, #tpu.memory_space<smem>>
    %2 = arith.index_cast %arg2 : i32 to index
    %3 = memref.load %arg4[%2] : memref<10xi32, #tpu.memory_space<smem>>
    %c0_i32 = arith.constant 0 : i32
    %4 = arith.cmpi eq, %3, %c0_i32 : i32
    %5 = arith.extui %4 : i1 to i32
    %c0_i32_0 = arith.constant 0 : i32
    %6 = arith.cmpi ne, %5, %c0_i32_0 : i32
    scf.if %6 {
      %cst = arith.constant 0xFF800000 : f32
      %13 = vector.broadcast %cst : f32 to vector<128x1xf32>
      %c0 = arith.constant 0 : index
      %c0_3 = arith.constant 0 : index
      %14 = vector.load %arg12[%c0, %c0_3] : memref<128x1xf32, #tpu.memory_space<vmem>>, vector<128x1xf32>
      tpu.vector_store %arg12[%c0, %c0_3], %13 {strides = array<i32>} : memref<128x1xf32, #tpu.memory_space<vmem>>, vector<128x1xf32>,
      %cst_4 = arith.constant 0.000000e+00 : f32
      %15 = vector.broadcast %cst_4 : f32 to vector<128x1xf32>
      %c0_5 = arith.constant 0 : index
      %c0_6 = arith.constant 0 : index
      %16 = vector.load %arg13[%c0_5, %c0_6] : memref<128x1xf32, #tpu.memory_space<vmem>>, vector<128x1xf32>
      tpu.vector_store %arg13[%c0_5, %c0_6], %15 {strides = array<i32>} : memref<128x1xf32, #tpu.memory_space<vmem>>, vector<128x1xf32>,
      %cst_7 = arith.constant 0.000000e+00 : f32
      %17 = vector.broadcast %cst_7 : f32 to vector<128x128xf32>
      %c0_8 = arith.constant 0 : index
      %c0_9 = arith.constant 0 : index
      %18 = vector.load %arg14[%c0_8, %c0_9] : memref<128x128xf32, #tpu.memory_space<vmem>>, vector<128x128xf32>
      tpu.vector_store %arg14[%c0_8, %c0_9], %17 {strides = array<i32>} : memref<128x128xf32, #tpu.memory_space<vmem>>, vector<128x128xf32>,
    } else {
    }
    %7 = arith.cmpi slt, %3, %1 : i32
    %8 = arith.extui %7 : i1 to i32
    %c0_i32_1 = arith.constant 0 : i32
    %9 = arith.cmpi ne, %8, %c0_i32_1 : i32
    scf.if %9 {
      %c0 = arith.constant 0 : index
      %c0_3 = arith.constant 0 : index
      %c0_4 = arith.constant 0 : index
      %c0_5 = arith.constant 0 : index
      %13 = vector.load %arg9[%c0, %c0_3, %c0_4, %c0_5] : memref<1x1x1x128xf32, #tpu.memory_space<vmem>>, vector<1x1x1x128xf32>
      %14 = vector.shape_cast %13 : vector<1x1x1x128xf32> to vector<1x128xf32>
      %c0_6 = arith.constant 0 : index
      %c0_7 = arith.constant 0 : index
      %15 = vector.load %arg12[%c0_6, %c0_7] : memref<128x1xf32, #tpu.memory_space<vmem>>, vector<128x1xf32>
      %cst = arith.constant dense<0xFF800000> : vector<1xf32>
      %16 = vector.multi_reduction <maximumf>, %14, %cst [1] : vector<1x128xf32> to vector<1xf32>
      %17 = vector.shape_cast %16 : vector<1xf32> to vector<1x1xf32>
      %18 = vector.broadcast %17 : vector<1x1xf32> to vector<128x1xf32>
      %19 = arith.maximumf %15, %18 : vector<128x1xf32>
      %20 = arith.subf %15, %19 : vector<128x1xf32>
      %21 = math.exp %20 : vector<128x1xf32>
      %22 = vector.broadcast %14 : vector<1x128xf32> to vector<128x128xf32>
      %23 = vector.broadcast %19 : vector<128x1xf32> to vector<128x128xf32>
      %24 = arith.subf %22, %23 : vector<128x128xf32>
      %cst_8 = arith.constant -2.42601514 : f32
      %25 = vector.broadcast %cst_8 : f32 to vector<128x128xf32>
      %26 = arith.addf %24, %25 : vector<128x128xf32>
      %27 = math.exp %26 : vector<128x128xf32>
      %c0_9 = arith.constant 0 : index
      %c0_10 = arith.constant 0 : index
      %c0_11 = arith.constant 0 : index
      %28 = vector.load %arg5[%c0_9, %c0_10, %c0_11] : memref<1x128x128xbf16, #tpu.memory_space<vmem>>, vector<1x128x128xbf16>
      %29 = vector.shape_cast %28 : vector<1x128x128xbf16> to vector<128x128xbf16>
      %c0_12 = arith.constant 0 : index
      %c0_13 = arith.constant 0 : index
      %c0_14 = arith.constant 0 : index
      %30 = vector.load %arg6[%c0_12, %c0_13, %c0_14] : memref<1x128x128xbf16, #tpu.memory_space<vmem>>, vector<1x128x128xbf16>
      %31 = vector.shape_cast %30 : vector<1x128x128xbf16> to vector<128x128xbf16>
      %cst_15 = arith.constant dense<0.000000e+00> : vector<128x128xf32>
      %32 = tpu.matmul %29, %31, %cst_15 {dimension_numbers = #tpu.dot_dimension_numbers<[1], [1], [0], [0], [0, 0, 1, 0], [], []>} : vector<128x128xbf16>, vector<128x128xbf16>, vector<128x128xf32> -> vector<128x128xf32>
      %33 = arith.mulf %32, %27 : vector<128x128xf32>
      %c0_16 = arith.constant 0 : index
      %c0_17 = arith.constant 0 : index
      %34 = vector.load %arg13[%c0_16, %c0_17] : memref<128x1xf32, #tpu.memory_space<vmem>>, vector<128x1xf32>
      %35 = arith.mulf %21, %34 : vector<128x1xf32>
      %cst_18 = arith.constant dense<0.000000e+00> : vector<128xf32>
      %36 = vector.multi_reduction <add>, %33, %cst_18 [1] : vector<128x128xf32> to vector<128xf32>
      %37 = vector.shape_cast %36 : vector<128xf32> to vector<128x1xf32>
      %38 = arith.addf %35, %37 : vector<128x1xf32>
      %c0_19 = arith.constant 0 : index
      %c0_20 = arith.constant 0 : index
      %39 = vector.load %arg14[%c0_19, %c0_20] : memref<128x128xf32, #tpu.memory_space<vmem>>, vector<128x128xf32>
      %40 = vector.broadcast %21 : vector<128x1xf32> to vector<128x128xf32>
      %41 = arith.mulf %40, %39 : vector<128x128xf32>
      %42 = arith.truncf %33 : vector<128x128xf32> to vector<128x128xbf16>
      %c0_21 = arith.constant 0 : index
      %c0_22 = arith.constant 0 : index
      %c0_23 = arith.constant 0 : index
      %43 = vector.load %arg7[%c0_21, %c0_22, %c0_23] : memref<1x128x128xbf16, #tpu.memory_space<vmem>>, vector<1x128x128xbf16>
      %44 = vector.shape_cast %43 : vector<1x128x128xbf16> to vector<128x128xbf16>
      %cst_24 = arith.constant dense<0.000000e+00> : vector<128x128xf32>
      %45 = tpu.matmul %42, %44, %cst_24 {dimension_numbers = #tpu.dot_dimension_numbers<[1], [0], [0], [1], [0, 0, 1, 1], [], []>} : vector<128x128xbf16>, vector<128x128xbf16>, vector<128x128xf32> -> vector<128x128xf32>
      %46 = arith.addf %41, %45 : vector<128x128xf32>
      %c0_25 = arith.constant 0 : index
      %c0_26 = arith.constant 0 : index
      %47 = vector.load %arg12[%c0_25, %c0_26] : memref<128x1xf32, #tpu.memory_space<vmem>>, vector<128x1xf32>
      tpu.vector_store %arg12[%c0_25, %c0_26], %19 {strides = array<i32>} : memref<128x1xf32, #tpu.memory_space<vmem>>, vector<128x1xf32>,
      %c0_27 = arith.constant 0 : index
      %c0_28 = arith.constant 0 : index
      %48 = vector.load %arg13[%c0_27, %c0_28] : memref<128x1xf32, #tpu.memory_space<vmem>>, vector<128x1xf32>
      tpu.vector_store %arg13[%c0_27, %c0_28], %38 {strides = array<i32>} : memref<128x1xf32, #tpu.memory_space<vmem>>, vector<128x1xf32>,
      %c0_29 = arith.constant 0 : index
      %c0_30 = arith.constant 0 : index
      %49 = vector.load %arg14[%c0_29, %c0_30] : memref<128x128xf32, #tpu.memory_space<vmem>>, vector<128x128xf32>
      tpu.vector_store %arg14[%c0_29, %c0_30], %46 {strides = array<i32>} : memref<128x128xf32, #tpu.memory_space<vmem>>, vector<128x128xf32>,
    } else {
    }
    %10 = arith.cmpi eq, %3, %1 : i32
    %11 = arith.extui %10 : i1 to i32
    %c0_i32_2 = arith.constant 0 : i32
    %12 = arith.cmpi ne, %11, %c0_i32_2 : i32
    scf.if %12 {
      %c0 = arith.constant 0 : index
      %c0_3 = arith.constant 0 : index
      %c0_4 = arith.constant 0 : index
      %c0_5 = arith.constant 0 : index
      %13 = vector.load %arg9[%c0, %c0_3, %c0_4, %c0_5] : memref<1x1x1x128xf32, #tpu.memory_space<vmem>>, vector<1x1x1x128xf32>
      %14 = vector.shape_cast %13 : vector<1x1x1x128xf32> to vector<1x128xf32>
      %15 = tpu.iota {dimensions = array<i32: 0>} : vector<128x128xi32>
      %16 = tpu.iota {dimensions = array<i32: 1>} : vector<128x128xi32>
      %17 = arith.cmpi sge, %15, %16 : vector<128x128xi32>
      %cst = arith.constant 0xFF800000 : f32
      %18 = vector.shape_cast %14 : vector<1x128xf32> to vector<1x128xf32>
      %19 = vector.broadcast %18 : vector<1x128xf32> to vector<128x128xf32>
      %20 = vector.broadcast %cst : f32 to vector<128x128xf32>
      %21 = arith.select %17, %19, %20 : vector<128x128xi1>, vector<128x128xf32>
      %c0_6 = arith.constant 0 : index
      %c0_7 = arith.constant 0 : index
      %22 = vector.load %arg12[%c0_6, %c0_7] : memref<128x1xf32, #tpu.memory_space<vmem>>, vector<128x1xf32>
      %cst_8 = arith.constant dense<0xFF800000> : vector<128xf32>
      %23 = vector.multi_reduction <maximumf>, %21, %cst_8 [1] : vector<128x128xf32> to vector<128xf32>
      %24 = vector.shape_cast %23 : vector<128xf32> to vector<128x1xf32>
      %25 = arith.maximumf %22, %24 : vector<128x1xf32>
      %26 = arith.subf %22, %25 : vector<128x1xf32>
      %27 = math.exp %26 : vector<128x1xf32>
      %28 = vector.broadcast %25 : vector<128x1xf32> to vector<128x128xf32>
      %29 = arith.subf %21, %28 : vector<128x128xf32>
      %cst_9 = arith.constant -2.42601514 : f32
      %30 = vector.broadcast %cst_9 : f32 to vector<128x128xf32>
      %31 = arith.addf %29, %30 : vector<128x128xf32>
      %32 = math.exp %31 : vector<128x128xf32>
      %c0_10 = arith.constant 0 : index
      %c0_11 = arith.constant 0 : index
      %c0_12 = arith.constant 0 : index
      %33 = vector.load %arg5[%c0_10, %c0_11, %c0_12] : memref<1x128x128xbf16, #tpu.memory_space<vmem>>, vector<1x128x128xbf16>
      %34 = vector.shape_cast %33 : vector<1x128x128xbf16> to vector<128x128xbf16>
      %c0_13 = arith.constant 0 : index
      %c0_14 = arith.constant 0 : index
      %c0_15 = arith.constant 0 : index
      %35 = vector.load %arg6[%c0_13, %c0_14, %c0_15] : memref<1x128x128xbf16, #tpu.memory_space<vmem>>, vector<1x128x128xbf16>
      %36 = vector.shape_cast %35 : vector<1x128x128xbf16> to vector<128x128xbf16>
      %cst_16 = arith.constant dense<0.000000e+00> : vector<128x128xf32>
      %37 = tpu.matmul %34, %36, %cst_16 {dimension_numbers = #tpu.dot_dimension_numbers<[1], [1], [0], [0], [0, 0, 1, 0], [], []>} : vector<128x128xbf16>, vector<128x128xbf16>, vector<128x128xf32> -> vector<128x128xf32>
      %38 = arith.mulf %37, %32 : vector<128x128xf32>
      %c0_17 = arith.constant 0 : index
      %c0_18 = arith.constant 0 : index
      %39 = vector.load %arg13[%c0_17, %c0_18] : memref<128x1xf32, #tpu.memory_space<vmem>>, vector<128x1xf32>
      %40 = arith.mulf %27, %39 : vector<128x1xf32>
      %cst_19 = arith.constant dense<0.000000e+00> : vector<128xf32>
      %41 = vector.multi_reduction <add>, %38, %cst_19 [1] : vector<128x128xf32> to vector<128xf32>
      %42 = vector.shape_cast %41 : vector<128xf32> to vector<128x1xf32>
      %43 = arith.addf %40, %42 : vector<128x1xf32>
      %c0_20 = arith.constant 0 : index
      %c0_21 = arith.constant 0 : index
      %44 = vector.load %arg14[%c0_20, %c0_21] : memref<128x128xf32, #tpu.memory_space<vmem>>, vector<128x128xf32>
      %45 = vector.broadcast %27 : vector<128x1xf32> to vector<128x128xf32>
      %46 = arith.mulf %45, %44 : vector<128x128xf32>
      %47 = arith.truncf %38 : vector<128x128xf32> to vector<128x128xbf16>
      %c0_22 = arith.constant 0 : index
      %c0_23 = arith.constant 0 : index
      %c0_24 = arith.constant 0 : index
      %48 = vector.load %arg7[%c0_22, %c0_23, %c0_24] : memref<1x128x128xbf16, #tpu.memory_space<vmem>>, vector<1x128x128xbf16>
      %49 = vector.shape_cast %48 : vector<1x128x128xbf16> to vector<128x128xbf16>
      %cst_25 = arith.constant dense<0.000000e+00> : vector<128x128xf32>
      %50 = tpu.matmul %47, %49, %cst_25 {dimension_numbers = #tpu.dot_dimension_numbers<[1], [0], [0], [1], [0, 0, 1, 1], [], []>} : vector<128x128xbf16>, vector<128x128xbf16>, vector<128x128xf32> -> vector<128x128xf32>
      %51 = arith.addf %46, %50 : vector<128x128xf32>
      %c0_26 = arith.constant 0 : index
      %c0_27 = arith.constant 0 : index
      %c0_28 = arith.constant 0 : index
      %c0_29 = arith.constant 0 : index
      %52 = vector.load %arg8[%c0_26, %c0_27, %c0_28, %c0_29] : memref<1x1x128x1xf32, #tpu.memory_space<vmem>>, vector<1x1x128x1xf32>
      %53 = vector.shape_cast %52 : vector<1x1x128x1xf32> to vector<128x1xf32>
      %54 = math.absf %43 : vector<128x1xf32>
      %55 = arith.addf %53, %25 : vector<128x1xf32>
      %cst_30 = arith.constant 0.000000e+00 : f32
      %56 = vector.broadcast %cst_30 : f32 to vector<128x1xf32>
      %57 = arith.subf %56, %55 : vector<128x1xf32>
      %58 = math.exp %57 : vector<128x1xf32>
      %59 = arith.maximumf %54, %58 : vector<128x1xf32>
      %cst_31 = arith.constant 9.99999997E-7 : f32
      %60 = vector.broadcast %cst_31 : f32 to vector<128x1xf32>
      %61 = arith.addf %59, %60 : vector<128x1xf32>
      %62 = tpu.reciprocal %61 {approx = true} : vector<128x1xf32> -> vector<128x1xf32>
      %63 = vector.broadcast %62 : vector<128x1xf32> to vector<128x128xf32>
      %64 = arith.mulf %51, %63 : vector<128x128xf32>
      %cst_32 = arith.constant dense<0.000000e+00> : vector<128xf32>
      %65 = vector.multi_reduction <add>, %64, %cst_32 [1] : vector<128x128xf32> to vector<128xf32>
      %66 = vector.shape_cast %65 : vector<128xf32> to vector<128x1xf32>
      %cst_33 = arith.constant 1.280000e+02 : f32
      %67 = vector.broadcast %cst_33 : f32 to vector<128x1xf32>
      %68 = arith.divf %66, %67 : vector<128x1xf32>
      %69 = vector.broadcast %68 : vector<128x1xf32> to vector<128x128xf32>
      %70 = arith.subf %64, %69 : vector<128x128xf32>
      %71 = arith.mulf %70, %70 : vector<128x128xf32>
      %cst_34 = arith.constant dense<0.000000e+00> : vector<128xf32>
      %72 = vector.multi_reduction <add>, %71, %cst_34 [1] : vector<128x128xf32> to vector<128xf32>
      %73 = vector.shape_cast %72 : vector<128xf32> to vector<128x1xf32>
      %cst_35 = arith.constant 1.280000e+02 : f32
      %74 = vector.broadcast %cst_35 : f32 to vector<128x1xf32>
      %75 = arith.divf %73, %74 : vector<128x1xf32>
      %76 = vector.broadcast %68 : vector<128x1xf32> to vector<128x128xf32>
      %77 = arith.subf %64, %76 : vector<128x128xf32>
      %cst_36 = arith.constant 9.99999974E-6 : f32
      %78 = vector.broadcast %cst_36 : f32 to vector<128x1xf32>
      %79 = arith.addf %75, %78 : vector<128x1xf32>
      %80 = math.rsqrt %79 : vector<128x1xf32>
      %81 = vector.broadcast %80 : vector<128x1xf32> to vector<128x128xf32>
      %82 = arith.mulf %77, %81 : vector<128x128xf32>
      %c0_37 = arith.constant 0 : index
      %c0_38 = arith.constant 0 : index
      %c0_39 = arith.constant 0 : index
      %83 = vector.load %arg10[%c0_37, %c0_38, %c0_39] : memref<1x1x128xf32, #tpu.memory_space<vmem>>, vector<1x1x128xf32>
      %84 = vector.shape_cast %83 : vector<1x1x128xf32> to vector<1x128xf32>
      %85 = vector.broadcast %84 : vector<1x128xf32> to vector<128x128xf32>
      %86 = arith.mulf %82, %85 : vector<128x128xf32>
      %c0_40 = arith.constant 0 : index
      %c0_41 = arith.constant 0 : index
      %c0_42 = arith.constant 0 : index
      %87 = vector.load %arg11[%c0_40, %c0_41, %c0_42] : memref<1x128x128xf32, #tpu.memory_space<vmem>>, vector<1x128x128xf32>
      %88 = vector.shape_cast %87 : vector<1x128x128xf32> to vector<128x128xf32>
      %89 = vector.shape_cast %86 : vector<128x128xf32> to vector<1x128x128xf32>
      tpu.vector_store %arg11[%c0_40, %c0_41, %c0_42], %89 {strides = array<i32>} : memref<1x128x128xf32, #tpu.memory_space<vmem>>, vector<1x128x128xf32>,
    } else {
    }
    return
  }
  func.func @transform_0(%arg0: i32, %arg1: i32, %arg2: i32, %arg3: memref<10xi32, #tpu.memory_space<smem>>, %arg4: memref<10xi32, #tpu.memory_space<smem>>) -> (i32, i32, i32) {
    %0 = arith.index_cast %arg2 : i32 to index
    %1 = memref.load %arg3[%0] : memref<10xi32, #tpu.memory_space<smem>>
    %c0_i32 = arith.constant 0 : i32
    return %arg0, %1, %arg1 : i32, i32, i32
  }
  func.func @transform_1(%arg0: i32, %arg1: i32, %arg2: i32, %arg3: memref<10xi32, #tpu.memory_space<smem>>, %arg4: memref<10xi32, #tpu.memory_space<smem>>) -> (i32, i32, i32) {
    %0 = arith.index_cast %arg2 : i32 to index
    %1 = memref.load %arg4[%0] : memref<10xi32, #tpu.memory_space<smem>>
    %c0_i32 = arith.constant 0 : i32
    return %arg0, %1, %arg1 : i32, i32, i32
  }
  func.func @transform_2(%arg0: i32, %arg1: i32, %arg2: i32, %arg3: memref<10xi32, #tpu.memory_space<smem>>, %arg4: memref<10xi32, #tpu.memory_space<smem>>) -> (i32, i32, i32) {
    %0 = arith.index_cast %arg2 : i32 to index
    %1 = memref.load %arg4[%0] : memref<10xi32, #tpu.memory_space<smem>>
    %c0_i32 = arith.constant 0 : i32
    return %arg0, %1, %arg1 : i32, i32, i32
  }
  func.func @transform_3(%arg0: i32, %arg1: i32, %arg2: i32, %arg3: memref<10xi32, #tpu.memory_space<smem>>, %arg4: memref<10xi32, #tpu.memory_space<smem>>) -> (i32, i32, i32, i32) {
    %0 = arith.index_cast %arg2 : i32 to index
    %1 = memref.load %arg3[%0] : memref<10xi32, #tpu.memory_space<smem>>
    %c0_i32 = arith.constant 0 : i32
    %c0_i32_0 = arith.constant 0 : i32
    return %arg0, %arg1, %1, %c0_i32 : i32, i32, i32, i32
  }
  func.func @transform_4(%arg0: i32, %arg1: i32, %arg2: i32, %arg3: memref<10xi32, #tpu.memory_space<smem>>, %arg4: memref<10xi32, #tpu.memory_space<smem>>) -> (i32, i32, i32, i32) {
    %0 = arith.index_cast %arg2 : i32 to index
    %1 = memref.load %arg4[%0] : memref<10xi32, #tpu.memory_space<smem>>
    %c0_i32 = arith.constant 0 : i32
    %c0_i32_0 = arith.constant 0 : i32
    return %arg0, %arg1, %c0_i32, %1 : i32, i32, i32, i32
  }
  func.func @transform_5(%arg0: i32, %arg1: i32, %arg2: i32, %arg3: memref<10xi32, #tpu.memory_space<smem>>, %arg4: memref<10xi32, #tpu.memory_space<smem>>) -> (i32, i32, i32) {
    %c0_i32 = arith.constant 0 : i32
    %c0_i32_0 = arith.constant 0 : i32
    %c0_i32_1 = arith.constant 0 : i32
    return %arg1, %c0_i32, %c0_i32_0 : i32, i32, i32
  }
  func.func @transform_6(%arg0: i32, %arg1: i32, %arg2: i32, %arg3: memref<10xi32, #tpu.memory_space<smem>>, %arg4: memref<10xi32, #tpu.memory_space<smem>>) -> (i32, i32, i32) {
    %0 = arith.index_cast %arg2 : i32 to index
    %1 = memref.load %arg3[%0] : memref<10xi32, #tpu.memory_space<smem>>
    %c0_i32 = arith.constant 0 : i32
    return %arg0, %1, %arg1 : i32, i32, i32
  }
}

</mosaic_0001>

<bundles_post_ra>
// kernel: tpu_custom_call.1
= control target key start
LH: loop header
LB: loop body
LE: loop exit
PB: predicated region body
PF: predicated region fallthrough
CT: control target
= control target key end

     0   :  { %s4293_s11 = smov [#allocation6]   ;;  %s4294_s12 = smov [#allocation7]   ;;  %s5848_s0 = inlined_call_operand.hbm [shape: s32[10], index: 0, kind: input, shape index: {}]   ;;  %s5849_s2 = inlined_call_operand.vmem [shape: bf16[2,512,256], index: 2, kind: input, shape index: {}]   ;;  %s5850_s3 = inlined_call_operand.vmem [shape: bf16[2,512,256], index: 3, kind: input, shape index: {}]   ;;  %s5851_s4 = inlined_call_operand.hbm [shape: bf16[2,512,256], index: 4, kind: input, shape index: {}]   ;;  %s5852_s5 = inlined_call_operand.vmem [shape: f32[2,2,512,1], index: 5, kind: input, shape index: {}]   ;;  %s5853_s6 = inlined_call_operand.vmem [shape: f32[2,2,1,512], index: 6, kind: input, shape index: {}]   ;;  %s5854_s7 = inlined_call_operand.hbm [shape: f32[2,1,128], index: 7, kind: input, shape index: {}]   ;;  %s5855_s8 = inlined_call_operand.hbm [shape: f32[2,512,256], index: 8, kind: output, shape index: {}]   ;;  %s5856_s1 = inlined_call_operand.hbm [shape: s32[10], index: 1, kind: input, shape index: {}]  }
   0x1   :  { %5896 = sst [smem:[#allocation58_spill]] %s5849_s2  ;;  %s14_s29 = sshll.u32 %s5848_s0, 4  ;;  %s15_s29 = int_to_ptr.hbm [resolvable:$true] %s14_s29 }
   0x2   :  { %5897 = sst [smem:[#allocation59_spill]] %s5850_s3  ;;  %s19_s10 = sshll.u32 %s5856_s1, 4  ;;  %s20_s10 = int_to_ptr.hbm [resolvable:$true] %s19_s10 }
   0x3   :  { %5898 = sst [smem:[#allocation60_spill]] %s5851_s4 }
   0x4   :  { %5899 = sst [smem:[#allocation61_spill]] %s5852_s5 }
   0x5   :  { %5900 = sst [smem:[#allocation62_spill]] %s5853_s6 }
   0x6   :  { %5901 = sst [smem:[#allocation63_spill]] %s5854_s7 }
   0x7   :  { %5902 = sst [smem:[#allocation64_spill]] %s5855_s8 }
   0x8   :  { %17 = dma.hbm_to_smem %s15_s29, 16, %s4293_s11, [#allocation5] }
   0x9   :  { %22 = dma.hbm_to_smem %s20_s10, 16, %s4294_s12, [#allocation5] }
   0xa   :  { %4199 = dma.done.wait [#allocation5], 32 }
   0xb   :  { %4200 = vsyncadd [#allocation5], 4294967264 }
   0xc   :  { %25 = sfence }
   0xd   :  { %26 = vsyncpa [#allocation11], 0 }
   0xe   :  { %28 = vsyncpa [#allocation11 + $0x1], 0 }
   0xf   :  { %29 = vsyncpa [#allocation14], 0 }
  0x10   :  { %31 = vsyncpa [#allocation14 + $0x1], 0 }
  0x11   :  { %32 = vsyncpa [#allocation12], 0 }
  0x12   :  { %34 = vsyncpa [#allocation12 + $0x1], 0  ;;  %s4357_s0 = smov 0   ;;  %s4359_s13 = smov 0  }
  0x13   :  { %s4361_s1 = smov 0   ;;  %s4363_s14 = smov 0  }
  0x14   :  { %s4365_s15 = smov 0   ;;  %s4367_s16 = smov 0  }
  0x15   :  { %s4369_s17 = smov 0   ;;  %s4371_s18 = smov 0  }
  0x16   :  { %s4373_s19 = smov 0   ;;  %s4375_s20 = smov 0  }
  0x17   :  { %s4377_s21 = smov 0   ;;  %s4379_s22 = smov 0  }
  0x18   :  { %s4381_s23 = smov 0   ;;  %s4383_s24 = smov 0  }
  0x19   :  { %s4385_s25 = smov 0   ;;  %s4387_s26 = smov 0  }
  0x1a   :  { %s4389_s27 = smov 0   ;;  %s4391_s28 = smov 0  }
  0x1b   :  { %s4393_s29 = smov 0   ;;  %s4395_s30 = smov 0  }
  0x1c LB: > { %5903 = sst [smem:[#allocation22_spill]] %s4215_s0  ;;  %s52_s10 = sadd.s32 1, %s4279_s27  ;;  %s4291_s30 = sphi %s4395_s30, %s40_s30   ;;  %s4287_s29 = sphi %s4393_s29, %s6007_s29   ;;  %s4283_s28 = sphi %s4391_s28, %s6006_s28   ;;  %s4279_s27 = sphi %s4389_s27, %s6005_s27   ;;  %s4275_s26 = sphi %s4387_s26, %s6004_s26   ;;  %s4271_s25 = sphi %s4385_s25, %s6003_s25   ;;  %s4267_s24 = sphi %s4383_s24, %s6002_s24   ;;  %s4263_s23 = sphi %s4381_s23, %s6001_s23   ;;  %s4259_s22 = sphi %s4379_s22, %s6012_s22   ;;  %s4255_s21 = sphi %s4377_s21, %s5999_s21   ;;  %s4251_s20 = sphi %s4375_s20, %s5998_s20   ;;  %s4247_s19 = sphi %s4373_s19, %s5997_s19   ;;  %s4243_s18 = sphi %s4371_s18, %s6011_s18   ;;  %s4239_s17 = sphi %s4369_s17, %s5995_s17   ;;  %s4235_s16 = sphi %s4367_s16, %s5994_s16   ;;  %s4231_s15 = sphi %s4365_s15, %s6009_s15   ;;  %s4227_s14 = sphi %s4363_s14, %s6008_s14   ;;  %s4223_s1 = sphi %s4361_s1, %s5992_s1   ;;  %s4219_s13 = sphi %s4359_s13, %s5991_s13   ;;  %s4215_s0 = sphi %s4357_s0, %s5990_s0  }
  0x1d   : > { %5904 = sst [smem:[#allocation23_spill]] %s4219_s13  ;;  %s55_s11 = sadd.s32 1, %s4283_s28 }
  0x1e   : > { %5905 = sst [smem:[#allocation24_spill]] %s4223_s1  ;;  %p53_p0 = scmp.ge.s32.totalorder %s52_s10, 10 }
  0x1f   : > { %5906 = sst [smem:[#allocation25_spill]] %s4235_s16  ;;  %s59_s12 = sadd.s32 1, %s4287_s29 }
  0x20   : > { %5907 = sst [smem:[#allocation26_spill]] %s4243_s18  ;;  %s6014_s10 = smov (%p53_p0, %s52_s10), 0 }
  0x21   : > { %5908 = sst [smem:[#allocation27_spill]] %s4247_s19  ;;  %s6016_s11 = smov (!%p53_p0, %s55_s11), %s4283_s28 }
  0x22   : > { %5909 = sst [smem:[#allocation28_spill]] %s4251_s20  ;;  %p79_p1 = scmp.ne.s32.totalorder %s4263_s23, %s4259_s22 }
  0x23   : > { %5910 = sst [smem:[#allocation29_spill]] %s4255_s21  ;;  %p57_p2 = scmp.ge.s32.totalorder %s6016_s11, 2 }
  0x24   : > { %5911 = sst [smem:[#allocation30_spill]] %s4259_s22  ;;  %p80_p3 = scmp.eq.s32.totalorder %s4291_s30, 0 }
  0x25   : > { %5912 = sst [smem:[#allocation31_spill]] %s4263_s23  ;;  %s6018_s11 = smov (%p57_p2, %s6016_s11), 0 }
  0x26   : > { %5913 = sst [smem:[#allocation32_spill]] %s4267_s24  ;;  %s6020_s12 = smov (!%p57_p2, %s59_s12), %s4287_s29 }
  0x27   : > { %5914 = sst [smem:[#allocation33_spill]] %s4271_s25  ;;  %s4477_s6 = ssub.s32 %s4283_s28, %s6018_s11 }
  0x28   : > { %5915 = sst [smem:[#allocation34_spill]] %s4275_s26  ;;  %p4481_p4 = por %p80_p3, %p79_p1 }
  0x29   : > { %5916 = sst [smem:[#allocation35_spill]] %s4279_s27  ;;  %p61_p5 = scmp.ge.s32.totalorder %s6020_s12, 2 }
  0x2a   : > { %5917 = sst [smem:[#allocation36_spill]] %s4283_s28  ;;  %p111_p6 = scmp.ne.s32.totalorder %s4255_s21, %s4251_s20 }
  0x2b   : > { %5918 = sst [smem:[#allocation37_spill]] %s4287_s29  ;;  %s6022_s12 = smov (%p61_p5, %s6020_s12), 0 }
  0x2c   : > { %s63_s8 = sld [smem:[#allocation6 + %s4279_s27]]  ;;  %p4492_p7 = por %p111_p6, %p80_p3 }
  0x2d   : > { %5919 = sst [smem:[#allocation38_spill]] %s6014_s10  ;;  %s4499_s4 = ssub.s32 %s4287_s29, %s6022_s12 }
  0x2e   : > { %s64_s5 = sld [smem:[#allocation6 + %s6014_s10]]  ;;  %s136_s20 = sadd.s32 1, %s4247_s19 }
  0x2f   : > { %s95_s9 = sld [smem:[#allocation7 + %s4279_s27]]  ;;  %p143_p8 = scmp.ne.s32.totalorder %s4247_s19, %s4243_s18 }
  0x30   : > { %5920 = sst [smem:[#allocation39_spill]] %s6018_s11  ;;  %s5926_s2 = sadd.s32 1, %s4263_s23 }
  0x31   : > { %s96_s25 = sld [smem:[#allocation7 + %s6014_s10]]  ;;  %p4510_p10 = por %p143_p8, %p80_p3 }
  0x32   : > { %5922 = sst [smem:[#allocation40_spill]] %s6022_s12  ;;  %p149_p12 = scmp.ne.s32.totalorder %s4243_s18, %s4239_s17 }
  0x33   : > { %s5923_s11 = scalar_select %p4492_p7, 1, 0 }
  0x34   : > { %s66_s26 = ssub.s32 %s63_s8, %s64_s5  ;;  %s127_s22 = sld [smem:[#allocation7 + %s4279_s27]] }
  0x35   : > { %5924 = sst [smem:[#allocation41_spill]] %s5923_s11  ;;  %s67_s8 = sor.u32 %s66_s26, %s4499_s4 }
  0x36   : > { %s128_s5 = sld [smem:[#allocation7 + %s6014_s10]]  ;;  %s69_s7 = sor.u32 %s4477_s6, %s67_s8 }
  0x37   : > { %p70_p9 = scmp.eq.s32.totalorder %s69_s7, 0  ;;  %s98_s3 = ssub.s32 %s95_s9, %s96_s25 }
  0x38   : > { %s99_s12 = sor.u32 %s98_s3, %s4499_s4  ;;  %s5928_s25 = sadd.s32 1, %s4255_s21 }
  0x39   : > { %s4517_s26 = scalar_select %p70_p9, %s4263_s23, %s5926_s2  }
  0x3a   : > { %s101_s8 = sor.u32 %s99_s12, %s4477_s6  ;;  %s5930_s2 = sadd.s32 4294967295, %s4291_s30  }
  0x3b   : > { %5927 = sst [smem:[#allocation42_spill]] %s4517_s26  ;;  %p102_p11 = scmp.eq.s32.totalorder %s101_s8, 0 }
  0x3c   : > { %s130_s28 = ssub.s32 %s127_s22, %s128_s5  ;;  %p150_p0 = scmp.eq.s32.totalorder %s5930_s2, 0 }
  0x3d   : > { %s131_s3 = sor.u32 %s130_s28, %s4499_s4  ;;  %p224_p1 = scmp.eq.s32.totalorder %s4477_s6, 0 }
  0x3e   : > { %s133_s7 = sor.u32 %s131_s3, %s4477_s6  ;;  %s226_s22 = sadd.s32 1, %s4235_s16 }
  0x3f   : > { %s4527_s9 = scalar_select %p102_p11, %s4255_s21, %s5928_s25  }
  0x40   : > { %p134_p13 = scmp.eq.s32.totalorder %s133_s7, 0  ;;  %p4536_p2 = por %p150_p0, %p149_p12 }
  0x41   : > { %5929 = sst [smem:[#allocation43_spill]] %s4527_s9  ;;  %p233_p5 = scmp.ne.s32.totalorder %s4235_s16, %s4231_s15 }
  0x42   : > { %s4534_s12 = scalar_select %p134_p13, %s4247_s19, %s136_s20  }
  0x43   : > { %s5932_s28 = scalar_select %p4536_p2, 1, 0 }
  0x44   : > { %5931 = sst [smem:[#allocation44_spill]] %s4534_s12  ;;  %p4547_p6 = por %p233_p5, %p80_p3 }
  0x45   : > { %s4543_s17 = scalar_select %p224_p1, %s4235_s16, %s226_s22  }
  0x46   : > { %p239_p8 = scmp.ne.s32.totalorder %s4231_s15, %s4227_s14  ;;  %s3273_s8 = sadd.s32 4294967294, %s4291_s30  }
  0x47   : > { %5933 = sst [smem:[#allocation45_spill]] %s4543_s17  ;;  %p268_p11 = scmp.ne.s32.totalorder %s4223_s1, %s4219_s13 }
  0x48   : > { %s249_s20 = sld [smem:[#allocation6 + %s4279_s27]]  ;;  %p4555_p9 = por %p239_p8, %p150_p0 }
  0x49   : > { %s250_s7 = sld [smem:[#allocation6 + %s6014_s10]]  ;;  %s5936_s25 = smov %s5930_s2 }
  0x4a   : > { %p269_p12 = scmp.eq.s32.totalorder %s5936_s25, 39  ;;  %p274_p13 = scmp.ne.s32.totalorder %s4219_s13, %s4215_s0 }
  0x4b   : > { %p275_p1 = scmp.eq.s32.totalorder %s3273_s8, 39  ;;  %s258_s12 = sadd.s32 1, %s4223_s1 }
  0x4c   : > { %p4566_p2 = por %p269_p12, %p268_p11  ;;  %p3275_p5 = scmp.ge.s32.totalorder %s4291_s30, 40 }
  0x4d   : > { %p4570_p3 = por %p275_p1, %p274_p13 }
  0x4e   : > { %s5937_s2 = scalar_select %p4566_p2, 1, 0 }
  0x4f   : > { %s5939_s22 = scalar_select %p4570_p3, 1, 0 }
  0x50   : > { %5938 = sst [smem:[#allocation46_spill]] %s5937_s2  ;;  %s252_s14 = ssub.s32 %s249_s20, %s250_s7 }
  0x51   : > { %5940 = sst [smem:[#allocation47_spill]] %s5939_s22  ;;  %s253_s26 = sor.u32 %s252_s14, %s4499_s4 }
  0x52   : > { %s255_s9 = sor.u32 %s253_s26, %s4477_s6 }
  0x53   : > { %p256_p0 = scmp.eq.s32.totalorder %s255_s9, 0  ;;  %291 = sbr.rel (%p3275_p5) target bundleno = 182 (0xb6), region = 16 }
  0x55   : > { %s4578_s17 = scalar_select %p256_p0, %s4223_s1, %s258_s12  }
  0x57   : > { %5941 = sst [smem:[#allocation48_spill]] %s4578_s17 }
  0x58   : > { %294 = sbr.rel (!%p4481_p4) target bundleno = 117 (0x75), region = 20  ;;  %s5942_s8 = sld [smem:[#allocation36_spill]] (%p4481_p4) }
  0x59   : > { %s299_s25 = sld [smem:[#allocation6 + %s4279_s27]] (%p4481_p4)  ;;  %s296_s10 = sand.u32 (%p4481_p4), 1, %s4263_s23  }
  0x5a   : > { %s3279_s22 = sshll.u32 (%p4481_p4), %s4287_s29, 7  ;;  %s3276_s20 = sshll.u32 (%p4481_p4), %s296_s10, 6 }
  0x5b   : > { %s5943_s14 = sld [smem:[#allocation58_spill]] (%p4481_p4)  ;;  %s298_s24 = scalar_lea.vmem (%p4481_p4), [#allocation8], %s3276_s20 }
  0x5f   : > { %s3504_s4 = sshll.u32 %s299_s25, 5 }
  0x60   : > { %s302_s6 = sadd.s32 %s5942_s8, %s3504_s4 }
  0x61   : > { %s304_s26 = sadd.s32 %s3279_s22, %s302_s6 }
  0x62   : > { %s3280_s9 = sshll.u32 %s304_s26, 2 }
  0x63   : > { %s4590_s17 = scalar_lea.vmem %s5943_s14, %s3280_s9 }
  0x64   : > { %v323_v0 = vld [vmem:[%s4590_s17] sm:$0xf]  ;;  %v325_v1 = vld [vmem:[%s4590_s17 + $0x8] sm:$0xf]  ;;  %v327_v2 = vld [vmem:[%s4590_s17 + $0x10] sm:$0xf] }
  0x65   : > { %324 = vst [vmem:[%s298_s24] sm:$0xf] %v323_v0  ;;  %v329_v3 = vld [vmem:[%s4590_s17 + $0x18] sm:$0xf]  ;;  %v331_v4 = vld [vmem:[%s4590_s17 + $0x20] sm:$0xf] }
  0x66   : > { %326 = vst [vmem:[%s298_s24 + $0x4] sm:$0xf] %v325_v1  ;;  %v333_v5 = vld [vmem:[%s4590_s17 + $0x28] sm:$0xf]  ;;  %v335_v6 = vld [vmem:[%s4590_s17 + $0x30] sm:$0xf] }
  0x67   : > { %328 = vst [vmem:[%s298_s24 + $0x8] sm:$0xf] %v327_v2  ;;  %v337_v7 = vld [vmem:[%s4590_s17 + $0x38] sm:$0xf]  ;;  %v339_v8 = vld [vmem:[%s4590_s17 + $0x40] sm:$0xf] }
  0x68   : > { %330 = vst [vmem:[%s298_s24 + $0xc] sm:$0xf] %v329_v3  ;;  %v341_v9 = vld [vmem:[%s4590_s17 + $0x48] sm:$0xf]  ;;  %v343_v10 = vld [vmem:[%s4590_s17 + $0x50] sm:$0xf] }
  0x69   : > { %332 = vst [vmem:[%s298_s24 + $0x10] sm:$0xf] %v331_v4  ;;  %v345_v11 = vld [vmem:[%s4590_s17 + $0x58] sm:$0xf]  ;;  %v347_v12 = vld [vmem:[%s4590_s17 + $0x60] sm:$0xf] }
  0x6a   : > { %334 = vst [vmem:[%s298_s24 + $0x14] sm:$0xf] %v333_v5  ;;  %v349_v13 = vld [vmem:[%s4590_s17 + $0x68] sm:$0xf]  ;;  %v351_v14 = vld [vmem:[%s4590_s17 + $0x70] sm:$0xf] }
  0x6b   : > { %336 = vst [vmem:[%s298_s24 + $0x18] sm:$0xf] %v335_v6  ;;  %v353_v15 = vld [vmem:[%s4590_s17 + $0x78] sm:$0xf] }
  0x6c   : > { %338 = vst [vmem:[%s298_s24 + $0x1c] sm:$0xf] %v337_v7 }
  0x6d   : > { %340 = vst [vmem:[%s298_s24 + $0x20] sm:$0xf] %v339_v8 }
  0x6e   : > { %342 = vst [vmem:[%s298_s24 + $0x24] sm:$0xf] %v341_v9 }
  0x6f   : > { %344 = vst [vmem:[%s298_s24 + $0x28] sm:$0xf] %v343_v10 }
  0x70   : > { %346 = vst [vmem:[%s298_s24 + $0x2c] sm:$0xf] %v345_v11 }
  0x71   : > { %348 = vst [vmem:[%s298_s24 + $0x30] sm:$0xf] %v347_v12 }
  0x72   : > { %350 = vst [vmem:[%s298_s24 + $0x34] sm:$0xf] %v349_v13 }
  0x73   : > { %352 = vst [vmem:[%s298_s24 + $0x38] sm:$0xf] %v351_v14 }
  0x74   : > { %354 = vst [vmem:[%s298_s24 + $0x3c] sm:$0xf] %v353_v15 }
  0x75 PF: > { %410 = sbr.rel (!%p4492_p7) target bundleno = 146 (0x92), region = 61  ;;  %s5945_s22 = sld [smem:[#allocation36_spill]] (%p4492_p7) }
  0x76   : > { %s415_s8 = sld [smem:[#allocation7 + %s4279_s27]] (%p4492_p7)  ;;  %s412_s25 = sand.u32 (%p4492_p7), 1, %s4255_s21  }
  0x77   : > { %s3284_s20 = sshll.u32 (%p4492_p7), %s4287_s29, 7  ;;  %s3281_s4 = sshll.u32 (%p4492_p7), %s412_s25, 6 }
  0x78   : > { %s5946_s14 = sld [smem:[#allocation59_spill]] (%p4492_p7)  ;;  %s414_s10 = scalar_lea.vmem (%p4492_p7), [#allocation9], %s3281_s4 }
  0x7c   : > { %s3505_s6 = sshll.u32 %s415_s8, 5 }
  0x7d   : > { %s418_s26 = sadd.s32 %s5945_s22, %s3505_s6 }
  0x7e   : > { %s420_s9 = sadd.s32 %s3284_s20, %s418_s26 }
  0x7f   : > { %s3285_s12 = sshll.u32 %s420_s9, 2 }
  0x80   : > { %s4617_s24 = scalar_lea.vmem %s5946_s14, %s3285_s12 }
  0x81   : > { %v439_v16 = vld [vmem:[%s4617_s24] sm:$0xf]  ;;  %v441_v17 = vld [vmem:[%s4617_s24 + $0x8] sm:$0xf]  ;;  %v443_v18 = vld [vmem:[%s4617_s24 + $0x10] sm:$0xf] }
  0x82   : > { %440 = vst [vmem:[%s414_s10] sm:$0xf] %v439_v16  ;;  %v445_v19 = vld [vmem:[%s4617_s24 + $0x18] sm:$0xf]  ;;  %v447_v20 = vld [vmem:[%s4617_s24 + $0x20] sm:$0xf] }
  0x83   : > { %442 = vst [vmem:[%s414_s10 + $0x4] sm:$0xf] %v441_v17  ;;  %v449_v21 = vld [vmem:[%s4617_s24 + $0x28] sm:$0xf]  ;;  %v451_v22 = vld [vmem:[%s4617_s24 + $0x30] sm:$0xf] }
  0x84   : > { %444 = vst [vmem:[%s414_s10 + $0x8] sm:$0xf] %v443_v18  ;;  %v453_v23 = vld [vmem:[%s4617_s24 + $0x38] sm:$0xf]  ;;  %v455_v24 = vld [vmem:[%s4617_s24 + $0x40] sm:$0xf] }
  0x85   : > { %446 = vst [vmem:[%s414_s10 + $0xc] sm:$0xf] %v445_v19  ;;  %v457_v25 = vld [vmem:[%s4617_s24 + $0x48] sm:$0xf]  ;;  %v459_v26 = vld [vmem:[%s4617_s24 + $0x50] sm:$0xf] }
  0x86   : > { %448 = vst [vmem:[%s414_s10 + $0x10] sm:$0xf] %v447_v20  ;;  %v461_v27 = vld [vmem:[%s4617_s24 + $0x58] sm:$0xf]  ;;  %v463_v28 = vld [vmem:[%s4617_s24 + $0x60] sm:$0xf] }
  0x87   : > { %450 = vst [vmem:[%s414_s10 + $0x14] sm:$0xf] %v449_v21  ;;  %v465_v29 = vld [vmem:[%s4617_s24 + $0x68] sm:$0xf]  ;;  %v467_v30 = vld [vmem:[%s4617_s24 + $0x70] sm:$0xf] }
  0x88   : > { %452 = vst [vmem:[%s414_s10 + $0x18] sm:$0xf] %v451_v22  ;;  %v469_v31 = vld [vmem:[%s4617_s24 + $0x78] sm:$0xf] }
  0x89   : > { %454 = vst [vmem:[%s414_s10 + $0x1c] sm:$0xf] %v453_v23 }
  0x8a   : > { %456 = vst [vmem:[%s414_s10 + $0x20] sm:$0xf] %v455_v24 }
  0x8b   : > { %458 = vst [vmem:[%s414_s10 + $0x24] sm:$0xf] %v457_v25 }
  0x8c   : > { %460 = vst [vmem:[%s414_s10 + $0x28] sm:$0xf] %v459_v26 }
  0x8d   : > { %462 = vst [vmem:[%s414_s10 + $0x2c] sm:$0xf] %v461_v27 }
  0x8e   : > { %464 = vst [vmem:[%s414_s10 + $0x30] sm:$0xf] %v463_v28 }
  0x8f   : > { %466 = vst [vmem:[%s414_s10 + $0x34] sm:$0xf] %v465_v29 }
  0x90   : > { %468 = vst [vmem:[%s414_s10 + $0x38] sm:$0xf] %v467_v30 }
  0x91   : > { %470 = vst [vmem:[%s414_s10 + $0x3c] sm:$0xf] %v469_v31 }
  0x92 PF: > { %s5947_s22 = sld [smem:[#allocation36_spill]]  ;;  %s527_s8 = sand.u32 1, %s4247_s19  }
  0x93   : > { %s3286_s25 = sshll.u32 %s527_s8, 6  ;;  %s589_s26 = sand.u32 1, %s4235_s16  }
  0x94   : > { %s3588_s20 = scalar_select %p4510_p10, [#allocation7], [#allocation16] }
  0x95   : > { %s3589_s4 = scalar_select %p4510_p10, %s4279_s27, 0 }
  0x96   : > { %s3289_s9 = sshll.u32 %s4287_s29, 7  ;;  %s531_s12 = scalar_lea.vmem [#allocation10], %s3286_s25 }
  0x97   : > { %s532_s6 = sld [smem:[%s3588_s20 + %s3589_s4]]  ;;  %s4643_s17 = sshll.u32 %s531_s12, 4 }
  0x98   : > { %5948 = sst [smem:[#allocation49_spill]] %s4643_s17  ;;  %s592_s19 = scalar_lea.vmem [#allocation13], %s589_s26 }
  0x99   : > { %s5949_s24 = sld [smem:[#allocation63_spill]]  ;;  %s599_s1 = sshll.u32 %s592_s19, 4  ;;  %s600_s1 = int_to_ptr.vmem [resolvable:$true] %s599_s1 }
  0x9a   : > { %s5950_s25 = sld [smem:[#allocation60_spill]]  ;;  %s528_s17 = scalar_lea.sflag [#allocation11], %s527_s8 }
  0x9d   : > { %s3506_s23 = sshll.u32 %s532_s6, 5 }
  0x9e   : > { %s537_s21 = sadd.s32 %s5947_s22, %s3506_s23 }
  0x9f   : > { %s595_s10 = scalar_lea.hbm %s5949_s24, %s5947_s22  ;;  %s539_s0 = sadd.s32 %s3289_s9, %s537_s21 }
  0xa0   : > { %s597_s27 = sshll.u32 %s595_s10, 4  ;;  %s3290_s20 = sshll.u32 %s539_s0, 2  ;;  %s598_s27 = int_to_ptr.hbm [resolvable:$true] %s597_s27 }
  0xa1   : > { %s5951_s2 = smov %s5950_s25  ;;  %s541_s12 = scalar_lea.hbm %s5950_s25, %s3290_s20 }
  0xa2   : > { %s542_s13 = sshll.u32 %s541_s12, 4  ;;  %s4041_s0 = scalar_lea.hbm %s5951_s2, 1024  ;;  %s543_s13 = int_to_ptr.hbm [resolvable:$true] %s542_s13 }
  0xa3   : > { %s4035_s7 = sshra.s32 %s543_s13, 4  ;;  %s4036_s7 = int_to_ptr.hbm [resolvable:$true] %s4035_s7 }
  0xa4   : > { %s4037_s6 = scalar_lea.hbm %s4036_s7, 64  ;;  %p4042_p11 = scmp.lt.s32.totalorder %s4036_s7, %s5951_s2 }
  0xa5   : > { %p4038_p4 = scmp.ne.s32.totalorder %s4036_s7, %s4037_s6  ;;  %p4043_p12 = scmp.lt.s32.totalorder %s4041_s0, %s4037_s6 }
  0xa7   : > { %p4039_p7 = pnand %p4038_p4, %p4510_p10  ;;  %p4044_p13 = por %p4043_p12, %p4042_p11 }
  0xa9   : > { %p4040_p8 = pneg %p4039_p7 }
  0xab   : > { %p4045_p1 = pnand %p4044_p13, %p4040_p8 }
  0xad   : > { %4048 = shalt.err (!%p4045_p1)
}
  0xae   : > { %s4295_s29 = smov 128   ;;  %s5952_s8 = sld [smem:[#allocation49_spill]] }
  0xaf   : > { %s4296_s9 = smov 64   ;;  %s4297_s14 = smov 4  }
  0xb0   : > { %s590_s10 = scalar_lea.sflag [#allocation14], %s589_s26 }
  0xb1   : > { %3591 = dma.hbm_to_vmem [thread:$0]  (%p4547_p6), %s598_s27, 16, %s600_s1, %s590_s10  }
  0xb4   : > { %s5953_s24 = int_to_ptr.vmem [resolvable:$true] %s5952_s8 }
  0xb5   : > { %3590 = dma.hbm_to_vmem [thread:$0]  (%p4510_p10), %s543_s13, 1024, %s5953_s24, %s528_s17, %s4295_s29, %s4296_s9, %s4297_s14  }
  0xb6 PF: > { %p3291_p0 = scmp.ge.s32.totalorder %s4291_s30, 1  ;;  %p604_p5 = scmp.lt.s32.totalorder %s4291_s30, 41 }
  0xb8   : > { %p605_p4 = pnand %p3291_p0, %p604_p5 }
  0xb9   : > { %s5954_s20 = sld [smem:[#allocation30_spill]] (!%p605_p4)  ;;  %s624_s13 = sand.u32 (!%p605_p4), 1, %s4243_s18  }
  0xba   : > { %608 = sbr.rel (%p605_p4) target bundleno = 1593 (0x639), region = 118  ;;  %s5955_s4 = sld [smem:[#allocation28_spill]] (!%p605_p4) }
  0xbb   : > { %s3294_s17 = sshll.u32 (!%p605_p4), %s624_s13, 6  ;;  %s625_s27 = scalar_lea.sflag (!%p605_p4), [#allocation11], %s624_s13 }
  0xbc   : > { %s4681_s5 = scalar_lea.vmem (!%p605_p4), [#allocation10], %s3294_s17  ;;  %p5956_p10 = scmp.ne.s32.totalorder (!%p605_p4), %s5932_s28, 0 }
  0xbf   : > { %s611_s25 = sand.u32 1, %s5954_s20  }
  0xc0   : > { %s618_s12 = sand.u32 1, %s5955_s4   ;;  %s3292_s11 = sshll.u32 %s611_s25, 6 }
  0xc1   : > { %s3293_s7 = sshll.u32 %s618_s12, 6  ;;  %s4677_s26 = scalar_lea.vmem [#allocation8], %s3292_s11 }
  0xc2   : > { %s4679_s1 = scalar_lea.vmem [#allocation9], %s3293_s7 }
  0xc3   : > { %4202 = dma.done.wait (%p5956_p10), %s625_s27, 1024  }
  0xc4   : > { %4204 = vsyncadd (%p5956_p10), %s625_s27, 4294966272  ;;  %s634_s6 = sand.u32 1, %s4231_s15  }
  0xc5   : > { %s635_s19 = scalar_lea.sflag [#allocation14], %s634_s6  ;;  %s4688_s21 = scalar_lea.vmem [#allocation13], %s634_s6 }
  0xc6   : > { %4206 = dma.done.wait (%p4555_p9), %s635_s19, 16  }
  0xc7   : > { %4208 = vsyncadd (%p4555_p9), %s635_s19, 4294967280  ;;  %s5957_s0 = sld [smem:[#allocation34_spill]] }
  0xc8   : > { %s5958_s23 = sld [smem:[#allocation32_spill]] }
  0xc9   : > { %s5959_s22 = sld [smem:[#allocation33_spill]] }
  0xca   : > { %s5960_s29 = sld [smem:[#allocation23_spill]] }
  0xcb   : > { %s5961_s27 = sld [smem:[#allocation61_spill]] }
  0xcd   : > { %p713_p6 = scmp.lt.s32.totalorder %s5957_s0, 1 }
  0xce   : > { %s711_s28 = sld [smem:[#allocation6 + %s5958_s23]] }
  0xcf   : > { %p715_p7 = scmp.lt.s32.totalorder %s5959_s22, 1  ;;  %s6024_s0 = smov (!%p713_p6, %s5957_s0), 1 }
  0xd0   : > { %s727_s8 = sld [smem:[#allocation7 + %s5958_s23]]  ;;  %s5886_s9 = sand.u32 1, %s5960_s29  }
  0xd1   : > { %s6026_s22 = smov (!%p715_p7, %s5959_s22), 1  ;;  %s3298_s14 = sshll.u32 %s6024_s0, 7 }
  0xd2   : > { %s4702_s3 = sld [smem:[#allocation6 + %s5958_s23]]  ;;  %s3295_s20 = sshll.u32 %s5886_s9, 7 }
  0xd3   : > { %s4705_s10 = sld [smem:[#allocation7 + %s5958_s23]]  ;;  %s3297_s4 = sshll.u32 %s6026_s22, 6 }
  0xd4   : > { %s3296_s24 = sshll.u32 %s711_s28, 4  ;;  %s3300_s7 = sshll.u32 %s6026_s22, 2 }
  0xd5   : > { %p717_p9 = scmp.lt.s32.totalorder %s3296_s24, 63  ;;  %s3301_s19 = sshll.u32 %s6024_s0, 3 }
  0xd6   : > { %p732_p8 = scmp.lt.s32.totalorder %s727_s8, 3  ;;  %s5962_s29 = sld [smem:[#allocation62_spill]] }
  0xd7   : > { %s6028_s24 = smov (!%p717_p9, %s3296_s24), 63  ;;  %s4719_s16 = scalar_lea.vmem [#allocation15], %s3295_s20 }
  0xd8   : > { %s720_s25 = sadd.s32 %s3297_s4, %s6028_s24  ;;  %s6030_s8 = smov (!%p732_p8, %s727_s8), 3 }
  0xd9   : > { %s722_s12 = sadd.s32 %s3298_s14, %s720_s25  ;;  %s735_s28 = sadd.s32 %s3300_s7, %s6030_s8 }
  0xda   : > { %s3299_s11 = sshll.u32 %s722_s12, 3  ;;  %s737_s23 = sadd.s32 %s3301_s19, %s735_s28 }
  0xdb   : > { %s4712_s6 = scalar_lea.vmem %s5961_s27, %s3299_s11  ;;  %p3302_p11 = scmp.ne.s32.totalorder %s4705_s10, 0 }
  0xdc   : > { %s4717_s9 = scalar_lea.vmem %s5962_s29, %s737_s23 }
  0xdd   : > { %747 = sbr.rel (%p3302_p11) target bundleno = 275 (0x113), region = 138 }
  0xe2   : > { %vm748_vm0 = vcmask 7168   ;;  %v4298_v32 = vmov -inf   ;;  %v4299_v33 = vmov 0.0  }
  0xe3   : > { %749 = vst.msk [vmem:[#allocation2] sm:$0xff] %vm748_vm0, %v4298_v32 }
  0xe4   : > { %750 = vst.msk [vmem:[#allocation2 + $0x8] sm:$0xff] %vm748_vm0, %v4298_v32 }
  0xe5   : > { %751 = vst.msk [vmem:[#allocation2 + $0x10] sm:$0xff] %vm748_vm0, %v4298_v32 }
  0xe6   : > { %752 = vst.msk [vmem:[#allocation2 + $0x18] sm:$0xff] %vm748_vm0, %v4298_v32 }
  0xe7   : > { %753 = vst.msk [vmem:[#allocation2 + $0x20] sm:$0xff] %vm748_vm0, %v4298_v32 }
  0xe8   : > { %754 = vst.msk [vmem:[#allocation2 + $0x28] sm:$0xff] %vm748_vm0, %v4298_v32 }
  0xe9   : > { %755 = vst.msk [vmem:[#allocation2 + $0x30] sm:$0xff] %vm748_vm0, %v4298_v32 }
  0xea   : > { %756 = vst.msk [vmem:[#allocation2 + $0x38] sm:$0xff] %vm748_vm0, %v4298_v32 }
  0xeb   : > { %757 = vst.msk [vmem:[#allocation2 + $0x40] sm:$0xff] %vm748_vm0, %v4298_v32 }
  0xec   : > { %758 = vst.msk [vmem:[#allocation2 + $0x48] sm:$0xff] %vm748_vm0, %v4298_v32 }
  0xed   : > { %759 = vst.msk [vmem:[#allocation2 + $0x50] sm:$0xff] %vm748_vm0, %v4298_v32 }
  0xee   : > { %760 = vst.msk [vmem:[#allocation2 + $0x58] sm:$0xff] %vm748_vm0, %v4298_v32 }
  0xef   : > { %761 = vst.msk [vmem:[#allocation2 + $0x60] sm:$0xff] %vm748_vm0, %v4298_v32 }
  0xf0   : > { %762 = vst.msk [vmem:[#allocation2 + $0x68] sm:$0xff] %vm748_vm0, %v4298_v32 }
  0xf1   : > { %763 = vst.msk [vmem:[#allocation2 + $0x70] sm:$0xff] %vm748_vm0, %v4298_v32 }
  0xf2   : > { %764 = vst.msk [vmem:[#allocation2 + $0x78] sm:$0xff] %vm748_vm0, %v4298_v32 }
  0xf3   : > { %765 = vst.msk [vmem:[#allocation3] sm:$0xff] %vm748_vm0, %v4299_v33 }
  0xf4   : > { %766 = vst.msk [vmem:[#allocation3 + $0x8] sm:$0xff] %vm748_vm0, %v4299_v33 }
  0xf5   : > { %767 = vst.msk [vmem:[#allocation3 + $0x10] sm:$0xff] %vm748_vm0, %v4299_v33 }
  0xf6   : > { %768 = vst.msk [vmem:[#allocation3 + $0x18] sm:$0xff] %vm748_vm0, %v4299_v33 }
  0xf7   : > { %769 = vst.msk [vmem:[#allocation3 + $0x20] sm:$0xff] %vm748_vm0, %v4299_v33 }
  0xf8   : > { %770 = vst.msk [vmem:[#allocation3 + $0x28] sm:$0xff] %vm748_vm0, %v4299_v33 }
  0xf9   : > { %771 = vst.msk [vmem:[#allocation3 + $0x30] sm:$0xff] %vm748_vm0, %v4299_v33 }
  0xfa   : > { %772 = vst.msk [vmem:[#allocation3 + $0x38] sm:$0xff] %vm748_vm0, %v4299_v33 }
  0xfb   : > { %773 = vst.msk [vmem:[#allocation3 + $0x40] sm:$0xff] %vm748_vm0, %v4299_v33 }
  0xfc   : > { %774 = vst.msk [vmem:[#allocation3 + $0x48] sm:$0xff] %vm748_vm0, %v4299_v33 }
  0xfd   : > { %775 = vst.msk [vmem:[#allocation3 + $0x50] sm:$0xff] %vm748_vm0, %v4299_v33 }
  0xfe   : > { %776 = vst.msk [vmem:[#allocation3 + $0x58] sm:$0xff] %vm748_vm0, %v4299_v33 }
  0xff   : > { %777 = vst.msk [vmem:[#allocation3 + $0x60] sm:$0xff] %vm748_vm0, %v4299_v33 }
 0x100   : > { %778 = vst.msk [vmem:[#allocation3 + $0x68] sm:$0xff] %vm748_vm0, %v4299_v33 }
 0x101   : > { %779 = vst.msk [vmem:[#allocation3 + $0x70] sm:$0xff] %vm748_vm0, %v4299_v33 }
 0x102   : > { %780 = vst.msk [vmem:[#allocation3 + $0x78] sm:$0xff] %vm748_vm0, %v4299_v33 }
 0x103   : > { %781 = vst [vmem:[#allocation4 + $0x30] sm:$0xff] %v4299_v33 }
 0x104   : > { %782 = vst [vmem:[#allocation4] sm:$0xff] %v4299_v33 }
 0x105   : > { %783 = vst [vmem:[#allocation4 + $0x58] sm:$0xff] %v4299_v33 }
 0x106   : > { %784 = vst [vmem:[#allocation4 + $0x18] sm:$0xff] %v4299_v33 }
 0x107   : > { %785 = vst [vmem:[#allocation4 + $0x50] sm:$0xff] %v4299_v33 }
 0x108   : > { %786 = vst [vmem:[#allocation4 + $0x68] sm:$0xff] %v4299_v33 }
 0x109   : > { %787 = vst [vmem:[#allocation4 + $0x8] sm:$0xff] %v4299_v33 }
 0x10a   : > { %788 = vst [vmem:[#allocation4 + $0x48] sm:$0xff] %v4299_v33 }
 0x10b   : > { %789 = vst [vmem:[#allocation4 + $0x40] sm:$0xff] %v4299_v33 }
 0x10c   : > { %790 = vst [vmem:[#allocation4 + $0x20] sm:$0xff] %v4299_v33 }
 0x10d   : > { %791 = vst [vmem:[#allocation4 + $0x10] sm:$0xff] %v4299_v33 }
 0x10e   : > { %792 = vst [vmem:[#allocation4 + $0x38] sm:$0xff] %v4299_v33 }
 0x10f   : > { %793 = vst [vmem:[#allocation4 + $0x60] sm:$0xff] %v4299_v33 }
 0x110   : > { %794 = vst [vmem:[#allocation4 + $0x70] sm:$0xff] %v4299_v33 }
 0x111   : > { %795 = vst [vmem:[#allocation4 + $0x78] sm:$0xff] %v4299_v33 }
 0x112   : > { %796 = vst [vmem:[#allocation4 + $0x28] sm:$0xff] %v4299_v33 }
 0x113 PF: > { %p3303_p12 = scmp.ge.s32.totalorder %s4705_s10, %s4702_s3 }
 0x115   : > { %800 = sbr.rel (%p3303_p12) target bundleno = 743 (0x2e7), region = 142 }
 0x11a   : > { %v801_v34 = vld [vmem:[%s4717_s9] sm:$0x1]  ;;  %vm818_vm1 = vcmask 1040384   ;;  %v3522_v35 = vld [vmem:[%s4679_s1 + $0x38] sm:$0xff]  ;;  %v3521_v37 = vld [vmem:[%s4679_s1 + $0x30] sm:$0xff]  ;;  %v4300_v48 = vmov 0  }
 0x11b   : > { %v819_v36 = vsel %vm818_vm1, %v801_v34, -inf  ;;  %3556 = vmatpush.bf16.xpose.msra.mxu2 %v3522_v35  ;;  %1162 = vmatpush.bf16.xpose.msra.mxu0 %v3522_v35  ;;  %v3520_v38 = vld [vmem:[%s4679_s1 + $0x28] sm:$0xff]  ;;  %v3519_v39 = vld [vmem:[%s4679_s1 + $0x20] sm:$0xff]  ;;  %v3518_v40 = vld [vmem:[%s4679_s1 + $0x18] sm:$0xff]  ;;  %vm1556_vm2 = vcmask 7168  }
 0x11c   : > { %820 = vmax.xlane.f32.xlu0 %v819_v36  ;;  %v3517_v41 = vld [vmem:[%s4679_s1 + $0x10] sm:$0xff]  ;;  %v3516_v42 = vld [vmem:[%s4679_s1 + $0x8] sm:$0xff]  ;;  %v3515_v43 = vld [vmem:[%s4679_s1] sm:$0xff]  ;;  %3778 = vset.pattern.permute.xlu2 %v4300_v48 }
 0x11d   : > { %v3510_v44 = vld [vmem:[%s4677_s26 + $0x18] sm:$0xff]  ;;  %v3507_v45 = vld [vmem:[%s4677_s26] sm:$0xff]  ;;  %v3508_v47 = vld [vmem:[%s4677_s26 + $0x8] sm:$0xff]  ;;  %3777 = vset.pattern.permute.xlu1 %v4300_v48  ;;  %3776 = vset.pattern.permute.xlu0 %v4300_v48 }
 0x11e   : > { %v3511_v46 = vld [vmem:[%s4677_s26 + $0x20] sm:$0xff]  ;;  %v3512_v49 = vld [vmem:[%s4677_s26 + $0x28] sm:$0xff]  ;;  %v3509_v50 = vld [vmem:[%s4677_s26 + $0x10] sm:$0xff] }
 0x11f   : > { %v3513_v51 = vld [vmem:[%s4677_s26 + $0x30] sm:$0xff]  ;;  %v805_v53 = vld [vmem:[#allocation2 + $0x18] sm:$0xff]  ;;  %v4772_v54 = vld [vmem:[#allocation2 + $0x8] sm:$0xff] }
 0x120   : > { %v802_v55 = vld [vmem:[#allocation2] sm:$0xff]  ;;  %v4774_v57 = vld [vmem:[#allocation2 + $0x78] sm:$0xff]  ;;  %v4781_v62 = vld [vmem:[#allocation2 + $0x10] sm:$0xff] }
 0x121   : > { %v4776_v58 = vld [vmem:[#allocation2 + $0x20] sm:$0xff]  ;;  %v4791_v1 = vld [vmem:[#allocation2 + $0x58] sm:$0xff]  ;;  %v4800_v4 = vld [vmem:[#allocation2 + $0x50] sm:$0xff] }
 0x122   : > { %v3514_v6 = vld [vmem:[%s4677_s26 + $0x38] sm:$0xff]  ;;  %v4803_v7 = vld [vmem:[#allocation2 + $0x60] sm:$0xff]  ;;  %v807_v9 = vld [vmem:[#allocation2 + $0x28] sm:$0xff] }
 0x123   : > { %3557 = vmatpush.bf16.xpose.msra.mxu2 %v3521_v37  ;;  %1163 = vmatpush.bf16.xpose.msra.mxu0 %v3521_v37  ;;  %v4807_v10 = vld [vmem:[#allocation2 + $0x68] sm:$0xff]  ;;  %v4809_v11 = vld [vmem:[#allocation2 + $0x70] sm:$0xff]  ;;  %v4835_v20 = vld [vmem:[#allocation2 + $0x38] sm:$0xff] }
 0x124   : > { %v4816_v13 = vld [vmem:[#allocation2 + $0x30] sm:$0xff]  ;;  %v810_v23 = vld [vmem:[#allocation2 + $0x40] sm:$0xff]  ;;  %v4848_v24 = vld [vmem:[#allocation2 + $0x48] sm:$0xff] }
 0x12b   : > { %3558 = vmatpush.bf16.xpose.msra.mxu2 %v3520_v38  ;;  %1164 = vmatpush.bf16.xpose.msra.mxu0 %v3520_v38 }
 0x133   : > { %3559 = vmatpush.bf16.xpose.msra.mxu2 %v3519_v39  ;;  %1165 = vmatpush.bf16.xpose.msra.mxu0 %v3519_v39 }
 0x13b   : > { %3560 = vmatpush.bf16.xpose.msra.mxu2 %v3518_v40  ;;  %1166 = vmatpush.bf16.xpose.msra.mxu0 %v3518_v40 }
 0x143   : > { %3561 = vmatpush.bf16.xpose.msra.mxu2 %v3517_v41  ;;  %1167 = vmatpush.bf16.xpose.msra.mxu0 %v3517_v41 }
 0x14b   : > { %3562 = vmatpush.bf16.xpose.msra.mxu2 %v3516_v42  ;;  %1168 = vmatpush.bf16.xpose.msra.mxu0 %v3516_v42 }
 0x153   : > { %3563 = vmatpush.bf16.xpose.msra.mxu2 %v3515_v43  ;;  %1169 = vmatpush.bf16.xpose.msra.mxu0 %v3515_v43 }
 0x15a   : > { %1185 = vmatmul.bf16.vlgmr.msra.gmra.mxu2 %v3510_v44  ;;  %1170 = vmatmul.bf16.vlgmr.msra.gmra.mxu0 %v3507_v45 }
 0x16a   : > { %1190 = vmatmul.bf16.gmra.mxu2 %v3511_v46  ;;  %1175 = vmatmul.bf16.gmra.mxu0 %v3508_v47 }
 0x17a   : > { %1195 = vmatmul.bf16.gmra.mxu2 %v3512_v49  ;;  %1180 = vmatmul.bf16.gmra.mxu0 %v3509_v50 }
 0x18a   : > { %1200 = vmatmul.bf16.gmra.mxu2 %v3513_v51 }
 0x18f   : > { %v821_v52 = vpop.xlane.xlu0 %820 }
 0x190   : > { %v822_v56 = vperm.slane %v821_v52, 0 }
 0x192   : > { %v826_v59 = vmax.f32 %v805_v53, %v822_v56  ;;  %v4779_v60 = vmax.f32 %v4772_v54, %v822_v56  ;;  %v823_v61 = vmax.f32 %v802_v55, %v822_v56  ;;  %v4784_v63 = vmax.f32 %v4774_v57, %v822_v56 }
 0x193   : > { %v4789_v0 = vmax.f32 %v4776_v58, %v822_v56  ;;  %v4796_v2 = vmax.f32 %v4781_v62, %v822_v56  ;;  %v834_v8 = vmax.f32 %v4791_v1, %v822_v56  ;;  %v4814_v12 = vmax.f32 %v4800_v4, %v822_v56 }
 0x194   : > { %907 = vperm.xlu2 %3778, %v826_v59   ;;  %1560 = vst.msk [vmem:[#allocation2 + $0x18] sm:$0xff] %vm1556_vm2, %v826_v59  ;;  %897 = vperm.xlu1 %3777, %v4779_v60   ;;  %v854_v3 = vsub.f32 %v4774_v57, %v4784_v63  ;;  %v839_v5 = vsub.f32 %v802_v55, %v823_v61 }
 0x195   : > { %1558 = vst.msk [vmem:[#allocation2 + $0x8] sm:$0xff] %vm1556_vm2, %v4779_v60  ;;  %892 = vperm.xlu0 %3776, %v823_v61   ;;  %v4821_v14 = vmax.f32 %v4803_v7, %v822_v56  ;;  %v828_v16 = vmax.f32 %v807_v9, %v822_v56  ;;  %v4826_v17 = vmax.f32 %v4807_v10, %v822_v56 }
 0x196   : > { %1557 = vst.msk [vmem:[#allocation2] sm:$0xff] %vm1556_vm2, %v823_v61  ;;  %v855_v15 = vmul.f32 1.442695, %v839_v5  ;;  %v4829_v18 = vmax.f32 %v4809_v11, %v822_v56  ;;  %v4833_v19 = vmax.f32 %v4816_v13, %v822_v56  ;;  %v842_v25 = vsub.f32 %v805_v53, %v826_v59 }
 0x197   : > { %1561 = vst.msk [vmem:[#allocation2 + $0x20] sm:$0xff] %vm1556_vm2, %v4789_v0  ;;  %v852_v21 = vsub.f32 %v4807_v10, %v4826_v17  ;;  %v830_v26 = vmax.f32 %v4835_v20, %v822_v56  ;;  %v831_v27 = vmax.f32 %v810_v23, %v822_v56  ;;  %v832_v28 = vmax.f32 %v4848_v24, %v822_v56 }
 0x198   : > { %1559 = vst.msk [vmem:[#allocation2 + $0x10] sm:$0xff] %vm1556_vm2, %v4796_v2  ;;  %v853_v22 = vsub.f32 %v4809_v11, %v4829_v18  ;;  %3780 = vpow2.f32 %v855_v15  ;;  %v861_v29 = vmul.f32 1.442695, %v842_v25  ;;  %v844_v31 = vsub.f32 %v807_v9, %v828_v16 }
 0x199   : > { %1572 = vst.msk [vmem:[#allocation2 + $0x78] sm:$0xff] %vm1556_vm2, %v4784_v63  ;;  %v847_v34 = vsub.f32 %v810_v23, %v831_v27  ;;  %v850_v37 = vsub.f32 %v4791_v1, %v834_v8  ;;  %v840_v40 = vsub.f32 %v4772_v54, %v4779_v60  ;;  %v841_v41 = vsub.f32 %v4781_v62, %v4796_v2  ;;  %v3530_v1 = vld [vmem:[%s4681_s5 + $0x38] sm:$0xff]  ;;  %v3523_v23 = vld [vmem:[%s4681_s5] sm:$0xff] }
 0x19a   : > { %1205 = vmatmul.bf16.gmra.mxu2 %v3514_v6  ;;  %1568 = vst.msk [vmem:[#allocation2 + $0x58] sm:$0xff] %vm1556_vm2, %v834_v8  ;;  %3782 = vpow2.f32 %v861_v29  ;;  %v865_v32 = vmul.f32 1.442695, %v844_v31  ;;  %v843_v45 = vsub.f32 %v4776_v58, %v4789_v0  ;;  %v845_v46 = vsub.f32 %v4816_v13, %v4833_v19  ;;  %1491 = vmatpush.bf16.msra.mxu1 %v3530_v1  ;;  %v3526_v13 = vld [vmem:[%s4681_s5 + $0x18] sm:$0xff] }
 0x19b   : > { %1567 = vst.msk [vmem:[#allocation2 + $0x50] sm:$0xff] %vm1556_vm2, %v4814_v12  ;;  %v871_v35 = vmul.f32 1.442695, %v847_v34  ;;  %v877_v38 = vmul.f32 1.442695, %v850_v37  ;;  %v846_v51 = vsub.f32 %v4835_v20, %v830_v26  ;;  %v848_v52 = vsub.f32 %v4848_v24, %v832_v28  ;;  %3564 = vmatpush.bf16.msra.mxu3 %v3530_v1 }
 0x19c   : > { %912 = vperm.xlu2 %3778, %v4789_v0   ;;  %902 = vperm.xlu1 %3777, %v4796_v2   ;;  %1569 = vst.msk [vmem:[#allocation2 + $0x60] sm:$0xff] %vm1556_vm2, %v4821_v14  ;;  %3784 = vpow2.f32 %v865_v32  ;;  %v857_v42 = vmul.f32 1.442695, %v840_v40  ;;  %v859_v43 = vmul.f32 1.442695, %v841_v41  ;;  %v849_v58 = vsub.f32 %v4800_v4, %v4814_v12  ;;  %v3529_v2 = vld [vmem:[%s4681_s5 + $0x30] sm:$0xff] }
 0x19d   : > { %967 = vperm.xlu0 %3776, %v4784_v63   ;;  %1562 = vst.msk [vmem:[#allocation2 + $0x28] sm:$0xff] %vm1556_vm2, %v828_v16  ;;  %3786 = vpow2.f32 %v871_v35  ;;  %v863_v47 = vmul.f32 1.442695, %v843_v45  ;;  %v867_v48 = vmul.f32 1.442695, %v845_v46  ;;  %v851_v59 = vsub.f32 %v4803_v7, %v4821_v14  ;;  %v3528_v7 = vld [vmem:[%s4681_s5 + $0x28] sm:$0xff] }
 0x19e   : > { %1563 = vst.msk [vmem:[#allocation2 + $0x30] sm:$0xff] %vm1556_vm2, %v4833_v19  ;;  %v4861_v30 = vpop.eup %3780  ;;  %3788 = vpow2.f32 %v877_v38  ;;  %v869_v53 = vmul.f32 1.442695, %v846_v51  ;;  %v873_v54 = vmul.f32 1.442695, %v848_v52  ;;  %1492 = vmatpush.bf16.msra.mxu1 %v3529_v2 }
 0x19f   : > { %1570 = vst.msk [vmem:[#allocation2 + $0x68] sm:$0xff] %vm1556_vm2, %v4826_v17  ;;  %3790 = vpow2.f32 %v857_v42  ;;  %v875_v60 = vmul.f32 1.442695, %v849_v58  ;;  %v879_v61 = vmul.f32 1.442695, %v851_v59  ;;  %3565 = vmatpush.bf16.msra.mxu3 %v3529_v2 }
 0x1a0   : > { %1571 = vst.msk [vmem:[#allocation2 + $0x70] sm:$0xff] %vm1556_vm2, %v4829_v18  ;;  %v4866_v33 = vpop.eup %3782  ;;  %3792 = vpow2.f32 %v859_v43  ;;  %v881_v57 = vmul.f32 1.442695, %v852_v21 }
 0x1a1   : > { %1564 = vst.msk [vmem:[#allocation2 + $0x38] sm:$0xff] %vm1556_vm2, %v830_v26  ;;  %3794 = vpow2.f32 %v863_v47 }
 0x1a2   : > { %1565 = vst.msk [vmem:[#allocation2 + $0x40] sm:$0xff] %vm1556_vm2, %v831_v27  ;;  %v4870_v36 = vpop.eup %3784  ;;  %3796 = vpow2.f32 %v867_v48  ;;  %1493 = vmatpush.bf16.msra.mxu1 %v3528_v7 }
 0x1a3   : > { %1566 = vst.msk [vmem:[#allocation2 + $0x48] sm:$0xff] %vm1556_vm2, %v832_v28  ;;  %v4876_v39 = vpop.eup %3786  ;;  %3798 = vpow2.f32 %v869_v53  ;;  %3566 = vmatpush.bf16.msra.mxu3 %v3528_v7 }
 0x1a4   : > { %947 = vperm.xlu2 %3778, %v834_v8   ;;  %942 = vperm.xlu1 %3777, %v4814_v12   ;;  %v4884_v44 = vpop.eup %3788  ;;  %3800 = vpow2.f32 %v873_v54  ;;  %v3527_v8 = vld [vmem:[%s4681_s5 + $0x20] sm:$0xff] }
 0x1a5   : > { %1325 = vperm.xlu0 %3776, %v4861_v30   ;;  %v4891_v49 = vpop.eup %3790  ;;  %3802 = vpow2.f32 %v875_v60 }
 0x1a6   : > { %v4893_v50 = vpop.eup %3792  ;;  %3804 = vpow2.f32 %v879_v61  ;;  %1494 = vmatpush.bf16.msra.mxu1 %v3527_v8 }
 0x1a7   : > { %v4899_v55 = vpop.eup %3794  ;;  %3567 = vmatpush.bf16.msra.mxu3 %v3527_v8 }
 0x1a8   : > { %v4901_v56 = vpop.eup %3796 }
 0x1a9   : > { %v4909_v62 = vpop.eup %3798 }
 0x1aa   : > { %v4911_v0 = vpop.eup %3800  ;;  %1495 = vmatpush.bf16.msra.mxu1 %v3526_v13 }
 0x1ab   : > { %v4917_v4 = vpop.eup %3802  ;;  %3568 = vmatpush.bf16.msra.mxu3 %v3526_v13 }
 0x1ac   : > { %952 = vperm.xlu2 %3778, %v4821_v14   ;;  %917 = vperm.xlu1 %3777, %v828_v16   ;;  %v4919_v5 = vpop.eup %3804  ;;  %v3525_v14 = vld [vmem:[%s4681_s5 + $0x10] sm:$0xff] }
 0x1ad   : > { %1340 = vperm.xlu0 %3776, %v4866_v33  }
 0x1ae   : > { %1496 = vmatpush.bf16.msra.mxu1 %v3525_v14 }
 0x1af   : > { %3569 = vmatpush.bf16.msra.mxu3 %v3525_v14 }
 0x1b4   : > { %922 = vperm.xlu2 %3778, %v4833_v19   ;;  %957 = vperm.xlu1 %3777, %v4826_v17   ;;  %v3524_v19 = vld [vmem:[%s4681_s5 + $0x8] sm:$0xff] }
 0x1b5   : > { %1350 = vperm.xlu0 %3776, %v4870_v36   ;;  %1497 = vmatpush.bf16.msra.mxu1 %v3524_v19 }
 0x1b6   : > { %3570 = vmatpush.bf16.msra.mxu3 %v3524_v19 }
 0x1b9   : > { %1498 = vmatpush.bf16.msra.mxu1 %v3523_v23 }
 0x1ba   : > { %3571 = vmatpush.bf16.msra.mxu3 %v3523_v23 }
 0x1bc   : > { %962 = vperm.xlu2 %3778, %v4829_v18   ;;  %927 = vperm.xlu1 %3777, %v830_v26  }
 0x1bd   : > { %1365 = vperm.xlu0 %3776, %v4876_v39  }
 0x1c4   : > { %937 = vperm.xlu2 %3778, %v832_v28   ;;  %932 = vperm.xlu1 %3777, %v831_v27   ;;  %v4938_v27 = vld [vmem:[%s4717_s9] ss:$0 sm:$0xff] }
 0x1c5   : > { %1380 = vperm.xlu0 %3776, %v4884_v44  }
 0x1cc   : > { %1335 = vperm.xlu2 %3778, %v4893_v50   ;;  %1330 = vperm.xlu1 %3777, %v4891_v49  }
 0x1d4   : > { %1355 = vperm.xlu2 %3778, %v4901_v56   ;;  %1345 = vperm.xlu1 %3777, %v4899_v55  }
 0x1d7   : > { %v1171_v15 = vpop.f32.mrf.mxu0 }
 0x1dc   : > { %1370 = vperm.xlu2 %3778, %v4911_v0   ;;  %1360 = vperm.xlu1 %3777, %v4909_v62  }
 0x1dd   : > { %v4923_v6 = vpop.f32.mrf.mxu2 }
 0x1df   : > { %v1173_v24 = vpop.f32.mrf.mxu0 }
 0x1e4   : > { %1385 = vperm.xlu2 %3778, %v4919_v5   ;;  %1375 = vperm.xlu1 %3777, %v4917_v4  }
 0x1e5   : > { %v4927_v12 = vpop.f32.mrf.mxu2 }
 0x1e7   : > { %v1176_v31 = vpop.f32.mrf.mxu0 }
 0x1ed   : > { %v4932_v20 = vpop.f32.mrf.mxu2 }
 0x1ee   : > { %v908_v9 = vpop.permute.xlu2 %907 }
 0x1ef   : > { %v973_v48 = vsub.f32 %v4938_v27, %v908_v9  ;;  %v1178_v54 = vpop.f32.mrf.mxu0 }
 0x1f1   : > { %v989_v59 = vadd.f32 -2.4260151, %v973_v48 }
 0x1f3   : > { %v1008_v14 = vmul.f32 1.442695, %v989_v59 }
 0x1f5   : > { %v4935_v26 = vpop.f32.mrf.mxu2 }
 0x1f6   : > { %v913_v16 = vpop.permute.xlu2 %912 }
 0x1f7   : > { %v974_v37 = vsub.f32 %v4938_v27, %v913_v16 }
 0x1f9   : > { %v990_v43 = vadd.f32 -2.4260151, %v974_v37 }
 0x1fb   : > { %v1010_v53 = vmul.f32 1.442695, %v990_v43 }
 0x1fd   : > { %v1196_v45 = vpop.f32.mrf.mxu2 }
 0x1fe   : > { %v948_v25 = vpop.permute.xlu2 %947 }
 0x1ff   : > { %v981_v52 = vsub.f32 %v4938_v27, %v948_v25 }
 0x201   : > { %v997_v1 = vadd.f32 -2.4260151, %v981_v52 }
 0x203   : > { %v1024_v19 = vmul.f32 1.442695, %v997_v1 }
 0x205   : > { %v1198_v23 = vpop.f32.mrf.mxu2 }
 0x206   : > { %v4940_v28 = vpop.permute.xlu2 %952  ;;  %v898_v29 = vpop.permute.xlu1 %897 }
 0x207   : > { %v971_v32 = vsub.f32 %v4938_v27, %v898_v29  ;;  %v893_v34 = vpop.permute.xlu0 %892  ;;  %v982_v43 = vsub.f32 %v4938_v27, %v4940_v28 }
 0x208   : > { %v970_v35 = vsub.f32 %v4938_v27, %v893_v34 }
 0x209   : > { %v987_v38 = vadd.f32 -2.4260151, %v971_v32 }
 0x20a   : > { %v986_v40 = vadd.f32 -2.4260151, %v970_v35 }
 0x20b   : > { %v1004_v41 = vmul.f32 1.442695, %v987_v38 }
 0x20c   : > { %v1002_v42 = vmul.f32 1.442695, %v986_v40 }
 0x20d   : > { %3806 = vpow2.f32 %v1004_v41 }
 0x20e   : > { %v923_v46 = vpop.permute.xlu2 %922  ;;  %v903_v47 = vpop.permute.xlu1 %902  ;;  %3808 = vpow2.f32 %v1002_v42 }
 0x20f   : > { %v972_v51 = vsub.f32 %v4938_v27, %v903_v47  ;;  %3810 = vpow2.f32 %v1010_v53  ;;  %v976_v25 = vsub.f32 %v4938_v27, %v923_v46 }
 0x211   : > { %v988_v58 = vadd.f32 -2.4260151, %v972_v51  ;;  %v992_v38 = vadd.f32 -2.4260151, %v976_v25 }
 0x213   : > { %v1006_v60 = vmul.f32 1.442695, %v988_v58  ;;  %v3807_v61 = vpop.eup %3806  ;;  %v1014_v47 = vmul.f32 1.442695, %v992_v38  ;;  %v998_v58 = vadd.f32 -2.4260151, %v982_v43 }
 0x214   : > { %v3809_v2 = vpop.eup %3808  ;;  %v1212_v7 = vmul.f32 %v3807_v61, %v1173_v24  ;;  %v1181_v24 = vpop.f32.mrf.mxu0 }
 0x215   : > { %3812 = vpow2.f32 %v1006_v60  ;;  %v1211_v9 = vmul.f32 %v3809_v2, %v1171_v15  ;;  %v3811_v34 = vpop.eup %3810 }
 0x216   : > { %v4948_v8 = vpop.permute.xlu2 %962  ;;  %v943_v13 = vpop.permute.xlu1 %942  ;;  %1261 = vadd.xlane.f32.xlu1 %v1212_v7  ;;  %3814 = vpow2.f32 %v1008_v14  ;;  %v4952_v40 = vmul.f32 %v3811_v34, %v1181_v24 }
 0x217   : > { %v980_v16 = vsub.f32 %v4938_v27, %v943_v13  ;;  %1259 = vadd.xlane.f32.xlu0 %v1211_v9  ;;  %v1419_v29 = vpack.c.bf16 %v1212_v7, %v1211_v9  ;;  %3816 = vpow2.f32 %v1024_v19  ;;  %v1026_v13 = vmul.f32 1.442695, %v998_v58 }
 0x219   : > { %v996_v32 = vadd.f32 -2.4260151, %v980_v16  ;;  %1499 = vmatmul.bf16.vlgmr.msra.gmra.mxu1 %v1419_v29 }
 0x21b   : > { %v1022_v35 = vmul.f32 1.442695, %v996_v32  ;;  %v3813_v37 = vpop.eup %3812  ;;  %v968_v32 = vpop.permute.xlu0 %967 }
 0x21c   : > { %v1213_v15 = vmul.f32 %v3813_v37, %v1176_v31  ;;  %v3815_v51 = vpop.eup %3814  ;;  %v1201_v31 = vpop.f32.mrf.mxu2  ;;  %v985_v38 = vsub.f32 %v4938_v27, %v968_v32 }
 0x21d   : > { %3818 = vpow2.f32 %v1022_v35  ;;  %v3817_v53 = vpop.eup %3816  ;;  %v1214_v1 = vmul.f32 %v3815_v51, %v1178_v54  ;;  %v1183_v54 = vpop.f32.mrf.mxu0 }
 0x21e   : > { %v938_v41 = vpop.permute.xlu2 %937  ;;  %v918_v42 = vpop.permute.xlu1 %917  ;;  %1263 = vadd.xlane.f32.xlu2 %v1213_v15  ;;  %3820 = vpow2.f32 %v1014_v47  ;;  %v4959_v2 = vmul.f32 %v3817_v53, %v1198_v23 }
 0x21f   : > { %v975_v46 = vsub.f32 %v4938_v27, %v918_v42  ;;  %v979_v48 = vsub.f32 %v4938_v27, %v938_v41  ;;  %1267 = vadd.xlane.f32.xlu0 %v4952_v40  ;;  %v1420_v19 = vpack.c.bf16 %v1214_v1, %v1213_v15  ;;  %v984_v41 = vsub.f32 %v4938_v27, %v4948_v8 }
 0x221   : > { %v991_v52 = vadd.f32 -2.4260151, %v975_v46  ;;  %v995_v61 = vadd.f32 -2.4260151, %v979_v48  ;;  %v1001_v48 = vadd.f32 -2.4260151, %v985_v38 }
 0x222   : > { %v1000_v53 = vadd.f32 -2.4260151, %v984_v41  ;;  %v1227_v41 = vld [vmem:[#allocation3] sm:$0xff] }
 0x223   : > { %v1012_v59 = vmul.f32 1.442695, %v991_v52  ;;  %v3819_v60 = vpop.eup %3818  ;;  %v1020_v16 = vmul.f32 1.442695, %v995_v61 }
 0x224   : > { %v4961_v28 = vmul.f32 %v3819_v60, %v1196_v45  ;;  %v3821_v29 = vpop.eup %3820  ;;  %v1203_v34 = vpop.f32.mrf.mxu2  ;;  %v1030_v8 = vmul.f32 1.442695, %v1000_v53  ;;  %v1229_v53 = vld [vmem:[#allocation3 + $0x10] sm:$0xff] }
 0x225   : > { %3822 = vpow2.f32 %v1012_v59  ;;  %v1217_v35 = vmul.f32 %v3821_v29, %v4923_v6 }
 0x226   : > { %v958_v7 = vpop.permute.xlu1 %957  ;;  %1265 = vadd.xlane.f32.xlu2 %v1214_v1  ;;  %v1424_v14 = vpack.c.bf16 %v4959_v2, %v4961_v28  ;;  %3824 = vpow2.f32 %v1026_v13  ;;  %v1032_v1 = vmul.f32 1.442695, %v1001_v48  ;;  %v1336_v11 = vpop.permute.xlu2 %1335 }
 0x227   : > { %v983_v9 = vsub.f32 %v4938_v27, %v958_v7  ;;  %3826 = vpow2.f32 %v1020_v16 }
 0x228   : > { %1524 = vmatmul.bf16.vlgmr.msra.gmra.mxu3 %v1424_v14 }
 0x229   : > { %v999_v25 = vadd.f32 -2.4260151, %v983_v9  ;;  %1504 = vmatmul.bf16.gmra.mxu1 %v1420_v19 }
 0x22b   : > { %v1028_v23 = vmul.f32 1.442695, %v999_v25  ;;  %v3823_v45 = vpop.eup %3822 }
 0x22c   : > { %v1216_v24 = vmul.f32 %v3823_v45, %v1183_v54  ;;  %v3825_v42 = vpop.eup %3824  ;;  %v1206_v59 = vpop.f32.mrf.mxu2 }
 0x22d   : > { %3828 = vpow2.f32 %v1028_v23  ;;  %v3827_v46 = vpop.eup %3826  ;;  %v1223_v52 = vmul.f32 %v3825_v42, %v1201_v31 }
 0x22e   : > { %v928_v37 = vpop.permute.xlu1 %927  ;;  %1271 = vadd.xlane.f32.xlu2 %v1217_v35  ;;  %1269 = vadd.xlane.f32.xlu1 %v1216_v24  ;;  %v1220_v6 = vmul.f32 %v3827_v46, %v4935_v26  ;;  %v1421_v13 = vpack.c.bf16 %v1216_v24, %v4952_v40 }
 0x22f   : > { %v977_v15 = vsub.f32 %v4938_v27, %v928_v37 }
 0x231   : > { %v993_v43 = vadd.f32 -2.4260151, %v977_v15  ;;  %v1228_v15 = vld [vmem:[#allocation3 + $0x8] sm:$0xff] }
 0x232   : > { %v1244_v42 = vmul.f32 %v4891_v49, %v1228_v15  ;;  %v1307_v49 = vld [vmem:[#allocation4 + $0x30] sm:$0xff] }
 0x233   : > { %v3829_v47 = vpop.eup %3828  ;;  %v1016_v51 = vmul.f32 1.442695, %v993_v43 }
 0x234   : > { %v1224_v58 = vmul.f32 %v3829_v47, %v1203_v34  ;;  %v1208_v26 = vpop.f32.mrf.mxu2  ;;  %v1243_v47 = vmul.f32 %v4861_v30, %v1227_v41 }
 0x235   : > { %3830 = vpow2.f32 %v1016_v51 }
 0x236   : > { %v933_v60 = vpop.permute.xlu1 %932  ;;  %v1425_v61 = vpack.c.bf16 %v1224_v58, %v1223_v52  ;;  %1277 = vadd.xlane.f32.xlu2 %v1220_v6  ;;  %3832 = vpow2.f32 %v1032_v1 }
 0x237   : > { %v978_v7 = vsub.f32 %v4938_v27, %v933_v60  ;;  %3834 = vpow2.f32 %v1030_v8  ;;  %v1230_v8 = vld [vmem:[#allocation3 + $0x18] sm:$0xff] }
 0x238   : > { %1529 = vmatmul.bf16.gmra.mxu3 %v1425_v61 }
 0x239   : > { %v994_v9 = vadd.f32 -2.4260151, %v978_v7  ;;  %1509 = vmatmul.bf16.gmra.mxu1 %v1421_v13 }
 0x23b   : > { %v3831_v14 = vpop.eup %3830  ;;  %v1018_v31 = vmul.f32 1.442695, %v994_v9 }
 0x23c   : > { %v1218_v16 = vmul.f32 %v3831_v14, %v4927_v12  ;;  %v3833_v19 = vpop.eup %3832  ;;  %v885_v12 = vmul.f32 1.442695, %v854_v3  ;;  %v1246_v14 = vmul.f32 %v4866_v33, %v1230_v8  ;;  %v1237_v8 = vld [vmem:[#allocation3 + $0x50] sm:$0xff] }
 0x23d   : > { %3836 = vpow2.f32 %v1018_v31  ;;  %v3835_v25 = vpop.eup %3834  ;;  %v1226_v27 = vmul.f32 %v3833_v19, %v1208_v26  ;;  %v1233_v26 = vld [vmem:[#allocation3 + $0x30] sm:$0xff]  ;;  %v1232_v19 = vld [vmem:[#allocation3 + $0x28] sm:$0xff] }
 0x23e   : > { %1273 = vadd.xlane.f32.xlu0 %v1218_v16  ;;  %1283 = vadd.xlane.f32.xlu2 %v1223_v52  ;;  %v1225_v40 = vmul.f32 %v3835_v25, %v1206_v59  ;;  %v1422_v45 = vpack.c.bf16 %v1218_v16, %v1217_v35  ;;  %3838 = vpow2.f32 %v885_v12  ;;  %v1331_v63 = vpop.permute.xlu1 %1330  ;;  %v5002_v35 = vpop.permute.xlu2 %1355 }
 0x240   : > { %v1426_v23 = vpack.c.bf16 %v1226_v27, %v1225_v40 }
 0x243   : > { %v3837_v29 = vpop.eup %3836 }
 0x244   : > { %v1219_v54 = vmul.f32 %v3837_v29, %v4932_v20  ;;  %v883_v20 = vmul.f32 1.442695, %v853_v22  ;;  %v4984_v34 = vpop.eup %3838 }
 0x246   : > { %1275 = vadd.xlane.f32.xlu1 %v1219_v54  ;;  %1279 = vadd.xlane.f32.xlu0 %v4961_v28  ;;  %v1423_v32 = vpack.c.bf16 %v1220_v6, %v1219_v54  ;;  %3840 = vpow2.f32 %v883_v20  ;;  %v1326_v28 = vpop.permute.xlu0 %1325  ;;  %v4997_v22 = vpop.permute.xlu1 %1345  ;;  %v1245_v6 = vmul.f32 %v4893_v50, %v1229_v53  ;;  %v1308_v50 = vld [vmem:[#allocation4] sm:$0xff]  ;;  %v1248_v54 = vmul.f32 %v4870_v36, %v1232_v19  ;;  %v1310_v36 = vld [vmem:[#allocation4 + $0x18] sm:$0xff] }
 0x247   : > { %1289 = vadd.xlane.f32.xlu2 %v1226_v27  ;;  %3842 = vpow2.f32 %v881_v57  ;;  %v5008_v10 = vpop.permute.xlu2 %1370  ;;  %v1403_v30 = vmul.f32 %v1326_v28, %v1307_v49  ;;  %v1249_v27 = vmul.f32 %v4901_v56, %v1233_v26  ;;  %v1317_v57 = vld [vmem:[#allocation4 + $0x10] sm:$0xff]  ;;  %v1318_v53 = vld [vmem:[#allocation4 + $0x38] sm:$0xff] }
 0x248   : > { %1534 = vmatmul.bf16.gmra.mxu3 %v1426_v23 }
 0x249   : > { %1514 = vmatmul.bf16.gmra.mxu1 %v1422_v45  ;;  %v1309_v45 = vld [vmem:[#allocation4 + $0x58] sm:$0xff] }
 0x24a   : > { %v1405_v20 = vmul.f32 %v1336_v11, %v1309_v45 }
 0x24e   : > { %1281 = vadd.xlane.f32.xlu1 %v4959_v2  ;;  %1285 = vadd.xlane.f32.xlu0 %v1224_v58  ;;  %v4987_v2 = vpop.eup %3840  ;;  %v4993_v3 = vpop.permute.xlu0 %1340  ;;  %v1231_v58 = vld [vmem:[#allocation3 + $0x20] sm:$0xff] }
 0x24f   : > { %v4995_v18 = vpop.eup %3842  ;;  %v5004_v37 = vpop.permute.xlu1 %1360  ;;  %v1247_v60 = vmul.f32 %v4899_v55, %v1231_v58  ;;  %v1404_v55 = vmul.f32 %v1331_v63, %v1308_v50  ;;  %v1406_v11 = vmul.f32 %v4993_v3, %v1310_v36 }
 0x250   : > { %v5013_v43 = vpop.permute.xlu2 %1385 }
 0x256   : > { %1287 = vadd.xlane.f32.xlu1 %v1225_v40  ;;  %v4999_v24 = vpop.permute.xlu0 %1350 }
 0x257   : > { %v1376_v17 = vpop.permute.xlu1 %1375 }
 0x258   : > { %v1413_v41 = vmul.f32 %v1376_v17, %v1317_v57  ;;  %v1313_v57 = vld [vmem:[#allocation4 + $0x8] sm:$0xff] }
 0x259   : > { %1519 = vmatmul.bf16.gmra.mxu1 %v1423_v32  ;;  %v1236_v32 = vld [vmem:[#allocation3 + $0x48] sm:$0xff] }
 0x25a   : > { %v1252_v15 = vmul.f32 %v4911_v0, %v1236_v32 }
 0x25e   : > { %v5006_v38 = vpop.permute.xlu0 %1365 }
 0x25f   : > { %1400 = vperm.xlu2 %3778, %v4984_v34  }
 0x262   : > { %1395 = vperm.xlu0 %3776, %v4987_v2  }
 0x266   : > { %v5010_v21 = vpop.permute.xlu0 %1380 }
 0x267   : > { %v1414_v49 = vmul.f32 %v5010_v21, %v1318_v53  ;;  %v1253_v21 = vmul.f32 %v4917_v4, %v1237_v8  ;;  %v1240_v4 = vld [vmem:[#allocation3 + $0x68] sm:$0xff]  ;;  %v1321_v53 = vld [vmem:[#allocation4 + $0x78] sm:$0xff] }
 0x26f   : > { %1390 = vperm.xlu1 %3777, %v4995_v18  }
 0x289   : > { %v1262_v46 = vpop.xlane.xlu1 %1261 }
 0x28a   : > { %v1292_v48 = vadd.f32 %v1262_v46, %v1244_v42  ;;  %v1260_v51 = vpop.xlane.xlu0 %1259 }
 0x28b   : > { %v1291_v52 = vadd.f32 %v1260_v51, %v1243_v47  ;;  %v1239_v51 = vld [vmem:[#allocation3 + $0x60] sm:$0xff] }
 0x28c   : > { %1574 = vst.msk [vmem:[#allocation3 + $0x8] sm:$0xff] %vm1556_vm2, %v1292_v48  ;;  %v1234_v48 = vld [vmem:[#allocation3 + $0x38] sm:$0xff]  ;;  %v1255_v0 = vmul.f32 %v4919_v5, %v1239_v51 }
 0x28d   : > { %1573 = vst.msk [vmem:[#allocation3] sm:$0xff] %vm1556_vm2, %v1291_v52 }
 0x291   : > { %v1264_v59 = vpop.xlane.xlu2 %1263 }
 0x292   : > { %v1293_v61 = vadd.f32 %v1264_v59, %v1245_v6  ;;  %v1268_v1 = vpop.xlane.xlu0 %1267  ;;  %v1250_v6 = vmul.f32 %v4909_v62, %v1234_v48 }
 0x293   : > { %v1295_v7 = vadd.f32 %v1268_v1, %v1247_v60 }
 0x294   : > { %1575 = vst.msk [vmem:[#allocation3 + $0x10] sm:$0xff] %vm1556_vm2, %v1293_v61  ;;  %v1311_v61 = vld [vmem:[#allocation4 + $0x50] sm:$0xff] }
 0x295   : > { %1577 = vst.msk [vmem:[#allocation3 + $0x20] sm:$0xff] %vm1556_vm2, %v1295_v7  ;;  %v1407_v62 = vmul.f32 %v4997_v22, %v1311_v61 }
 0x296   : > { %v1500_v13 = vpop.f32.mrf.mxu1 }
 0x297   : > { %v1540_v9 = vadd.f32 %v1500_v13, %v1403_v30  ;;  %v1235_v30 = vld [vmem:[#allocation3 + $0x40] sm:$0xff]  ;;  %v1242_v13 = vld [vmem:[#allocation3 + $0x78] sm:$0xff] }
 0x299   : > { %1589 = vst [vmem:[#allocation4 + $0x30] sm:$0xff] %v1540_v9  ;;  %v1266_v31 = vpop.xlane.xlu2 %1265  ;;  %v1319_v9 = vld [vmem:[#allocation4 + $0x60] sm:$0xff] }
 0x29a   : > { %v1294_v16 = vadd.f32 %v1266_v31, %v1246_v14  ;;  %v1251_v31 = vmul.f32 %v4876_v39, %v1235_v30  ;;  %v1415_v22 = vmul.f32 %v5013_v43, %v1319_v9  ;;  %v1256_v43 = vmul.f32 %v4995_v18, %v1240_v4 }
 0x29c   : > { %1576 = vst.msk [vmem:[#allocation3 + $0x18] sm:$0xff] %vm1556_vm2, %v1294_v16  ;;  %v1258_v16 = vmul.f32 %v4984_v34, %v1242_v13 }
 0x29e   : > { %v1502_v25 = vpop.f32.mrf.mxu1 }
 0x29f   : > { %v1541_v29 = vadd.f32 %v1502_v25, %v1404_v55 }
 0x2a1   : > { %1590 = vst [vmem:[#allocation4] sm:$0xff] %v1541_v29  ;;  %v1272_v40 = vpop.xlane.xlu2 %1271  ;;  %v1270_v23 = vpop.xlane.xlu1 %1269  ;;  %v1312_v29 = vld [vmem:[#allocation4 + $0x68] sm:$0xff] }
 0x2a2   : > { %v1297_v33 = vadd.f32 %v1272_v40, %v1249_v27  ;;  %v1296_v12 = vadd.f32 %v1270_v23, %v1248_v54  ;;  %v1238_v40 = vld [vmem:[#allocation3 + $0x58] sm:$0xff]  ;;  %v1408_v23 = vmul.f32 %v4999_v24, %v1312_v29  ;;  %v1241_v24 = vld [vmem:[#allocation3 + $0x70] sm:$0xff] }
 0x2a4   : > { %1579 = vst.msk [vmem:[#allocation3 + $0x30] sm:$0xff] %vm1556_vm2, %v1297_v33  ;;  %v1254_v33 = vmul.f32 %v4884_v44, %v1238_v40  ;;  %v1257_v44 = vmul.f32 %v4987_v2, %v1241_v24 }
 0x2a5   : > { %1578 = vst.msk [vmem:[#allocation3 + $0x28] sm:$0xff] %vm1556_vm2, %v1296_v12 }
 0x2a6   : > { %v1505_v28 = vpop.f32.mrf.mxu1 }
 0x2a7   : > { %v1542_v63 = vadd.f32 %v1505_v28, %v1405_v20 }
 0x2a9   : > { %1591 = vst [vmem:[#allocation4 + $0x58] sm:$0xff] %v1542_v63  ;;  %v1278_v56 = vpop.xlane.xlu2 %1277 }
 0x2aa   : > { %v1300_v42 = vadd.f32 %v1278_v56, %v1252_v15  ;;  %v1409_v15 = vmul.f32 %v5002_v35, %v1313_v57  ;;  %v1315_v35 = vld [vmem:[#allocation4 + $0x40] sm:$0xff] }
 0x2ab   : > { %v1525_v46 = vpop.f32.mrf.mxu3 }
 0x2ac   : > { %1582 = vst.msk [vmem:[#allocation3 + $0x48] sm:$0xff] %vm1556_vm2, %v1300_v42  ;;  %v1550_v47 = vadd.f32 %v1525_v46, %v1413_v41  ;;  %v1314_v42 = vld [vmem:[#allocation4 + $0x48] sm:$0xff] }
 0x2ae   : > { %1599 = vst [vmem:[#allocation4 + $0x10] sm:$0xff] %v1550_v47  ;;  %v1507_v52 = vpop.f32.mrf.mxu1  ;;  %v1410_v47 = vmul.f32 %v5004_v37, %v1314_v42  ;;  %v1316_v37 = vld [vmem:[#allocation4 + $0x20] sm:$0xff] }
 0x2af   : > { %v1543_v58 = vadd.f32 %v1507_v52, %v1406_v11  ;;  %v1322_v11 = vld [vmem:[#allocation4 + $0x28] sm:$0xff] }
 0x2b1   : > { %v1274_v59 = vpop.xlane.xlu0 %1273  ;;  %1592 = vst [vmem:[#allocation4 + $0x18] sm:$0xff] %v1543_v58  ;;  %v1284_v17 = vpop.xlane.xlu2 %1283 }
 0x2b2   : > { %v1298_v60 = vadd.f32 %v1274_v59, %v1250_v6  ;;  %v1303_v1 = vadd.f32 %v1284_v17, %v1255_v0  ;;  %v1411_v17 = vmul.f32 %v5006_v38, %v1315_v35 }
 0x2b3   : > { %v1527_v3 = vpop.f32.mrf.mxu3 }
 0x2b4   : > { %1580 = vst.msk [vmem:[#allocation3 + $0x38] sm:$0xff] %vm1556_vm2, %v1298_v60  ;;  %v1551_v7 = vadd.f32 %v1527_v3, %v1414_v49 }
 0x2b5   : > { %1585 = vst.msk [vmem:[#allocation3 + $0x60] sm:$0xff] %vm1556_vm2, %v1303_v1  ;;  %v1412_v1 = vmul.f32 %v5008_v10, %v1316_v37 }
 0x2b6   : > { %1600 = vst [vmem:[#allocation4 + $0x38] sm:$0xff] %v1551_v7  ;;  %v1510_v5 = vpop.f32.mrf.mxu1  ;;  %v1320_v7 = vld [vmem:[#allocation4 + $0x70] sm:$0xff] }
 0x2b7   : > { %v1544_v14 = vadd.f32 %v1510_v5, %v1407_v62 }
 0x2b9   : > { %v1276_v50 = vpop.xlane.xlu1 %1275  ;;  %v1280_v55 = vpop.xlane.xlu0 %1279  ;;  %1593 = vst [vmem:[#allocation4 + $0x50] sm:$0xff] %v1544_v14 }
 0x2ba   : > { %v1299_v26 = vadd.f32 %v1276_v50, %v1251_v31  ;;  %v1290_v19 = vpop.xlane.xlu2 %1289  ;;  %v1301_v25 = vadd.f32 %v1280_v55, %v1253_v21 }
 0x2bb   : > { %v1306_v27 = vadd.f32 %v1290_v19, %v1258_v16  ;;  %v1530_v54 = vpop.f32.mrf.mxu3 }
 0x2bc   : > { %1581 = vst.msk [vmem:[#allocation3 + $0x40] sm:$0xff] %vm1556_vm2, %v1299_v26  ;;  %v1552_v39 = vadd.f32 %v1530_v54, %v1415_v22 }
 0x2bd   : > { %1588 = vst.msk [vmem:[#allocation3 + $0x78] sm:$0xff] %vm1556_vm2, %v1306_v27 }
 0x2be   : > { %1583 = vst.msk [vmem:[#allocation3 + $0x50] sm:$0xff] %vm1556_vm2, %v1301_v25  ;;  %v1512_v34 = vpop.f32.mrf.mxu1 }
 0x2bf   : > { %1601 = vst [vmem:[#allocation4 + $0x60] sm:$0xff] %v1552_v39  ;;  %v1545_v45 = vadd.f32 %v1512_v34, %v1408_v23 }
 0x2c1   : > { %v1282_v12 = vpop.xlane.xlu1 %1281  ;;  %v1286_v20 = vpop.xlane.xlu0 %1285  ;;  %1594 = vst [vmem:[#allocation4 + $0x68] sm:$0xff] %v1545_v45 }
 0x2c2   : > { %v1302_v32 = vadd.f32 %v1282_v12, %v1254_v33  ;;  %v1304_v28 = vadd.f32 %v1286_v20, %v1256_v43  ;;  %v1401_v51 = vpop.permute.xlu2 %1400 }
 0x2c3   : > { %v1532_v63 = vpop.f32.mrf.mxu3  ;;  %v1418_v58 = vmul.f32 %v1401_v51, %v1322_v11 }
 0x2c4   : > { %1584 = vst.msk [vmem:[#allocation3 + $0x58] sm:$0xff] %vm1556_vm2, %v1302_v32 }
 0x2c5   : > { %1586 = vst.msk [vmem:[#allocation3 + $0x68] sm:$0xff] %vm1556_vm2, %v1304_v28 }
 0x2c6   : > { %v1515_v56 = vpop.f32.mrf.mxu1 }
 0x2c7   : > { %v1546_v36 = vadd.f32 %v1515_v56, %v1409_v15 }
 0x2c9   : > { %v1288_v41 = vpop.xlane.xlu1 %1287  ;;  %1595 = vst [vmem:[#allocation4 + $0x8] sm:$0xff] %v1546_v36 }
 0x2ca   : > { %v1305_v18 = vadd.f32 %v1288_v41, %v1257_v44 }
 0x2cb   : > { %v1535_v46 = vpop.f32.mrf.mxu3 }
 0x2cc   : > { %1587 = vst.msk [vmem:[#allocation3 + $0x70] sm:$0xff] %vm1556_vm2, %v1305_v18 }
 0x2ce   : > { %v1517_v48 = vpop.f32.mrf.mxu1 }
 0x2cf   : > { %v1547_v52 = vadd.f32 %v1517_v48, %v1410_v47 }
 0x2d1   : > { %1596 = vst [vmem:[#allocation4 + $0x48] sm:$0xff] %v1547_v52 }
 0x2d3   : > { %v1537_v6 = vpop.f32.mrf.mxu3 }
 0x2d4   : > { %v1396_v0 = vpop.permute.xlu0 %1395  ;;  %v1555_v2 = vadd.f32 %v1537_v6, %v1418_v58 }
 0x2d5   : > { %v1417_v59 = vmul.f32 %v1396_v0, %v1321_v53 }
 0x2d6   : > { %1604 = vst [vmem:[#allocation4 + $0x28] sm:$0xff] %v1555_v2  ;;  %v1520_v49 = vpop.f32.mrf.mxu1 }
 0x2d7   : > { %v1554_v60 = vadd.f32 %v1535_v46, %v1417_v59  ;;  %v1548_v61 = vadd.f32 %v1520_v49, %v1411_v17 }
 0x2d9   : > { %1603 = vst [vmem:[#allocation4 + $0x78] sm:$0xff] %v1554_v60 }
 0x2da   : > { %1597 = vst [vmem:[#allocation4 + $0x40] sm:$0xff] %v1548_v61 }
 0x2de   : > { %v1522_v3 = vpop.f32.mrf.mxu1 }
 0x2df   : > { %v1549_v30 = vadd.f32 %v1522_v3, %v1412_v1 }
 0x2e1   : > { %v1391_v8 = vpop.permute.xlu1 %1390  ;;  %1598 = vst [vmem:[#allocation4 + $0x20] sm:$0xff] %v1549_v30 }
 0x2e2   : > { %v1416_v62 = vmul.f32 %v1391_v8, %v1320_v7 }
 0x2e4   : > { %v1553_v13 = vadd.f32 %v1532_v63, %v1416_v62 }
 0x2e6   : > { %1602 = vst [vmem:[#allocation4 + $0x70] sm:$0xff] %v1553_v13 }
 0x2e7 PF: > { %p3400_p13 = scmp.ne.s32.totalorder %s4705_s10, %s4702_s3 }
 0x2e9   : > { %1608 = sbr.rel (%p3400_p13) target bundleno = 1560 (0x618), region = 146 }
 0x2ee   : > { %v1610_v38 = vlaneseq  ;;  %v3546_v5 = vld [vmem:[%s4679_s1 + $0x38] sm:$0xff]  ;;  %v5059_v9 = vld [vmem:[%s4717_s9] ss:$0 sm:$0xff]  ;;  %v3545_v19 = vld [vmem:[%s4679_s1 + $0x30] sm:$0xff]  ;;  %v4301_v58 = vmov 0  }
 0x2ef   : > { %3572 = vmatpush.bf16.xpose.msra.mxu2 %v3546_v5  ;;  %2048 = vmatpush.bf16.xpose.msra.mxu0 %v3546_v5  ;;  %v3544_v4 = vld [vmem:[%s4679_s1 + $0x28] sm:$0xff]  ;;  %v3543_v20 = vld [vmem:[%s4679_s1 + $0x20] sm:$0xff]  ;;  %v3542_v56 = vld [vmem:[%s4679_s1 + $0x18] sm:$0xff] }
 0x2f0   : > { %v5061_v10 = vshrl.u32 %v1610_v38, 7  ;;  %v5063_v14 = vand.u32 127, %v1610_v38  ;;  %v3541_v46 = vld [vmem:[%s4679_s1 + $0x10] sm:$0xff]  ;;  %v3540_v48 = vld [vmem:[%s4679_s1 + $0x8] sm:$0xff]  ;;  %v3539_v11 = vld [vmem:[%s4679_s1] sm:$0xff]  ;;  %3844 = vset.pattern.permute.xlu1 %v4301_v58  ;;  %3846 = vset.pattern.permute.xlu0 %v4301_v58 }
 0x2f1   : > { %v3534_v51 = vld [vmem:[%s4677_s26 + $0x18] sm:$0xff]  ;;  %v3531_v52 = vld [vmem:[%s4677_s26] sm:$0xff]  ;;  %v3532_v35 = vld [vmem:[%s4677_s26 + $0x8] sm:$0xff]  ;;  %3845 = vset.pattern.permute.xlu2 %v4301_v58 }
 0x2f2   : > { %vm1629_vm3 = vcmp.ge.s32.totalorder %v5061_v10, %v5063_v14  ;;  %v1613_v31 = vadd.s32 16, %v5061_v10  ;;  %v1615_v21 = vadd.s32 32, %v5061_v10  ;;  %v1612_v50 = vadd.s32 8, %v5061_v10  ;;  %v3535_v53 = vld [vmem:[%s4677_s26 + $0x20] sm:$0xff]  ;;  %v3536_v6 = vld [vmem:[%s4677_s26 + $0x28] sm:$0xff]  ;;  %v3533_v0 = vld [vmem:[%s4677_s26 + $0x10] sm:$0xff] }
 0x2f3   : > { %v5071_v16 = vsel %vm1629_vm3, %v5059_v9, -inf  ;;  %v1616_v55 = vadd.s32 40, %v5061_v10  ;;  %v1614_v26 = vadd.s32 24, %v5061_v10  ;;  %v1617_v27 = vadd.s32 48, %v5061_v10  ;;  %v3537_v2 = vld [vmem:[%s4677_s26 + $0x30] sm:$0xff]  ;;  %v1664_v59 = vld [vmem:[#allocation2] sm:$0xff] }
 0x2f4   : > { %1680 = vmax.xlane.f32.xlu0 %v5071_v16  ;;  %vm1631_vm4 = vcmp.ge.s32.totalorder %v1613_v31, %v5063_v14  ;;  %vm1633_vm5 = vcmp.ge.s32.totalorder %v1615_v21, %v5063_v14  ;;  %vm1630_vm6 = vcmp.ge.s32.totalorder %v1612_v50, %v5063_v14  ;;  %v1619_v40 = vadd.s32 64, %v5061_v10  ;;  %v1666_v60 = vld [vmem:[#allocation2 + $0x10] sm:$0xff]  ;;  %v5180_v3 = vld [vmem:[#allocation2 + $0x20] sm:$0xff]  ;;  %v3538_v7 = vld [vmem:[%s4677_s26 + $0x38] sm:$0xff] }
 0x2f5   : > { %v5080_v25 = vsel %vm1631_vm4, %v5059_v9, -inf  ;;  %v5083_v29 = vsel %vm1633_vm5, %v5059_v9, -inf  ;;  %vm1634_vm7 = vcmp.ge.s32.totalorder %v1616_v55, %v5063_v14  ;;  %vm1632_vm8 = vcmp.ge.s32.totalorder %v1614_v26, %v5063_v14  ;;  %v1665_v30 = vld [vmem:[#allocation2 + $0x8] sm:$0xff]  ;;  %v1667_v5 = vld [vmem:[#allocation2 + $0x18] sm:$0xff]  ;;  %v5200_v55 = vld [vmem:[#allocation2 + $0x40] sm:$0xff] }
 0x2f6   : > { %1684 = vmax.xlane.f32.xlu1 %v5080_v25  ;;  %1688 = vmax.xlane.f32.xlu2 %v5083_v29  ;;  %v5091_v22 = vsel %vm1630_vm6, %v5059_v9, -inf  ;;  %v5095_v54 = vsel %vm1634_vm7, %v5059_v9, -inf  ;;  %v5098_v39 = vsel %vm1632_vm8, %v5059_v9, -inf  ;;  %v1618_v23 = vadd.s32 56, %v5061_v10  ;;  %v1669_v26 = vld [vmem:[#allocation2 + $0x28] sm:$0xff] }
 0x2f7   : > { %3573 = vmatpush.bf16.xpose.msra.mxu2 %v3545_v19  ;;  %2049 = vmatpush.bf16.xpose.msra.mxu0 %v3545_v19  ;;  %vm1635_vm9 = vcmp.ge.s32.totalorder %v1617_v27, %v5063_v14  ;;  %vm1637_vm10 = vcmp.ge.s32.totalorder %v1619_v40, %v5063_v14  ;;  %v1620_v45 = vadd.s32 72, %v5061_v10  ;;  %v1622_v12 = vadd.s32 88, %v5061_v10  ;;  %v5202_v19 = vld [vmem:[#allocation2 + $0x48] sm:$0xff] }
 0x2f8   : > { %vm1636_vm11 = vcmp.ge.s32.totalorder %v1618_v23, %v5063_v14  ;;  %v5110_v34 = vsel %vm1635_vm9, %v5059_v9, -inf  ;;  %v5114_v33 = vsel %vm1637_vm10, %v5059_v9, -inf  ;;  %v1621_v32 = vadd.s32 80, %v5061_v10 }
 0x2f9   : > { %v5117_v43 = vsel %vm1636_vm11, %v5059_v9, -inf  ;;  %vm1638_vm12 = vcmp.ge.s32.totalorder %v1620_v45, %v5063_v14  ;;  %vm1640_vm13 = vcmp.ge.s32.totalorder %v1622_v12, %v5063_v14  ;;  %v1623_v57 = vadd.s32 96, %v5061_v10 }
 0x2fa   : > { %vm1639_vm14 = vcmp.ge.s32.totalorder %v1621_v32, %v5063_v14  ;;  %v5129_v28 = vsel %vm1638_vm12, %v5059_v9, -inf  ;;  %v5133_v63 = vsel %vm1640_vm13, %v5059_v9, -inf  ;;  %v1625_v15 = vadd.s32 112, %v5061_v10  ;;  %v1671_v32 = vld [vmem:[#allocation2 + $0x38] sm:$0xff] }
 0x2fb   : > { %v5136_v24 = vsel %vm1639_vm14, %v5059_v9, -inf  ;;  %v1624_v36 = vadd.s32 104, %v5061_v10  ;;  %vm1641_vm15 = vcmp.ge.s32.totalorder %v1623_v57, %v5063_v14  ;;  %v1626_v41 = vadd.s32 120, %v5061_v10  ;;  %v5191_v10 = vld [vmem:[#allocation2 + $0x30] sm:$0xff]  ;;  %v5217_v57 = vld [vmem:[#allocation2 + $0x60] sm:$0xff] }
 0x2fc   : > { %1682 = vmax.xlane.f32.xlu0 %v5091_v22  ;;  %vm1643_vm0 = vcmp.ge.s32.totalorder %v1625_v15, %v5063_v14  ;;  %v5148_v44 = vsel %vm1641_vm15, %v5059_v9, -inf }
 0x2fd   : > { %vm1642_vm1 = vcmp.ge.s32.totalorder %v1624_v36, %v5063_v14  ;;  %v5152_v18 = vsel %vm1643_vm0, %v5059_v9, -inf  ;;  %vm1644_vm2 = vcmp.ge.s32.totalorder %v1626_v41, %v5063_v14 }
 0x2fe   : > { %1690 = vmax.xlane.f32.xlu2 %v5095_v54  ;;  %1686 = vmax.xlane.f32.xlu1 %v5098_v39  ;;  %v5155_v42 = vsel %vm1642_vm1, %v5059_v9, -inf  ;;  %v5163_v47 = vsel %vm1644_vm2, %v5059_v9, -inf }
 0x2ff   : > { %3574 = vmatpush.bf16.xpose.msra.mxu2 %v3544_v4  ;;  %2050 = vmatpush.bf16.xpose.msra.mxu0 %v3544_v4 }
 0x304   : > { %1692 = vmax.xlane.f32.xlu0 %v5110_v34 }
 0x306   : > { %1696 = vmax.xlane.f32.xlu2 %v5114_v33  ;;  %1694 = vmax.xlane.f32.xlu1 %v5117_v43 }
 0x307   : > { %3575 = vmatpush.bf16.xpose.msra.mxu2 %v3543_v20  ;;  %2051 = vmatpush.bf16.xpose.msra.mxu0 %v3543_v20  ;;  %v5215_v20 = vld [vmem:[#allocation2 + $0x58] sm:$0xff] }
 0x30c   : > { %1698 = vmax.xlane.f32.xlu0 %v5129_v28 }
 0x30e   : > { %1702 = vmax.xlane.f32.xlu2 %v5133_v63  ;;  %1700 = vmax.xlane.f32.xlu1 %v5136_v24 }
 0x30f   : > { %3576 = vmatpush.bf16.xpose.msra.mxu2 %v3542_v56  ;;  %2052 = vmatpush.bf16.xpose.msra.mxu0 %v3542_v56 }
 0x314   : > { %1704 = vmax.xlane.f32.xlu0 %v5148_v44 }
 0x316   : > { %1708 = vmax.xlane.f32.xlu2 %v5152_v18  ;;  %1706 = vmax.xlane.f32.xlu1 %v5155_v42 }
 0x317   : > { %3577 = vmatpush.bf16.xpose.msra.mxu2 %v3541_v46  ;;  %2053 = vmatpush.bf16.xpose.msra.mxu0 %v3541_v46 }
 0x31c   : > { %1710 = vmax.xlane.f32.xlu0 %v5163_v47 }
 0x31f   : > { %3578 = vmatpush.bf16.xpose.msra.mxu2 %v3540_v48  ;;  %2054 = vmatpush.bf16.xpose.msra.mxu0 %v3540_v48 }
 0x327   : > { %3579 = vmatpush.bf16.xpose.msra.mxu2 %v3539_v11  ;;  %2055 = vmatpush.bf16.xpose.msra.mxu0 %v3539_v11  ;;  %v5231_v11 = vld [vmem:[#allocation2 + $0x70] sm:$0xff] }
 0x32e   : > { %2071 = vmatmul.bf16.vlgmr.msra.gmra.mxu2 %v3534_v51  ;;  %2056 = vmatmul.bf16.vlgmr.msra.gmra.mxu0 %v3531_v52  ;;  %v1674_v52 = vld [vmem:[#allocation2 + $0x50] sm:$0xff] }
 0x33e   : > { %2076 = vmatmul.bf16.gmra.mxu2 %v3535_v53  ;;  %2061 = vmatmul.bf16.gmra.mxu0 %v3532_v35  ;;  %v5234_v35 = vld [vmem:[#allocation2 + $0x78] sm:$0xff] }
 0x34e   : > { %2081 = vmatmul.bf16.gmra.mxu2 %v3536_v6  ;;  %2066 = vmatmul.bf16.gmra.mxu0 %v3533_v0 }
 0x35e   : > { %2086 = vmatmul.bf16.gmra.mxu2 %v3537_v2 }
 0x367   : > { %v1681_v17 = vpop.xlane.xlu0 %1680 }
 0x368   : > { %v5175_v49 = vmax.f32 %v1664_v59, %v1681_v17 }
 0x369   : > { %v1685_v61 = vpop.xlane.xlu1 %1684  ;;  %v1689_v37 = vpop.xlane.xlu2 %1688 }
 0x36a   : > { %v5177_v1 = vmax.f32 %v1666_v60, %v1685_v61  ;;  %1778 = vperm.xlu1 %3844, %v5175_v49   ;;  %v5185_v8 = vmax.f32 %v5180_v3, %v1689_v37  ;;  %v1728_v48 = vsub.f32 %v1664_v59, %v5175_v49  ;;  %v1677_v37 = vld [vmem:[#allocation2 + $0x68] sm:$0xff] }
 0x36c   : > { %1788 = vperm.xlu0 %3846, %v5177_v1   ;;  %v1730_v53 = vsub.f32 %v1666_v60, %v5177_v1  ;;  %v1744_v0 = vmul.f32 1.442695, %v1728_v48 }
 0x36e   : > { %2091 = vmatmul.bf16.gmra.mxu2 %v3538_v7  ;;  %v1748_v17 = vmul.f32 1.442695, %v1730_v53  ;;  %3849 = vpow2.f32 %v1744_v0 }
 0x36f   : > { %v1683_v62 = vpop.xlane.xlu0 %1682 }
 0x370   : > { %v5187_v13 = vmax.f32 %v1665_v30, %v1683_v62  ;;  %3851 = vpow2.f32 %v1748_v17  ;;  %v1732_v62 = vsub.f32 %v5180_v3, %v5185_v8 }
 0x371   : > { %v1691_v38 = vpop.xlane.xlu2 %1690  ;;  %v1687_v9 = vpop.xlane.xlu1 %1686 }
 0x372   : > { %1798 = vperm.xlu1 %3844, %v5185_v8   ;;  %1783 = vperm.xlu2 %3845, %v5187_v13   ;;  %v5193_v14 = vmax.f32 %v1667_v5, %v1687_v9  ;;  %v5207_v23 = vmax.f32 %v1669_v26, %v1691_v38  ;;  %v1729_v61 = vsub.f32 %v1665_v30, %v5187_v13  ;;  %v1752_v30 = vmul.f32 1.442695, %v1732_v62 }
 0x374   : > { %v1731_v60 = vsub.f32 %v1667_v5, %v5193_v14  ;;  %v1746_v38 = vmul.f32 1.442695, %v1729_v61  ;;  %v1733_v5 = vsub.f32 %v1669_v26, %v5207_v23 }
 0x376   : > { %3853 = vpow2.f32 %v1746_v38  ;;  %v3554_v38 = vld [vmem:[%s4681_s5 + $0x38] sm:$0xff] }
 0x377   : > { %v1693_v31 = vpop.xlane.xlu0 %1692  ;;  %2377 = vmatpush.bf16.msra.mxu1 %v3554_v38  ;;  %3580 = vmatpush.bf16.msra.mxu3 %v3554_v38  ;;  %v3547_v38 = vld [vmem:[%s4681_s5] sm:$0xff] }
 0x378   : > { %v5196_v21 = vmax.f32 %v5191_v10, %v1693_v31  ;;  %v1750_v31 = vmul.f32 1.442695, %v1731_v60 }
 0x379   : > { %v1697_v50 = vpop.xlane.xlu2 %1696  ;;  %v1695_v4 = vpop.xlane.xlu1 %1694 }
 0x37a   : > { %1793 = vperm.xlu2 %3845, %v5193_v14   ;;  %1808 = vperm.xlu1 %3844, %v5196_v21   ;;  %v5205_v27 = vmax.f32 %v5200_v55, %v1697_v50  ;;  %v5222_v56 = vmax.f32 %v1671_v32, %v1695_v4  ;;  %v5253_v50 = vpop.eup %3849  ;;  %3855 = vpow2.f32 %v1750_v31  ;;  %v1734_v3 = vsub.f32 %v5191_v10, %v5196_v21 }
 0x37b   : > { %3857 = vpow2.f32 %v1752_v30 }
 0x37c   : > { %v1735_v4 = vsub.f32 %v1671_v32, %v5222_v56  ;;  %v1736_v53 = vsub.f32 %v5200_v55, %v5205_v27 }
 0x37e   : > { %v1758_v48 = vmul.f32 1.442695, %v1735_v4  ;;  %v1760_v0 = vmul.f32 1.442695, %v1736_v53 }
 0x37f   : > { %v1699_v40 = vpop.xlane.xlu0 %1698 }
 0x380   : > { %v5210_v45 = vmax.f32 %v5202_v19, %v1699_v40  ;;  %v5255_v40 = vpop.eup %3851 }
 0x381   : > { %v1703_v12 = vpop.xlane.xlu2 %1702  ;;  %v1701_v46 = vpop.xlane.xlu1 %1700 }
 0x382   : > { %1803 = vperm.xlu2 %3845, %v5207_v23   ;;  %1818 = vperm.xlu1 %3844, %v5205_v27   ;;  %v5220_v15 = vmax.f32 %v5215_v20, %v1703_v12  ;;  %v5239_v6 = vmax.f32 %v1674_v52, %v1701_v46  ;;  %v1754_v12 = vmul.f32 1.442695, %v1733_v5  ;;  %v5264_v46 = vpop.eup %3853  ;;  %v1737_v10 = vsub.f32 %v5202_v19, %v5210_v45 }
 0x383   : > { %1823 = vperm.xlu0 %3846, %v5210_v45  }
 0x384   : > { %3859 = vpow2.f32 %v1754_v12  ;;  %v1738_v32 = vsub.f32 %v1674_v52, %v5239_v6 }
 0x386   : > { %v1764_v61 = vmul.f32 1.442695, %v1738_v32 }
 0x387   : > { %v1705_v36 = vpop.xlane.xlu0 %1704 }
 0x388   : > { %v5225_v41 = vmax.f32 %v5217_v57, %v1705_v36  ;;  %v1756_v36 = vmul.f32 1.442695, %v1734_v3 }
 0x389   : > { %v1709_v51 = vpop.xlane.xlu2 %1708  ;;  %v1707_v7 = vpop.xlane.xlu1 %1706 }
 0x38a   : > { %1813 = vperm.xlu2 %3845, %v5222_v56   ;;  %1833 = vperm.xlu1 %3844, %v5220_v15   ;;  %v5237_v58 = vmax.f32 %v5231_v11, %v1709_v51  ;;  %v5251_v9 = vmax.f32 %v1677_v37, %v1707_v7  ;;  %v5266_v51 = vpop.eup %3855  ;;  %3861 = vpow2.f32 %v1756_v36  ;;  %v1739_v7 = vsub.f32 %v5215_v20, %v5220_v15  ;;  %v3552_v36 = vld [vmem:[%s4681_s5 + $0x28] sm:$0xff] }
 0x38b   : > { %1838 = vperm.xlu0 %3846, %v5225_v41   ;;  %v5268_v26 = vpop.eup %3857  ;;  %3863 = vpow2.f32 %v1758_v48  ;;  %v1740_v19 = vsub.f32 %v5217_v57, %v5225_v41 }
 0x38c   : > { %5963 = vst [vmem:[#allocation50_spill] sm:$0xff] %v5237_v58  ;;  %v5278_v17 = vpop.eup %3859  ;;  %3865 = vpow2.f32 %v1760_v0  ;;  %v1741_v52 = vsub.f32 %v1677_v37, %v5251_v9  ;;  %v1766_v62 = vmul.f32 1.442695, %v1739_v7  ;;  %v1742_v57 = vsub.f32 %v5231_v11, %v5237_v58  ;;  %v3553_v37 = vld [vmem:[%s4681_s5 + $0x30] sm:$0xff]  ;;  %v3550_v0 = vld [vmem:[%s4681_s5 + $0x18] sm:$0xff] }
 0x38d   : > { %v1768_v31 = vmul.f32 1.442695, %v1740_v19  ;;  %2378 = vmatpush.bf16.msra.mxu1 %v3553_v37  ;;  %3581 = vmatpush.bf16.msra.mxu3 %v3553_v37  ;;  %v3549_v19 = vld [vmem:[%s4681_s5 + $0x10] sm:$0xff] }
 0x38e   : > { %v1770_v20 = vmul.f32 1.442695, %v1741_v52  ;;  %v1772_v12 = vmul.f32 1.442695, %v1742_v57 }
 0x38f   : > { %v1711_v2 = vpop.xlane.xlu0 %1710 }
 0x390   : > { %v5242_v59 = vmax.f32 %v5234_v35, %v1711_v2  ;;  %v1762_v2 = vmul.f32 1.442695, %v1737_v10  ;;  %v5280_v55 = vpop.eup %3861 }
 0x391   : > { %v5282_v60 = vpop.eup %3863  ;;  %2379 = vmatpush.bf16.msra.mxu1 %v3552_v36  ;;  %3582 = vmatpush.bf16.msra.mxu3 %v3552_v36 }
 0x392   : > { %5964 = vst [vmem:[#allocation51_spill] sm:$0xff] %v5242_v59  ;;  %1828 = vperm.xlu2 %3845, %v5239_v6   ;;  %1848 = vperm.xlu1 %3844, %v5237_v58   ;;  %3867 = vpow2.f32 %v1762_v2  ;;  %v5293_v30 = vpop.eup %3865  ;;  %v1743_v4 = vsub.f32 %v5234_v35, %v5242_v59  ;;  %v3551_v35 = vld [vmem:[%s4681_s5 + $0x20] sm:$0xff] }
 0x393   : > { %1853 = vperm.xlu0 %3846, %v5242_v59   ;;  %3869 = vpow2.f32 %v1764_v61 }
 0x394   : > { %3871 = vpow2.f32 %v1766_v62  ;;  %v1774_v48 = vmul.f32 1.442695, %v1743_v4  ;;  %v3548_v62 = vld [vmem:[%s4681_s5 + $0x8] sm:$0xff] }
 0x395   : > { %3873 = vpow2.f32 %v1768_v31  ;;  %2380 = vmatpush.bf16.msra.mxu1 %v3551_v35  ;;  %3583 = vmatpush.bf16.msra.mxu3 %v3551_v35 }
 0x396   : > { %3875 = vpow2.f32 %v1770_v20 }
 0x397   : > { %3877 = vpow2.f32 %v1772_v12 }
 0x398   : > { %v5295_v5 = vpop.eup %3867  ;;  %3879 = vpow2.f32 %v1774_v48 }
 0x399   : > { %5965 = vst [vmem:[#allocation52_spill] sm:$0xff] %v5295_v5  ;;  %v5297_v3 = vpop.eup %3869  ;;  %2381 = vmatpush.bf16.msra.mxu1 %v3550_v0  ;;  %3584 = vmatpush.bf16.msra.mxu3 %v3550_v0 }
 0x39a   : > { %1843 = vperm.xlu2 %3845, %v5251_v9   ;;  %2211 = vperm.xlu1 %3844, %v5253_v50   ;;  %v5310_v53 = vpop.eup %3871 }
 0x39b   : > { %2221 = vperm.xlu0 %3846, %v5255_v40   ;;  %5966 = vst [vmem:[#allocation53_spill] sm:$0xff] %v5310_v53  ;;  %v5312_v10 = vpop.eup %3873 }
 0x39c   : > { %5967 = vst [vmem:[#allocation54_spill] sm:$0xff] %v5312_v10  ;;  %v5314_v32 = vpop.eup %3875 }
 0x39d   : > { %5968 = vst [vmem:[#allocation55_spill] sm:$0xff] %v5314_v32  ;;  %v5321_v2 = vpop.eup %3877  ;;  %2382 = vmatpush.bf16.msra.mxu1 %v3549_v19  ;;  %3585 = vmatpush.bf16.msra.mxu3 %v3549_v19 }
 0x39e   : > { %5969 = vst [vmem:[#allocation56_spill] sm:$0xff] %v5321_v2  ;;  %v5323_v61 = vpop.eup %3879 }
 0x39f   : > { %5970 = vst [vmem:[#allocation57_spill] sm:$0xff] %v5323_v61 }
 0x3a1   : > { %2383 = vmatpush.bf16.msra.mxu1 %v3548_v62  ;;  %3586 = vmatpush.bf16.msra.mxu3 %v3548_v62 }
 0x3a2   : > { %2216 = vperm.xlu2 %3845, %v5264_v46   ;;  %2226 = vperm.xlu1 %3844, %v5266_v51  }
 0x3a3   : > { %2231 = vperm.xlu0 %3846, %v5268_v26  }
 0x3a5   : > { %2384 = vmatpush.bf16.msra.mxu1 %v3547_v38  ;;  %3587 = vmatpush.bf16.msra.mxu3 %v3547_v38 }
 0x3aa   : > { %2236 = vperm.xlu2 %3845, %v5278_v17   ;;  %2241 = vperm.xlu1 %3844, %v5280_v55  }
 0x3ab   : > { %2246 = vperm.xlu0 %3846, %v5282_v60   ;;  %v2057_v52 = vpop.f32.mrf.mxu0 }
 0x3b1   : > { %v5308_v11 = vpop.f32.mrf.mxu2 }
 0x3b2   : > { %2251 = vperm.xlu2 %3845, %v5293_v30   ;;  %2256 = vperm.xlu1 %3844, %v5295_v5  }
 0x3b3   : > { %2261 = vperm.xlu0 %3846, %v5297_v3   ;;  %v2059_v57 = vpop.f32.mrf.mxu0 }
 0x3b9   : > { %v5325_v7 = vpop.f32.mrf.mxu2 }
 0x3ba   : > { %2266 = vperm.xlu2 %3845, %v5310_v53   ;;  %2271 = vperm.xlu1 %3844, %v5312_v10  }
 0x3bb   : > { %2276 = vperm.xlu0 %3846, %v5314_v32   ;;  %v2062_v48 = vpop.f32.mrf.mxu0 }
 0x3c1   : > { %v5332_v31 = vpop.f32.mrf.mxu2 }
 0x3c2   : > { %2281 = vperm.xlu2 %3845, %v5321_v2   ;;  %2286 = vperm.xlu1 %3844, %v5323_v61  }
 0x3c3   : > { %v2064_v59 = vpop.f32.mrf.mxu0 }
 0x3c9   : > { %v5335_v12 = vpop.f32.mrf.mxu2 }
 0x3cc   : > { %v1784_v20 = vpop.permute.xlu2 %1783 }
 0x3cd   : > { %v1857_v4 = vsub.f32 %v5091_v22, %v1784_v20 }
 0x3cf   : > { %v1873_v36 = vadd.f32 -2.4260151, %v1857_v4 }
 0x3d1   : > { %v1890_v19 = vmul.f32 1.442695, %v1873_v36  ;;  %v5340_v38 = vpop.f32.mrf.mxu2 }
 0x3d3   : > { %3881 = vpow2.f32 %v1890_v19 }
 0x3d4   : > { %v1794_v37 = vpop.permute.xlu2 %1793 }
 0x3d5   : > { %v1859_v61 = vsub.f32 %v5098_v39, %v1794_v37 }
 0x3d7   : > { %v1875_v32 = vadd.f32 -2.4260151, %v1859_v61 }
 0x3d9   : > { %v1894_v39 = vmul.f32 1.442695, %v1875_v32  ;;  %v5345_v61 = vpop.f32.mrf.mxu2 }
 0x3dc   : > { %v1779_v35 = vpop.permute.xlu1 %1778  ;;  %v1804_v0 = vpop.permute.xlu2 %1803 }
 0x3dd   : > { %v1856_v62 = vsub.f32 %v5071_v16, %v1779_v35  ;;  %v1861_v58 = vsub.f32 %v5095_v54, %v1804_v0 }
 0x3de   : > { %v1789_v2 = vpop.permute.xlu0 %1788 }
 0x3df   : > { %v1872_v10 = vadd.f32 -2.4260151, %v1856_v62  ;;  %v1858_v53 = vsub.f32 %v5080_v25, %v1789_v2  ;;  %v3882_v25 = vpop.eup %3881  ;;  %v1877_v35 = vadd.f32 -2.4260151, %v1861_v58 }
 0x3e1   : > { %v1888_v22 = vmul.f32 1.442695, %v1872_v10  ;;  %v1874_v20 = vadd.f32 -2.4260151, %v1858_v53  ;;  %v1898_v0 = vmul.f32 1.442695, %v1877_v35  ;;  %v5351_v35 = vpop.f32.mrf.mxu2 }
 0x3e3   : > { %3883 = vpow2.f32 %v1888_v22  ;;  %v1892_v4 = vmul.f32 1.442695, %v1874_v20  ;;  %v2098_v22 = vmul.f32 %v3882_v25, %v2059_v57 }
 0x3e4   : > { %v1799_v36 = vpop.permute.xlu1 %1798  ;;  %v1814_v5 = vpop.permute.xlu2 %1813 }
 0x3e5   : > { %3885 = vpow2.f32 %v1892_v4  ;;  %v1860_v16 = vsub.f32 %v5083_v29, %v1799_v36  ;;  %v1863_v37 = vsub.f32 %v5117_v43, %v1814_v5  ;;  %v2067_v5 = vpop.f32.mrf.mxu0 }
 0x3e6   : > { %3887 = vpow2.f32 %v1894_v39 }
 0x3e7   : > { %v1876_v2 = vadd.f32 -2.4260151, %v1860_v16  ;;  %v1879_v53 = vadd.f32 -2.4260151, %v1863_v37 }
 0x3e9   : > { %v3884_v19 = vpop.eup %3883  ;;  %v1896_v10 = vmul.f32 1.442695, %v1876_v2  ;;  %v1902_v4 = vmul.f32 1.442695, %v1879_v53 }
 0x3ea   : > { %v2097_v62 = vmul.f32 %v3884_v19, %v2057_v52 }
 0x3eb   : > { %v3886_v54 = vpop.eup %3885  ;;  %3889 = vpow2.f32 %v1896_v10 }
 0x3ec   : > { %v1829_v32 = vpop.permute.xlu2 %1828  ;;  %2145 = vadd.xlane.f32.xlu2 %v2097_v62  ;;  %v1809_v20 = vpop.permute.xlu1 %1808  ;;  %2147 = vadd.xlane.f32.xlu1 %v2098_v22  ;;  %v2305_v29 = vpack.c.bf16 %v2098_v22, %v2097_v62  ;;  %v2099_v43 = vmul.f32 %v3886_v54, %v2062_v48  ;;  %3891 = vpow2.f32 %v1898_v0 }
 0x3ed   : > { %v1866_v58 = vsub.f32 %v5136_v24, %v1829_v32  ;;  %v1862_v36 = vsub.f32 %v5110_v34, %v1809_v20  ;;  %v3888_v39 = vpop.eup %3887  ;;  %3893 = vpow2.f32 %v1902_v4  ;;  %v2069_v54 = vpop.f32.mrf.mxu0 }
 0x3ee   : > { %2385 = vmatmul.bf16.vlgmr.msra.gmra.mxu1 %v2305_v29  ;;  %2149 = vadd.xlane.f32.xlu0 %v2099_v43  ;;  %v2100_v25 = vmul.f32 %v3888_v39, %v2064_v59 }
 0x3ef   : > { %v1878_v52 = vadd.f32 -2.4260151, %v1862_v36  ;;  %v1882_v16 = vadd.f32 -2.4260151, %v1866_v58 }
 0x3f1   : > { %v3890_v57 = vpop.eup %3889  ;;  %v1900_v37 = vmul.f32 1.442695, %v1878_v52  ;;  %v1908_v34 = vmul.f32 1.442695, %v1882_v16  ;;  %v2089_v16 = vpop.f32.mrf.mxu2 }
 0x3f2   : > { %v5349_v2 = vmul.f32 %v3890_v57, %v2067_v5  ;;  %v3892_v62 = vpop.eup %3891 }
 0x3f3   : > { %3895 = vpow2.f32 %v1900_v37  ;;  %v3894_v59 = vpop.eup %3893  ;;  %v2102_v4 = vmul.f32 %v3892_v62, %v2069_v54 }
 0x3f4   : > { %v1844_v48 = vpop.permute.xlu2 %1843  ;;  %2151 = vadd.xlane.f32.xlu2 %v2100_v25  ;;  %v1819_v24 = vpop.permute.xlu1 %1818  ;;  %2153 = vadd.xlane.f32.xlu1 %v5349_v2  ;;  %3897 = vpow2.f32 %v1908_v34  ;;  %v5358_v36 = vmul.f32 %v3894_v59, %v5325_v7 }
 0x3f5   : > { %v1869_v19 = vsub.f32 %v5155_v42, %v1844_v48  ;;  %v1864_v10 = vsub.f32 %v5114_v33, %v1819_v24  ;;  %v1824_v53 = vpop.permute.xlu0 %1823 }
 0x3f6   : > { %v1865_v22 = vsub.f32 %v5129_v28, %v1824_v53  ;;  %v2306_v28 = vpack.c.bf16 %v2100_v25, %v2099_v43 }
 0x3f7   : > { %v1880_v0 = vadd.f32 -2.4260151, %v1864_v10  ;;  %v1885_v20 = vadd.f32 -2.4260151, %v1869_v19 }
 0x3f8   : > { %v1881_v32 = vadd.f32 -2.4260151, %v1865_v22 }
 0x3f9   : > { %v1904_v29 = vmul.f32 1.442695, %v1880_v0  ;;  %v3896_v5 = vpop.eup %3895  ;;  %v1914_v39 = vmul.f32 1.442695, %v1885_v20  ;;  %v2092_v0 = vpop.f32.mrf.mxu2 }
 0x3fa   : > { %v1906_v58 = vmul.f32 1.442695, %v1881_v32  ;;  %v5361_v42 = vmul.f32 %v3896_v5, %v5308_v11  ;;  %v3898_v37 = vpop.eup %3897 }
 0x3fb   : > { %3899 = vpow2.f32 %v1904_v29  ;;  %v2107_v43 = vmul.f32 %v3898_v37, %v5340_v38 }
 0x3fc   : > { %2155 = vadd.xlane.f32.xlu2 %v2102_v4  ;;  %v1834_v33 = vpop.permute.xlu1 %1833  ;;  %2159 = vadd.xlane.f32.xlu1 %v5358_v36  ;;  %3901 = vpow2.f32 %v1906_v58 }
 0x3fd   : > { %v1867_v52 = vsub.f32 %v5133_v63, %v1834_v33  ;;  %2157 = vadd.xlane.f32.xlu0 %v5361_v42  ;;  %v1839_v57 = vpop.permute.xlu0 %1838  ;;  %3903 = vpow2.f32 %v1914_v39 }
 0x3fe   : > { %v1868_v7 = vsub.f32 %v5148_v44, %v1839_v57  ;;  %2390 = vmatmul.bf16.gmra.mxu1 %v2306_v28 }
 0x3ff   : > { %v1883_v11 = vadd.f32 -2.4260151, %v1867_v52 }
 0x400   : > { %v1884_v48 = vadd.f32 -2.4260151, %v1868_v7  ;;  %v5379_v7 = vpop.permute.xlu2 %2216 }
 0x401   : > { %v1910_v24 = vmul.f32 1.442695, %v1883_v11  ;;  %v3900_v34 = vpop.eup %3899  ;;  %v2094_v39 = vpop.f32.mrf.mxu2 }
 0x402   : > { %v1912_v19 = vmul.f32 1.442695, %v1884_v48  ;;  %v3902_v25 = vpop.eup %3901  ;;  %v2105_v63 = vmul.f32 %v3900_v34, %v5332_v31 }
 0x403   : > { %3905 = vpow2.f32 %v1910_v24  ;;  %v2106_v53 = vmul.f32 %v3902_v25, %v5335_v12  ;;  %v3904_v59 = vpop.eup %3903 }
 0x404   : > { %3907 = vpow2.f32 %v1912_v19  ;;  %v1849_v10 = vpop.permute.xlu1 %1848  ;;  %2165 = vadd.xlane.f32.xlu1 %v2107_v43  ;;  %2161 = vadd.xlane.f32.xlu2 %v2105_v63  ;;  %v2110_v31 = vmul.f32 %v3904_v59, %v2089_v16 }
 0x405   : > { %v1870_v44 = vsub.f32 %v5152_v18, %v1849_v10  ;;  %v1854_v62 = vpop.permute.xlu0 %1853  ;;  %2163 = vadd.xlane.f32.xlu0 %v2106_v53  ;;  %v2307_v18 = vpack.c.bf16 %v2102_v4, %v5349_v2  ;;  %v2309_v4 = vpack.c.bf16 %v2106_v53, %v2105_v63  ;;  %v2443_v10 = vld [vmem:[%s4712_s6 + $0x8] sm:$0xff] }
 0x406   : > { %v1871_v22 = vsub.f32 %v5163_v47, %v1854_v62  ;;  %v2444_v62 = vld [vmem:[%s4712_s6 + $0x10] sm:$0xff] }
 0x407   : > { %v1886_v54 = vadd.f32 -2.4260151, %v1870_v44  ;;  %v2476_v59 = vadd.f32 %v2444_v62, %v5177_v1 }
 0x408   : > { %v1887_v38 = vadd.f32 -2.4260151, %v1871_v22  ;;  %v5385_v48 = vpop.permute.xlu2 %2236  ;;  %v2475_v22 = vadd.f32 %v2443_v10, %v5187_v13 }
 0x409   : > { %v3906_v32 = vpop.eup %3905  ;;  %v1916_v20 = vmul.f32 1.442695, %v1886_v54 }
 0x40a   : > { %v3908_v29 = vpop.eup %3907  ;;  %v1918_v5 = vmul.f32 1.442695, %v1887_v38  ;;  %v2108_v58 = vmul.f32 %v3906_v32, %v5345_v61  ;;  %v2308_v61 = vpack.c.bf16 %v5358_v36, %v5361_v42  ;;  %v2491_v38 = vsub.f32 0.0, %v2475_v22  ;;  %v2445_v32 = vld [vmem:[%s4712_s6 + $0x18] sm:$0xff] }
 0x40b   : > { %3909 = vpow2.f32 %v1916_v20  ;;  %v2109_v12 = vmul.f32 %v3908_v29, %v5351_v35  ;;  %v2492_v20 = vsub.f32 0.0, %v2476_v59  ;;  %v2477_v13 = vadd.f32 %v2445_v32, %v5193_v14 }
 0x40c   : > { %3911 = vpow2.f32 %v1918_v5  ;;  %2171 = vadd.xlane.f32.xlu1 %v2110_v31  ;;  %v2310_v33 = vpack.c.bf16 %v2108_v58, %v2107_v43  ;;  %2167 = vadd.xlane.f32.xlu2 %v2108_v58  ;;  %v5377_v2 = vpop.permute.xlu1 %2211  ;;  %v2442_v43 = vld [vmem:[%s4712_s6] sm:$0xff]  ;;  %v2508_v58 = vmul.f32 1.442695, %v2491_v38 }
 0x40d   : > { %2169 = vadd.xlane.f32.xlu0 %v2109_v12  ;;  %v2311_v35 = vpack.c.bf16 %v2110_v31, %v2109_v12  ;;  %v5383_v11 = vpop.permute.xlu0 %2221  ;;  %v2474_v44 = vadd.f32 %v2442_v43, %v5175_v49  ;;  %v2510_v1 = vmul.f32 1.442695, %v2492_v20 }
 0x40e   : > { %2395 = vmatmul.bf16.gmra.mxu1 %v2307_v18  ;;  %2410 = vmatmul.bf16.vlgmr.msra.gmra.mxu3 %v2310_v33  ;;  %v2113_v18 = vld [vmem:[#allocation3] sm:$0xff]  ;;  %v2114_v33 = vld [vmem:[#allocation3 + $0x8] sm:$0xff] }
 0x40f   : > { %v2490_v54 = vsub.f32 0.0, %v2474_v44 }
 0x410   : > { %v5391_v24 = vpop.permute.xlu2 %2251 }
 0x411   : > { %v3910_v47 = vpop.eup %3909  ;;  %v2506_v5 = vmul.f32 1.442695, %v2490_v54 }
 0x412   : > { %v3912_v28 = vpop.eup %3911  ;;  %v2111_v52 = vmul.f32 %v3910_v47, %v2092_v0  ;;  %v2446_v0 = vld [vmem:[%s4712_s6 + $0x20] sm:$0xff] }
 0x413   : > { %v2112_v57 = vmul.f32 %v3912_v28, %v2094_v39  ;;  %v2478_v49 = vadd.f32 %v2446_v0, %v5185_v8  ;;  %3913 = vpow2.f32 %v2506_v5  ;;  %v2447_v28 = vld [vmem:[%s4712_s6 + $0x28] sm:$0xff]  ;;  %v2448_v39 = vld [vmem:[%s4712_s6 + $0x30] sm:$0xff]  ;;  %v2130_v8 = vmul.f32 %v5264_v46, %v2114_v33  ;;  %v2450_v33 = vld [vmem:[%s4712_s6 + $0x40] sm:$0xff] }
 0x414   : > { %2173 = vadd.xlane.f32.xlu2 %v2111_v52  ;;  %v5381_v37 = vpop.permute.xlu1 %2226  ;;  %3915 = vpow2.f32 %v2508_v58  ;;  %v2479_v14 = vadd.f32 %v2447_v28, %v5207_v23  ;;  %v2117_v23 = vld [vmem:[#allocation3 + $0x20] sm:$0xff] }
 0x415   : > { %2175 = vadd.xlane.f32.xlu0 %v2112_v57  ;;  %v2312_v16 = vpack.c.bf16 %v2112_v57, %v2111_v52  ;;  %v5389_v42 = vpop.permute.xlu0 %2231  ;;  %v2494_v47 = vsub.f32 0.0, %v2478_v49  ;;  %v2493_v52 = vsub.f32 0.0, %v2477_v13  ;;  %v2115_v57 = vld [vmem:[#allocation3 + $0x10] sm:$0xff]  ;;  %3917 = vpow2.f32 %v2510_v1  ;;  %v2116_v49 = vld [vmem:[#allocation3 + $0x18] sm:$0xff] }
 0x416   : > { %v2131_v22 = vmul.f32 %v5255_v40, %v2115_v57  ;;  %v2132_v57 = vmul.f32 %v5266_v51, %v2116_v49 }
 0x417   : > { %v2514_v10 = vmul.f32 1.442695, %v2494_v47  ;;  %v2512_v59 = vmul.f32 1.442695, %v2493_v52  ;;  %v2452_v47 = vld [vmem:[%s4712_s6 + $0x50] sm:$0xff] }
 0x418   : > { %v5398_v25 = vpop.permute.xlu2 %2266 }
 0x419   : > { %v3914_v38 = vpop.eup %3913  ;;  %3919 = vpow2.f32 %v2514_v10 }
 0x41a   : > { %v3916_v20 = vpop.eup %3915  ;;  %3921 = vpow2.f32 %v2512_v59 }
 0x41b   : > { %v3918_v1 = vpop.eup %3917 }
 0x41c   : > { %v5387_v36 = vpop.permute.xlu1 %2241 }
 0x41d   : > { %v5395_v19 = vpop.permute.xlu0 %2246 }
 0x41e   : > { %2400 = vmatmul.bf16.gmra.mxu1 %v2308_v61  ;;  %2415 = vmatmul.bf16.gmra.mxu3 %v2311_v35  ;;  %v2449_v61 = vld [vmem:[%s4712_s6 + $0x38] sm:$0xff]  ;;  %v2129_v35 = vmul.f32 %v5253_v50, %v2113_v18  ;;  %v2133_v18 = vmul.f32 %v5268_v26, %v2117_v23  ;;  %v2484_v26 = vadd.f32 %v2452_v47, %v5239_v6 }
 0x41f   : > { %v2481_v54 = vadd.f32 %v2449_v61, %v5222_v56 }
 0x420   : > { %v5411_v29 = vpop.permute.xlu2 %2281  ;;  %v2500_v6 = vsub.f32 0.0, %v2484_v26 }
 0x421   : > { %v2497_v56 = vsub.f32 0.0, %v2481_v54 }
 0x424   : > { %v5393_v34 = vpop.permute.xlu1 %2256 }
 0x425   : > { %v5403_v53 = vpop.permute.xlu0 %2261 }
 0x42c   : > { %v5400_v63 = vpop.permute.xlu1 %2271 }
 0x42d   : > { %v5417_v12 = vpop.permute.xlu0 %2276 }
 0x42e   : > { %2405 = vmatmul.bf16.gmra.mxu1 %v2309_v4  ;;  %2420 = vmatmul.bf16.gmra.mxu3 %v2312_v16  ;;  %v2480_v4 = vadd.f32 %v2448_v39, %v5196_v21  ;;  %v2495_v21 = vsub.f32 0.0, %v2479_v14 }
 0x430   : > { %v2496_v5 = vsub.f32 0.0, %v2480_v4  ;;  %v2516_v61 = vmul.f32 1.442695, %v2495_v21  ;;  %v2451_v4 = vld [vmem:[%s4712_s6 + $0x48] sm:$0xff] }
 0x434   : > { %v5413_v31 = vpop.permute.xlu1 %2286 }
 0x45f   : > { %v2146_v16 = vpop.xlane.xlu2 %2145  ;;  %v2148_v43 = vpop.xlane.xlu1 %2147 }
 0x460   : > { %v2177_v44 = vadd.f32 %v2146_v16, %v2129_v35  ;;  %v2178_v62 = vadd.f32 %v2148_v43, %v2130_v8  ;;  %v2518_v35 = vmul.f32 1.442695, %v2496_v5  ;;  %v2455_v5 = vld [vmem:[%s4712_s6 + $0x68] sm:$0xff] }
 0x461   : > { %v2150_v0 = vpop.xlane.xlu0 %2149 }
 0x462   : > { %v2458_v50 = vand.u32 2147483647, %v2177_v44  ;;  %v2459_v46 = vand.u32 2147483647, %v2178_v62  ;;  %v2179_v32 = vadd.f32 %v2150_v0, %v2131_v22  ;;  %v2482_v44 = vadd.f32 %v2450_v33, %v5205_v27  ;;  %v3920_v22 = vpop.eup %3919  ;;  %v2119_v27 = vld [vmem:[#allocation3 + $0x30] sm:$0xff] }
 0x463   : > { %v2520_v62 = vmul.f32 1.442695, %v2497_v56  ;;  %v3922_v54 = vpop.eup %3921  ;;  %v2483_v0 = vadd.f32 %v2451_v4, %v5210_v45  ;;  %v2135_v33 = vmul.f32 %v5280_v55, %v2119_v27 }
 0x464   : > { %v2538_v58 = vmax.f32 %v2458_v50, %v3914_v38  ;;  %v2539_v13 = vmax.f32 %v2459_v46, %v3916_v20  ;;  %v2460_v40 = vand.u32 2147483647, %v2179_v32  ;;  %v2118_v38 = vld [vmem:[#allocation3 + $0x28] sm:$0xff]  ;;  %v2120_v50 = vld [vmem:[#allocation3 + $0x38] sm:$0xff]  ;;  %v2498_v23 = vsub.f32 0.0, %v2482_v44 }
 0x465   : > { %v2453_v20 = vld [vmem:[%s4712_s6 + $0x58] sm:$0xff] }
 0x466   : > { %v2554_v28 = vadd.f32 1e-06, %v2538_v58  ;;  %v2555_v39 = vadd.f32 1e-06, %v2539_v13  ;;  %v2540_v52 = vmax.f32 %v2460_v40, %v3918_v1  ;;  %v2134_v13 = vmul.f32 %v5278_v17, %v2118_v38 }
 0x467   : > { %v2152_v8 = vpop.xlane.xlu2 %2151  ;;  %v2154_v14 = vpop.xlane.xlu1 %2153  ;;  %v2136_v40 = vmul.f32 %v5282_v60, %v2120_v50  ;;  %v2499_v1 = vsub.f32 0.0, %v2483_v0  ;;  %v2526_v17 = vmul.f32 1.442695, %v2500_v6  ;;  %v2487_v60 = vadd.f32 %v2455_v5, %v5251_v9  ;;  %v2122_v0 = vld [vmem:[#allocation3 + $0x48] sm:$0xff] }
 0x468   : > { %3923 = vrcp.f32 %v2554_v28  ;;  %v2556_v16 = vadd.f32 1e-06, %v2540_v52  ;;  %v2180_v43 = vadd.f32 %v2152_v8, %v2132_v57  ;;  %v2181_v10 = vadd.f32 %v2154_v14, %v2133_v18 }
 0x469   : > { %3925 = vrcp.f32 %v2555_v39  ;;  %v2485_v28 = vadd.f32 %v2453_v20, %v5220_v15  ;;  %v2454_v39 = vld [vmem:[%s4712_s6 + $0x60] sm:$0xff]  ;;  %v2522_v4 = vmul.f32 1.442695, %v2498_v23  ;;  %v2503_v9 = vsub.f32 0.0, %v2487_v60  ;;  %v2456_v23 = vld [vmem:[%s4712_s6 + $0x70] sm:$0xff] }
 0x46a   : > { %3927 = vrcp.f32 %v2556_v16  ;;  %v2461_v59 = vand.u32 2147483647, %v2180_v43  ;;  %v2462_v51 = vand.u32 2147483647, %v2181_v10  ;;  %v2524_v10 = vmul.f32 1.442695, %v2499_v1 }
 0x46b   : > { %3929 = vpow2.f32 %v2516_v61  ;;  %v2486_v15 = vadd.f32 %v2454_v39, %v5225_v41  ;;  %v2501_v26 = vsub.f32 0.0, %v2485_v28  ;;  %v2532_v1 = vmul.f32 1.442695, %v2503_v9  ;;  %v5975_v9 = vld [vmem:[#allocation53_spill] sm:$0xff] }
 0x46c   : > { %3931 = vpow2.f32 %v2518_v35  ;;  %v2541_v46 = vmax.f32 %v2461_v59, %v3922_v54  ;;  %v2542_v32 = vmax.f32 %v2462_v51, %v3920_v22  ;;  %v2121_v51 = vld [vmem:[#allocation3 + $0x40] sm:$0xff] }
 0x46d   : > { %3933 = vpow2.f32 %v2520_v62  ;;  %v2123_v62 = vld [vmem:[#allocation3 + $0x50] sm:$0xff]  ;;  %v2502_v41 = vsub.f32 0.0, %v2486_v15  ;;  %v2137_v6 = vmul.f32 %v5293_v30, %v2121_v51  ;;  %v2528_v5 = vmul.f32 1.442695, %v2501_v26 }
 0x46e   : > { %v3924_v21 = vpop.eup %3923  ;;  %v2557_v49 = vadd.f32 1e-06, %v2541_v46  ;;  %v2558_v58 = vadd.f32 1e-06, %v2542_v32  ;;  %v2139_v32 = vmul.f32 %v5297_v3, %v2123_v62  ;;  %v5974_v62 = vld [vmem:[#allocation55_spill] sm:$0xff] }
 0x46f   : > { %v3926_v45 = vpop.eup %3925  ;;  %v2156_v56 = vpop.xlane.xlu2 %2155  ;;  %2588 = vperm.xlu0 %3846, %v3924_v21   ;;  %v2530_v39 = vmul.f32 1.442695, %v2502_v41 }
 0x470   : > { %v2160_v18 = vpop.xlane.xlu1 %2159  ;;  %v3928_v47 = vpop.eup %3927  ;;  %3935 = vrcp.f32 %v2557_v49  ;;  %v2182_v52 = vadd.f32 %v2156_v56, %v2134_v13  ;;  %2593 = vperm.xlu2 %3845, %v3926_v45   ;;  %v2457_v49 = vld [vmem:[%s4712_s6 + $0x78] sm:$0xff] }
 0x471   : > { %v2184_v57 = vadd.f32 %v2160_v18, %v2136_v40  ;;  %v2158_v61 = vpop.xlane.xlu0 %2157  ;;  %v3930_v35 = vpop.eup %3929  ;;  %3937 = vrcp.f32 %v2558_v58  ;;  %2598 = vperm.xlu1 %3844, %v3928_v47   ;;  %v5971_v40 = vld [vmem:[#allocation52_spill] sm:$0xff]  ;;  %v5972_v18 = vld [vmem:[#allocation50_spill] sm:$0xff] }
 0x472   : > { %v2183_v8 = vadd.f32 %v2158_v61, %v2135_v33  ;;  %v3932_v14 = vpop.eup %3931  ;;  %v2463_v16 = vand.u32 2147483647, %v2182_v52  ;;  %3939 = vpow2.f32 %v2526_v17  ;;  %v2138_v45 = vmul.f32 %v5971_v40, %v2122_v0  ;;  %v5973_v52 = vld [vmem:[#allocation51_spill] sm:$0xff] }
 0x473   : > { %v2465_v55 = vand.u32 2147483647, %v2184_v57  ;;  %v3934_v43 = vpop.eup %3933  ;;  %3941 = vpow2.f32 %v2522_v4  ;;  %v2488_v33 = vadd.f32 %v2456_v23, %v5972_v18  ;;  %v2489_v57 = vadd.f32 %v2457_v49, %v5973_v52 }
 0x474   : > { %v2464_v44 = vand.u32 2147483647, %v2183_v8  ;;  %v2543_v22 = vmax.f32 %v2463_v16, %v3930_v35  ;;  %3943 = vpow2.f32 %v2524_v10  ;;  %v2126_v35 = vld [vmem:[#allocation3 + $0x68] sm:$0xff] }
 0x475   : > { %v2545_v59 = vmax.f32 %v2465_v55, %v3934_v43  ;;  %v2125_v55 = vld [vmem:[#allocation3 + $0x60] sm:$0xff]  ;;  %v2504_v10 = vsub.f32 0.0, %v2488_v33  ;;  %v2142_v26 = vmul.f32 %v5974_v62, %v2126_v35  ;;  %v2128_v33 = vld [vmem:[#allocation3 + $0x78] sm:$0xff] }
 0x476   : > { %v2544_v54 = vmax.f32 %v2464_v44, %v3932_v14  ;;  %v3936_v38 = vpop.eup %3935  ;;  %v2559_v50 = vadd.f32 1e-06, %v2543_v22  ;;  %v2124_v14 = vld [vmem:[#allocation3 + $0x58] sm:$0xff] }
 0x477   : > { %v2561_v46 = vadd.f32 1e-06, %v2545_v59  ;;  %v3938_v27 = vpop.eup %3937  ;;  %2603 = vperm.xlu0 %3846, %v3936_v38   ;;  %v2162_v58 = vpop.xlane.xlu2 %2161  ;;  %v2505_v59 = vsub.f32 0.0, %v2489_v57  ;;  %v5977_v57 = vld [vmem:[#allocation56_spill] sm:$0xff] }
 0x478   : > { %v2560_v20 = vadd.f32 1e-06, %v2544_v54  ;;  %v2166_v21 = vpop.xlane.xlu1 %2165  ;;  %3945 = vrcp.f32 %v2559_v50  ;;  %2608 = vperm.xlu2 %3845, %v3938_v27   ;;  %v2185_v3 = vadd.f32 %v2162_v58, %v2137_v6  ;;  %v3940_v30 = vpop.eup %3939  ;;  %v2140_v54 = vmul.f32 %v5975_v9, %v2124_v14  ;;  %v5976_v27 = vld [vmem:[#allocation54_spill] sm:$0xff] }
 0x479   : > { %v2187_v13 = vadd.f32 %v2166_v21, %v2139_v32  ;;  %3947 = vrcp.f32 %v2561_v46  ;;  %v2164_v56 = vpop.xlane.xlu0 %2163  ;;  %v3942_v17 = vpop.eup %3941  ;;  %v2141_v41 = vmul.f32 %v5976_v27, %v2125_v55  ;;  %v2534_v21 = vmul.f32 1.442695, %v2504_v10 }
 0x47a   : > { %3949 = vrcp.f32 %v2560_v20  ;;  %v2186_v28 = vadd.f32 %v2164_v56, %v2138_v45  ;;  %v2466_v61 = vand.u32 2147483647, %v2185_v3  ;;  %v3944_v4 = vpop.eup %3943  ;;  %v2127_v3 = vld [vmem:[#allocation3 + $0x70] sm:$0xff] }
 0x47b   : > { %v2468_v47 = vand.u32 2147483647, %v2187_v13  ;;  %3951 = vpow2.f32 %v2528_v5  ;;  %v2536_v13 = vmul.f32 1.442695, %v2505_v59 }
 0x47c   : > { %v2467_v8 = vand.u32 2147483647, %v2186_v28  ;;  %3953 = vpow2.f32 %v2532_v1  ;;  %v2546_v16 = vmax.f32 %v2466_v61, %v3942_v17  ;;  %v2143_v61 = vmul.f32 %v5977_v57, %v2127_v3  ;;  %v2203_v57 = vld [vmem:[#allocation4 + $0x10] sm:$0xff] }
 0x47d   : > { %v2548_v60 = vmax.f32 %v2468_v47, %v3940_v30  ;;  %3955 = vpow2.f32 %v2530_v39 }
 0x47e   : > { %v3946_v43 = vpop.eup %3945  ;;  %v2547_v44 = vmax.f32 %v2467_v8, %v3944_v4  ;;  %v2562_v51 = vadd.f32 1e-06, %v2546_v16  ;;  %v5978_v8 = vld [vmem:[#allocation57_spill] sm:$0xff] }
 0x47f   : > { %v2564_v15 = vadd.f32 1e-06, %v2548_v60  ;;  %v3948_v22 = vpop.eup %3947  ;;  %2613 = vperm.xlu1 %3844, %v3946_v43   ;;  %v2168_v46 = vpop.xlane.xlu2 %2167  ;;  %v2144_v14 = vmul.f32 %v5978_v8, %v2128_v33  ;;  %v2200_v33 = vld [vmem:[#allocation4 + $0x48] sm:$0xff] }
 0x480   : > { %v2172_v0 = vpop.xlane.xlu1 %2171  ;;  %v3950_v38 = vpop.eup %3949  ;;  %v2563_v50 = vadd.f32 1e-06, %v2547_v44  ;;  %2623 = vperm.xlu2 %3845, %v3948_v22   ;;  %v2188_v23 = vadd.f32 %v2168_v46, %v2140_v54 }
 0x481   : > { %3957 = vrcp.f32 %v2564_v15  ;;  %v2190_v32 = vadd.f32 %v2172_v0, %v2142_v26  ;;  %2618 = vperm.xlu0 %3846, %v3950_v38   ;;  %v2170_v20 = vpop.xlane.xlu0 %2169  ;;  %v3952_v6 = vpop.eup %3951 }
 0x482   : > { %3959 = vrcp.f32 %v2562_v51  ;;  %v2189_v49 = vadd.f32 %v2170_v20, %v2141_v41  ;;  %v3954_v58 = vpop.eup %3953  ;;  %v2469_v40 = vand.u32 2147483647, %v2188_v23  ;;  %v2386_v54 = vpop.f32.mrf.mxu1  ;;  %v2194_v20 = vld [vmem:[#allocation4] sm:$0xff] }
 0x483   : > { %3961 = vrcp.f32 %v2563_v50  ;;  %v2471_v5 = vand.u32 2147483647, %v2190_v32  ;;  %v3956_v56 = vpop.eup %3955 }
 0x484   : > { %v2470_v1 = vand.u32 2147483647, %v2189_v49  ;;  %v2549_v18 = vmax.f32 %v2469_v40, %v3952_v6  ;;  %3963 = vpow2.f32 %v2534_v21  ;;  %v2290_v6 = vmul.f32 %v5379_v7, %v2194_v20 }
 0x485   : > { %v2551_v45 = vmax.f32 %v2471_v5, %v3954_v58  ;;  %3965 = vpow2.f32 %v2536_v13  ;;  %v2197_v13 = vld [vmem:[#allocation4 + $0x50] sm:$0xff] }
 0x486   : > { %v2550_v30 = vmax.f32 %v2470_v1, %v3956_v56  ;;  %v2565_v52 = vadd.f32 1e-06, %v2549_v18 }
 0x487   : > { %v3958_v47 = vpop.eup %3957  ;;  %v2567_v28 = vadd.f32 1e-06, %v2551_v45  ;;  %v2174_v60 = vpop.xlane.xlu2 %2173  ;;  %v2293_v45 = vmul.f32 %v5389_v42, %v2197_v13  ;;  %v2195_v42 = vld [vmem:[#allocation4 + $0x58] sm:$0xff] }
 0x488   : > { %v3960_v39 = vpop.eup %3959  ;;  %v2566_v17 = vadd.f32 1e-06, %v2550_v30  ;;  %2638 = vperm.xlu2 %3845, %v3958_v47   ;;  %v2191_v4 = vadd.f32 %v2174_v60, %v2143_v61  ;;  %v2296_v47 = vmul.f32 %v5395_v19, %v2200_v33  ;;  %v2291_v60 = vmul.f32 %v5383_v11, %v2195_v42 }
 0x489   : > { %v3962_v35 = vpop.eup %3961  ;;  %3967 = vrcp.f32 %v2567_v28  ;;  %2628 = vperm.xlu1 %3844, %v3960_v39   ;;  %v2176_v16 = vpop.xlane.xlu0 %2175  ;;  %v2193_v39 = vld [vmem:[#allocation4 + $0x30] sm:$0xff] }
 0x48a   : > { %3969 = vrcp.f32 %v2565_v52  ;;  %2633 = vperm.xlu0 %3846, %v3962_v35   ;;  %v2192_v55 = vadd.f32 %v2176_v16, %v2144_v14  ;;  %v2472_v43 = vand.u32 2147483647, %v2191_v4  ;;  %v3964_v10 = vpop.eup %3963  ;;  %v2388_v46 = vpop.f32.mrf.mxu1  ;;  %v2289_v35 = vmul.f32 %v5377_v2, %v2193_v39 }
 0x48b   : > { %3971 = vrcp.f32 %v2566_v17  ;;  %v3966_v44 = vpop.eup %3965  ;;  %v2427_v5 = vadd.f32 %v2388_v46, %v2290_v6  ;;  %v2299_v17 = vmul.f32 %v5403_v53, %v2203_v57  ;;  %v2201_v6 = vld [vmem:[#allocation4 + $0x40] sm:$0xff] }
 0x48c   : > { %v2473_v15 = vand.u32 2147483647, %v2192_v55  ;;  %v2552_v62 = vmax.f32 %v2472_v43, %v3964_v10  ;;  %v2426_v8 = vadd.f32 %v2386_v54, %v2289_v35  ;;  %v2196_v43 = vld [vmem:[#allocation4 + $0x18] sm:$0xff]  ;;  %v2198_v54 = vld [vmem:[#allocation4 + $0x68] sm:$0xff] }
 0x48d   : > { %v2292_v2 = vmul.f32 %v5381_v37, %v2196_v43  ;;  %v2294_v37 = vmul.f32 %v5385_v48, %v2198_v54  ;;  %v2207_v35 = vld [vmem:[#allocation4 + $0x78] sm:$0xff]  ;;  %v4302_v43 = vmov 128.0  }
 0x48e   : > { %v2553_v22 = vmax.f32 %v2473_v15, %v3966_v44  ;;  %v2568_v51 = vadd.f32 1e-06, %v2552_v62  ;;  %v2206_v44 = vld [vmem:[#allocation4 + $0x70] sm:$0xff] }
 0x48f   : > { %v3968_v26 = vpop.eup %3967  ;;  %v2302_v53 = vmul.f32 %v5417_v12, %v2206_v44 }
 0x490   : > { %v3970_v59 = vpop.eup %3969  ;;  %v2569_v0 = vadd.f32 1e-06, %v2553_v22  ;;  %2653 = vperm.xlu2 %3845, %v3968_v26   ;;  %3973 = vrcp.f32 %v2568_v51 }
 0x491   : > { %v3972_v9 = vpop.eup %3971  ;;  %2643 = vperm.xlu1 %3844, %v3970_v59   ;;  %v2411_v21 = vpop.f32.mrf.mxu3 }
 0x492   : > { %2648 = vperm.xlu0 %3846, %v3972_v9   ;;  %3975 = vrcp.f32 %v2569_v0  ;;  %v2391_v32 = vpop.f32.mrf.mxu1  ;;  %v2436_v14 = vadd.f32 %v2411_v21, %v2299_v17 }
 0x493   : > { %v2428_v4 = vadd.f32 %v2391_v32, %v2291_v60  ;;  %v2208_v60 = vld [vmem:[#allocation4 + $0x28] sm:$0xff]  ;;  %3977 = vrcp.f32 %v4302_v43 }
 0x496   : > { %v3974_v38 = vpop.eup %3973 }
 0x498   : > { %v3976_v50 = vpop.eup %3975 }
 0x499   : > { %2658 = vperm.xlu1 %3844, %v3974_v38   ;;  %v5462_v3 = vpop.f32.mrf.mxu3  ;;  %v2199_v38 = vld [vmem:[#allocation4 + $0x8] sm:$0xff] }
 0x49a   : > { %2663 = vperm.xlu0 %3846, %v3976_v50   ;;  %v2393_v27 = vpop.f32.mrf.mxu1  ;;  %v2295_v46 = vmul.f32 %v5387_v36, %v2199_v38 }
 0x49b   : > { %v2429_v26 = vadd.f32 %v2393_v27, %v2292_v2 }
 0x4a1   : > { %v5470_v61 = vpop.f32.mrf.mxu3 }
 0x4a2   : > { %v2396_v41 = vpop.f32.mrf.mxu1 }
 0x4a3   : > { %v2430_v1 = vadd.f32 %v2396_v41, %v2293_v45 }
 0x4a9   : > { %v2418_v11 = vpop.f32.mrf.mxu3 }
 0x4aa   : > { %v2398_v23 = vpop.f32.mrf.mxu1  ;;  %v2439_v22 = vadd.f32 %v2418_v11, %v2302_v53 }
 0x4ab   : > { %v2431_v12 = vadd.f32 %v2398_v23, %v2294_v37 }
 0x4b2   : > { %v2401_v40 = vpop.f32.mrf.mxu1 }
 0x4b3   : > { %v2432_v27 = vadd.f32 %v2401_v40, %v2295_v46 }
 0x4ba   : > { %v2403_v7 = vpop.f32.mrf.mxu1 }
 0x4bb   : > { %v2433_v28 = vadd.f32 %v2403_v7, %v2296_v47  ;;  %v2205_v7 = vld [vmem:[#allocation4 + $0x60] sm:$0xff]  ;;  %v2421_v47 = vpop.f32.mrf.mxu3 }
 0x4c2   : > { %v2406_v50 = vpop.f32.mrf.mxu1 }
 0x4ca   : > { %v2594_v49 = vpop.permute.xlu2 %2593  ;;  %v2408_v13 = vpop.f32.mrf.mxu1 }
 0x4cb   : > { %v5458_v58 = vmul.f32 %v2594_v49, %v2427_v5  ;;  %v2202_v5 = vld [vmem:[#allocation4 + $0x20] sm:$0xff]  ;;  %v2297_v49 = vmul.f32 %v5391_v24, %v2201_v6 }
 0x4cc   : > { %v2298_v48 = vmul.f32 %v5393_v34, %v2202_v5 }
 0x4cd   : > { %2684 = vadd.xlane.f32.xlu1 %v5458_v58  ;;  %v2434_v36 = vadd.f32 %v2406_v50, %v2297_v49 }
 0x4ce   : > { %v2435_v23 = vadd.f32 %v2408_v13, %v2298_v48 }
 0x4d2   : > { %v2609_v56 = vpop.permute.xlu2 %2608 }
 0x4d3   : > { %v5464_v18 = vmul.f32 %v2609_v56, %v2430_v1  ;;  %v2204_v56 = vld [vmem:[#allocation4 + $0x38] sm:$0xff] }
 0x4d4   : > { %v2300_v24 = vmul.f32 %v5398_v25, %v2204_v56  ;;  %v2303_v25 = vmul.f32 %v5411_v29, %v2207_v35 }
 0x4d5   : > { %2690 = vadd.xlane.f32.xlu1 %v5464_v18 }
 0x4d6   : > { %v2437_v34 = vadd.f32 %v5462_v3, %v2300_v24  ;;  %v2440_v3 = vadd.f32 %v2421_v47, %v2303_v25 }
 0x4da   : > { %v2624_v30 = vpop.permute.xlu2 %2623 }
 0x4db   : > { %v5468_v52 = vmul.f32 %v2624_v30, %v2433_v28  ;;  %v2301_v28 = vmul.f32 %v5400_v63, %v2205_v7  ;;  %v2304_v63 = vmul.f32 %v5413_v31, %v2208_v60 }
 0x4dd   : > { %2696 = vadd.xlane.f32.xlu1 %v5468_v52  ;;  %v2438_v30 = vadd.f32 %v5470_v61, %v2301_v28 }
 0x4e1   : > { %v2589_v19 = vpop.permute.xlu0 %2588 }
 0x4e2   : > { %v2639_v16 = vpop.permute.xlu2 %2638  ;;  %v5476_v55 = vmul.f32 %v2589_v19, %v2426_v8  ;;  %v2423_v8 = vpop.f32.mrf.mxu3 }
 0x4e3   : > { %v5478_v10 = vmul.f32 %v2639_v16, %v2436_v14  ;;  %v2599_v15 = vpop.permute.xlu1 %2598  ;;  %v2441_v14 = vadd.f32 %v2423_v8, %v2304_v63 }
 0x4e4   : > { %v5480_v62 = vmul.f32 %v2599_v15, %v2428_v4  ;;  %2682 = vadd.xlane.f32.xlu2 %v5476_v55  ;;  %v3978_v15 = vpop.eup %3977 }
 0x4e5   : > { %2702 = vadd.xlane.f32.xlu1 %v5478_v10  ;;  %v2715_v44 = vmul.f32 128.0, %v3978_v15  ;;  %vm2719_vm3 = vweird.f32 %v3978_v15 }
 0x4e6   : > { %2686 = vadd.xlane.f32.xlu0 %v5480_v62 }
 0x4e7   : > { %v2716_v29 = vsub.f32 1.0, %v2715_v44 }
 0x4e9   : > { %v2604_v59 = vpop.permute.xlu0 %2603  ;;  %v2717_v2 = vmul.f32 %v3978_v15, %v2716_v29 }
 0x4ea   : > { %v2654_v51 = vpop.permute.xlu2 %2653  ;;  %v5487_v9 = vmul.f32 %v2604_v59, %v2429_v26 }
 0x4eb   : > { %v5489_v0 = vmul.f32 %v2654_v51, %v2439_v22  ;;  %v2718_v11 = vadd.f32 %v3978_v15, %v2717_v2 }
 0x4ec   : > { %2688 = vadd.xlane.f32.xlu2 %v5487_v9 }
 0x4ed   : > { %2708 = vadd.xlane.f32.xlu1 %v5489_v0  ;;  %v5527_v31 = vsel %vm2719_vm3, %v3978_v15, %v2718_v11 }
 0x4f1   : > { %v2614_v32 = vpop.permute.xlu1 %2613 }
 0x4f2   : > { %v5495_v41 = vmul.f32 %v2614_v32, %v2431_v12 }
 0x4f3   : > { %v2619_v20 = vpop.permute.xlu0 %2618 }
 0x4f4   : > { %v5497_v21 = vmul.f32 %v2619_v20, %v2432_v27  ;;  %2692 = vadd.xlane.f32.xlu0 %v5495_v41 }
 0x4f6   : > { %2694 = vadd.xlane.f32.xlu2 %v5497_v21 }
 0x4fb   : > { %v2629_v45 = vpop.permute.xlu1 %2628 }
 0x4fc   : > { %v5503_v40 = vmul.f32 %v2629_v45, %v2434_v36  ;;  %v2634_v1 = vpop.permute.xlu0 %2633 }
 0x4fd   : > { %v5505_v33 = vmul.f32 %v2634_v1, %v2435_v23 }
 0x4fe   : > { %2698 = vadd.xlane.f32.xlu0 %v5503_v40 }
 0x4ff   : > { %2700 = vadd.xlane.f32.xlu2 %v5505_v33 }
 0x503   : > { %v2644_v39 = vpop.permute.xlu1 %2643 }
 0x504   : > { %v5513_v57 = vmul.f32 %v2644_v39, %v2437_v34  ;;  %v2649_v42 = vpop.permute.xlu0 %2648 }
 0x505   : > { %v5515_v17 = vmul.f32 %v2649_v42, %v2438_v30 }
 0x506   : > { %2704 = vadd.xlane.f32.xlu0 %v5513_v57 }
 0x507   : > { %2706 = vadd.xlane.f32.xlu2 %v5515_v17 }
 0x50b   : > { %v2659_v61 = vpop.permute.xlu1 %2658 }
 0x50c   : > { %v5521_v19 = vmul.f32 %v2659_v61, %v2440_v3  ;;  %v2664_v4 = vpop.permute.xlu0 %2663 }
 0x50d   : > { %v5523_v16 = vmul.f32 %v2664_v4, %v2441_v14 }
 0x50e   : > { %2710 = vadd.xlane.f32.xlu0 %v5521_v19 }
 0x50f   : > { %2712 = vadd.xlane.f32.xlu2 %v5523_v16 }
 0x540   : > { %v2685_v53 = vpop.xlane.xlu1 %2684 }
 0x541   : > { %v2722_v26 = vmul.f32 %v5527_v31, %v2685_v53 }
 0x543   : > { %v5531_v22 = vsub.f32 %v5458_v58, %v2722_v26 }
 0x545   : > { %v2754_v59 = vmul.f32 %v5531_v22, %v5531_v22 }
 0x547   : > { %2771 = vadd.xlane.f32.xlu0 %v2754_v59 }
 0x548   : > { %v2691_v51 = vpop.xlane.xlu1 %2690 }
 0x549   : > { %v2725_v54 = vmul.f32 %v5527_v31, %v2691_v51 }
 0x54b   : > { %v5537_v38 = vsub.f32 %v5464_v18, %v2725_v54 }
 0x54d   : > { %v2757_v50 = vmul.f32 %v5537_v38, %v5537_v38 }
 0x54f   : > { %2777 = vadd.xlane.f32.xlu0 %v2757_v50 }
 0x550   : > { %v2697_v37 = vpop.xlane.xlu1 %2696 }
 0x551   : > { %v2728_v46 = vmul.f32 %v5527_v31, %v2697_v37 }
 0x553   : > { %v5543_v58 = vsub.f32 %v5468_v52, %v2728_v46 }
 0x555   : > { %v2760_v12 = vmul.f32 %v5543_v58, %v5543_v58 }
 0x557   : > { %2783 = vadd.xlane.f32.xlu0 %v2760_v12  ;;  %v2683_v32 = vpop.xlane.xlu2 %2682 }
 0x558   : > { %v2703_v27 = vpop.xlane.xlu1 %2702  ;;  %v2721_v20 = vmul.f32 %v5527_v31, %v2683_v32 }
 0x559   : > { %v2731_v18 = vmul.f32 %v5527_v31, %v2703_v27  ;;  %v2687_v6 = vpop.xlane.xlu0 %2686 }
 0x55a   : > { %v5550_v5 = vsub.f32 %v5476_v55, %v2721_v20  ;;  %v2723_v49 = vmul.f32 %v5527_v31, %v2687_v6 }
 0x55b   : > { %v5554_v13 = vsub.f32 %v5478_v10, %v2731_v18 }
 0x55c   : > { %v5557_v52 = vsub.f32 %v5480_v62, %v2723_v49  ;;  %v2753_v48 = vmul.f32 %v5550_v5, %v5550_v5 }
 0x55d   : > { %v2763_v36 = vmul.f32 %v5554_v13, %v5554_v13 }
 0x55e   : > { %2769 = vadd.xlane.f32.xlu1 %v2753_v48  ;;  %v2755_v23 = vmul.f32 %v5557_v52, %v5557_v52 }
 0x55f   : > { %2789 = vadd.xlane.f32.xlu0 %v2763_v36  ;;  %v2689_v55 = vpop.xlane.xlu2 %2688 }
 0x560   : > { %v2709_v45 = vpop.xlane.xlu1 %2708  ;;  %v2724_v1 = vmul.f32 %v5527_v31, %v2689_v55  ;;  %2773 = vadd.xlane.f32.xlu2 %v2755_v23  ;;  %v5629_v55 = vld [vmem:[%s4688_s21] ss:$0 sm:$0xff] }
 0x561   : > { %v2734_v10 = vmul.f32 %v5527_v31, %v2709_v45 }
 0x562   : > { %v5568_v62 = vsub.f32 %v5487_v9, %v2724_v1 }
 0x563   : > { %v5571_v56 = vsub.f32 %v5489_v0, %v2734_v10 }
 0x564   : > { %v2756_v7 = vmul.f32 %v5568_v62, %v5568_v62 }
 0x565   : > { %v2766_v47 = vmul.f32 %v5571_v56, %v5571_v56 }
 0x566   : > { %2775 = vadd.xlane.f32.xlu1 %v2756_v7 }
 0x567   : > { %2795 = vadd.xlane.f32.xlu0 %v2766_v47  ;;  %v2693_v24 = vpop.xlane.xlu0 %2692 }
 0x568   : > { %v2726_v28 = vmul.f32 %v5527_v31, %v2693_v24 }
 0x569   : > { %v2695_v34 = vpop.xlane.xlu2 %2694 }
 0x56a   : > { %v2727_v30 = vmul.f32 %v5527_v31, %v2695_v34  ;;  %v5580_v9 = vsub.f32 %v5495_v41, %v2726_v28 }
 0x56c   : > { %v5583_v0 = vsub.f32 %v5497_v21, %v2727_v30  ;;  %v2758_v39 = vmul.f32 %v5580_v9, %v5580_v9 }
 0x56e   : > { %v2759_v42 = vmul.f32 %v5583_v0, %v5583_v0  ;;  %2779 = vadd.xlane.f32.xlu2 %v2758_v39 }
 0x570   : > { %2781 = vadd.xlane.f32.xlu1 %v2759_v42 }
 0x571   : > { %v2699_v35 = vpop.xlane.xlu0 %2698 }
 0x572   : > { %v2701_v60 = vpop.xlane.xlu2 %2700  ;;  %v2729_v25 = vmul.f32 %v5527_v31, %v2699_v35 }
 0x573   : > { %v2730_v8 = vmul.f32 %v5527_v31, %v2701_v60 }
 0x574   : > { %v5592_v41 = vsub.f32 %v5503_v40, %v2729_v25 }
 0x575   : > { %v5595_v21 = vsub.f32 %v5505_v33, %v2730_v8 }
 0x576   : > { %v2761_v63 = vmul.f32 %v5592_v41, %v5592_v41 }
 0x577   : > { %v2762_v3 = vmul.f32 %v5595_v21, %v5595_v21 }
 0x578   : > { %2785 = vadd.xlane.f32.xlu2 %v2761_v63 }
 0x579   : > { %2787 = vadd.xlane.f32.xlu1 %v2762_v3  ;;  %v2705_v14 = vpop.xlane.xlu0 %2704 }
 0x57a   : > { %v2707_v61 = vpop.xlane.xlu2 %2706  ;;  %v2732_v4 = vmul.f32 %v5527_v31, %v2705_v14 }
 0x57b   : > { %v2733_v43 = vmul.f32 %v5527_v31, %v2707_v61 }
 0x57c   : > { %v5604_v40 = vsub.f32 %v5513_v57, %v2732_v4 }
 0x57d   : > { %v5607_v33 = vsub.f32 %v5515_v17, %v2733_v43 }
 0x57e   : > { %v2764_v15 = vmul.f32 %v5604_v40, %v5604_v40 }
 0x57f   : > { %v2765_v44 = vmul.f32 %v5607_v33, %v5607_v33 }
 0x580   : > { %2791 = vadd.xlane.f32.xlu2 %v2764_v15 }
 0x581   : > { %2793 = vadd.xlane.f32.xlu1 %v2765_v44  ;;  %v2711_v29 = vpop.xlane.xlu0 %2710 }
 0x582   : > { %v2713_v2 = vpop.xlane.xlu2 %2712  ;;  %v2735_v11 = vmul.f32 %v5527_v31, %v2711_v29 }
 0x583   : > { %v2736_v53 = vmul.f32 %v5527_v31, %v2713_v2 }
 0x584   : > { %v5616_v57 = vsub.f32 %v5521_v19, %v2735_v11 }
 0x585   : > { %v5619_v17 = vsub.f32 %v5523_v16, %v2736_v53 }
 0x586   : > { %v2767_v26 = vmul.f32 %v5616_v57, %v5616_v57 }
 0x587   : > { %v2768_v59 = vmul.f32 %v5619_v17, %v5619_v17 }
 0x588   : > { %2797 = vadd.xlane.f32.xlu2 %v2767_v26 }
 0x589   : > { %2799 = vadd.xlane.f32.xlu1 %v2768_v59 }
 0x5ba   : > { %v2772_v51 = vpop.xlane.xlu0 %2771 }
 0x5bb   : > { %v2802_v54 = vmul.f32 %v2772_v51, %v5527_v31 }
 0x5bd   : > { %v2818_v50 = vadd.f32 1e-05, %v2802_v54 }
 0x5bf   : > { %3979 = vrsqrt.f32 %v2818_v50  ;;  %vm2849_vm5 = vweird.f32 %v2818_v50 }
 0x5c2   : > { %v2778_v37 = vpop.xlane.xlu0 %2777 }
 0x5c3   : > { %v2805_v19 = vmul.f32 %v2778_v37, %v5527_v31 }
 0x5c5   : > { %v3980_v46 = vpop.eup %3979  ;;  %v2821_v16 = vadd.f32 1e-05, %v2805_v19 }
 0x5c6   : > { %v2844_v12 = vmul.f32 %v3980_v46, %v2818_v50  ;;  %vm2850_vm4 = vweird.f32 %v3980_v46 }
 0x5c7   : > { %3981 = vrsqrt.f32 %v2821_v16  ;;  %vm2851_vm6 = vmor %vm2849_vm5, %vm2850_vm4  ;;  %vm2879_vm8 = vweird.f32 %v2821_v16 }
 0x5c8   : > { %v2845_v32 = vmul.f32 %v3980_v46, %v2844_v12 }
 0x5ca   : > { %v2846_v27 = vmul.f32 0.5, %v2845_v32  ;;  %v2784_v20 = vpop.xlane.xlu0 %2783 }
 0x5cb   : > { %v2808_v18 = vmul.f32 %v2784_v20, %v5527_v31 }
 0x5cc   : > { %v2847_v6 = vsub.f32 1.5, %v2846_v27 }
 0x5cd   : > { %v3982_v49 = vpop.eup %3981  ;;  %v2824_v48 = vadd.f32 1e-05, %v2808_v18 }
 0x5ce   : > { %v2848_v36 = vmul.f32 %v3980_v46, %v2847_v6  ;;  %v2874_v23 = vmul.f32 %v3982_v49, %v2821_v16  ;;  %vm2880_vm7 = vweird.f32 %v3982_v49 }
 0x5cf   : > { %3983 = vrsqrt.f32 %v2824_v48  ;;  %vm2881_vm9 = vmor %vm2879_vm8, %vm2880_vm7  ;;  %vm2909_vm11 = vweird.f32 %v2824_v48 }
 0x5d0   : > { %v2852_v45 = vsel %vm2851_vm6, %v3980_v46, %v2848_v36  ;;  %v2875_v1 = vmul.f32 %v3982_v49, %v2874_v23 }
 0x5d1   : > { %v2994_v10 = vmul.f32 %v2852_v45, %v5531_v22  ;;  %v2770_v7 = vpop.xlane.xlu1 %2769 }
 0x5d2   : > { %v2876_v47 = vmul.f32 0.5, %v2875_v1  ;;  %v2801_v24 = vmul.f32 %v2770_v7, %v5527_v31  ;;  %v2790_v28 = vpop.xlane.xlu0 %2789 }
 0x5d3   : > { %v3014_v34 = vmul.f32 %v5629_v55, %v2994_v10  ;;  %v2811_v30 = vmul.f32 %v2790_v28, %v5527_v31  ;;  %v2774_v39 = vpop.xlane.xlu2 %2773 }
 0x5d4   : > { %v2877_v42 = vsub.f32 1.5, %v2876_v47  ;;  %v5635_v35 = vadd.f32 1e-05, %v2801_v24  ;;  %v2803_v60 = vmul.f32 %v2774_v39, %v5527_v31 }
 0x5d5   : > { %v3984_v25 = vpop.eup %3983  ;;  %3030 = vst [vmem:[%s4719_s16 + $0x8] sm:$0xff] %v3014_v34  ;;  %v5639_v8 = vadd.f32 1e-05, %v2811_v30 }
 0x5d6   : > { %v2878_v22 = vmul.f32 %v3982_v49, %v2877_v42  ;;  %v2904_v63 = vmul.f32 %v3984_v25, %v2824_v48  ;;  %3985 = vrsqrt.f32 %v5635_v35  ;;  %v5643_v3 = vadd.f32 1e-05, %v2803_v60 }
 0x5d7   : > { %3987 = vrsqrt.f32 %v5639_v8  ;;  %vm2910_vm10 = vweird.f32 %v3984_v25  ;;  %vm2839_vm13 = vweird.f32 %v5635_v35  ;;  %vm2939_vm0 = vweird.f32 %v5639_v8 }
 0x5d8   : > { %v2882_v14 = vsel %vm2881_vm9, %v3982_v49, %v2878_v22  ;;  %v2905_v61 = vmul.f32 %v3984_v25, %v2904_v63  ;;  %3989 = vrsqrt.f32 %v5643_v3  ;;  %vm2911_vm12 = vmor %vm2909_vm11, %vm2910_vm10  ;;  %vm2859_vm1 = vweird.f32 %v5643_v3 }
 0x5d9   : > { %v2997_v4 = vmul.f32 %v2882_v14, %v5537_v38  ;;  %v2776_v43 = vpop.xlane.xlu1 %2775 }
 0x5da   : > { %v2906_v15 = vmul.f32 0.5, %v2905_v61  ;;  %v2804_v44 = vmul.f32 %v2776_v43, %v5527_v31  ;;  %v2796_v29 = vpop.xlane.xlu0 %2795 }
 0x5db   : > { %v3017_v2 = vmul.f32 %v5629_v55, %v2997_v4  ;;  %v2814_v11 = vmul.f32 %v2796_v29, %v5527_v31 }
 0x5dc   : > { %v3986_v53 = vpop.eup %3985  ;;  %v2907_v26 = vsub.f32 1.5, %v2906_v15  ;;  %v5650_v59 = vadd.f32 1e-05, %v2804_v44 }
 0x5dd   : > { %v3988_v51 = vpop.eup %3987  ;;  %3033 = vst [vmem:[%s4719_s16 + $0x20] sm:$0xff] %v3017_v2  ;;  %v2834_v38 = vmul.f32 %v3986_v53, %v5635_v35  ;;  %v5654_v54 = vadd.f32 1e-05, %v2814_v11  ;;  %vm2840_vm14 = vweird.f32 %v3986_v53 }
 0x5de   : > { %v2908_v50 = vmul.f32 %v3984_v25, %v2907_v26  ;;  %v2934_v37 = vmul.f32 %v3988_v51, %v5639_v8  ;;  %3991 = vrsqrt.f32 %v5650_v59  ;;  %v3990_v19 = vpop.eup %3989  ;;  %vm2940_vm15 = vweird.f32 %v3988_v51  ;;  %vm2841_vm2 = vmor %vm2839_vm13, %vm2840_vm14 }
 0x5df   : > { %v2835_v46 = vmul.f32 %v3986_v53, %v2834_v38  ;;  %3993 = vrsqrt.f32 %v5654_v54  ;;  %v2854_v32 = vmul.f32 %v3990_v19, %v5643_v3  ;;  %vm2860_vm3 = vweird.f32 %v3990_v19  ;;  %vm2941_vm4 = vmor %vm2939_vm0, %vm2940_vm15 }
 0x5e0   : > { %v2912_v16 = vsel %vm2911_vm12, %v3984_v25, %v2908_v50  ;;  %v2935_v12 = vmul.f32 %v3988_v51, %v2934_v37  ;;  %vm2861_vm5 = vmor %vm2859_vm1, %vm2860_vm3  ;;  %vm2869_vm8 = vweird.f32 %v5650_v59  ;;  %vm2969_vm10 = vweird.f32 %v5654_v54 }
 0x5e1   : > { %v3000_v27 = vmul.f32 %v2912_v16, %v5543_v58  ;;  %v2836_v20 = vmul.f32 0.5, %v2835_v46  ;;  %v2780_v18 = vpop.xlane.xlu2 %2779  ;;  %v2855_v49 = vmul.f32 %v3990_v19, %v2854_v32 }
 0x5e2   : > { %v2936_v6 = vmul.f32 0.5, %v2935_v12  ;;  %v2806_v48 = vmul.f32 %v2780_v18, %v5527_v31 }
 0x5e3   : > { %v3020_v36 = vmul.f32 %v5629_v55, %v3000_v27  ;;  %v2837_v23 = vsub.f32 1.5, %v2836_v20  ;;  %v2782_v45 = vpop.xlane.xlu1 %2781  ;;  %v2856_v7 = vmul.f32 0.5, %v2855_v49 }
 0x5e4   : > { %v3992_v1 = vpop.eup %3991  ;;  %v2937_v10 = vsub.f32 1.5, %v2936_v6  ;;  %v2807_v58 = vmul.f32 %v2782_v45, %v5527_v31  ;;  %v5665_v47 = vadd.f32 1e-05, %v2806_v48 }
 0x5e5   : > { %v3994_v24 = vpop.eup %3993  ;;  %3036 = vst [vmem:[%s4719_s16 + $0x38] sm:$0xff] %v3020_v36  ;;  %v2838_v28 = vmul.f32 %v3986_v53, %v2837_v23  ;;  %v2864_v34 = vmul.f32 %v3992_v1, %v5650_v59  ;;  %v2857_v39 = vsub.f32 1.5, %v2856_v7  ;;  %vm2870_vm6 = vweird.f32 %v3992_v1 }
 0x5e6   : > { %v2938_v30 = vmul.f32 %v3988_v51, %v2937_v10  ;;  %v2964_v42 = vmul.f32 %v3994_v24, %v5654_v54  ;;  %v5675_v22 = vadd.f32 1e-05, %v2807_v58  ;;  %3995 = vrsqrt.f32 %v5665_v47  ;;  %vm2871_vm9 = vmor %vm2869_vm8, %vm2870_vm6 }
 0x5e7   : > { %v2842_v60 = vsel %vm2841_vm2, %v3986_v53, %v2838_v28  ;;  %v2865_v25 = vmul.f32 %v3992_v1, %v2864_v34  ;;  %v2858_v14 = vmul.f32 %v3990_v19, %v2857_v39  ;;  %vm2970_vm7 = vweird.f32 %v3994_v24 }
 0x5e8   : > { %v2993_v8 = vmul.f32 %v2842_v60, %v5550_v5  ;;  %v2942_v63 = vsel %vm2941_vm4, %v3988_v51, %v2938_v30  ;;  %v2965_v35 = vmul.f32 %v3994_v24, %v2964_v42  ;;  %3997 = vrsqrt.f32 %v5675_v22  ;;  %vm2971_vm11 = vmor %vm2969_vm10, %vm2970_vm7 }
 0x5e9   : > { %v3003_v61 = vmul.f32 %v2942_v63, %v5554_v13  ;;  %v2866_v4 = vmul.f32 0.5, %v2865_v25  ;;  %v2862_v15 = vsel %vm2861_vm5, %v3990_v19, %v2858_v14  ;;  %vm2889_vm14 = vweird.f32 %v5665_v47 }
 0x5ea   : > { %v3013_v43 = vmul.f32 %v5629_v55, %v2993_v8  ;;  %v2966_v44 = vmul.f32 0.5, %v2965_v35  ;;  %v2995_v2 = vmul.f32 %v2862_v15, %v5557_v52  ;;  %vm2899_vm15 = vweird.f32 %v5675_v22 }
 0x5eb   : > { %v2786_v29 = vpop.xlane.xlu2 %2785  ;;  %v3023_v5 = vmul.f32 %v5629_v55, %v3003_v61  ;;  %v2867_v11 = vsub.f32 1.5, %v2866_v4 }
 0x5ec   : > { %v2788_v53 = vpop.xlane.xlu1 %2787  ;;  %v2809_v13 = vmul.f32 %v2786_v29, %v5527_v31  ;;  %3029 = vst [vmem:[%s4719_s16] sm:$0xff] %v3013_v43  ;;  %v2967_v3 = vsub.f32 1.5, %v2966_v44  ;;  %v3996_v51 = vpop.eup %3995  ;;  %v3015_v38 = vmul.f32 %v5629_v55, %v2995_v2 }
 0x5ed   : > { %v2810_v26 = vmul.f32 %v2788_v53, %v5527_v31  ;;  %3039 = vst [vmem:[%s4719_s16 + $0x50] sm:$0xff] %v3023_v5  ;;  %v2868_v50 = vmul.f32 %v3992_v1, %v2867_v11  ;;  %v2884_v19 = vmul.f32 %v3996_v51, %v5665_v47  ;;  %vm2890_vm12 = vweird.f32 %v3996_v51 }
 0x5ee   : > { %v5692_v37 = vadd.f32 1e-05, %v2809_v13  ;;  %v2968_v52 = vmul.f32 %v3994_v24, %v2967_v3  ;;  %v3998_v16 = vpop.eup %3997  ;;  %3031 = vst [vmem:[%s4719_s16 + $0x10] sm:$0xff] %v3015_v38  ;;  %vm2891_vm0 = vmor %vm2889_vm14, %vm2890_vm12 }
 0x5ef   : > { %v5697_v46 = vadd.f32 1e-05, %v2810_v26  ;;  %v2872_v12 = vsel %vm2871_vm9, %v3992_v1, %v2868_v50  ;;  %v2894_v27 = vmul.f32 %v3998_v16, %v5675_v22  ;;  %v2885_v20 = vmul.f32 %v3996_v51, %v2884_v19 }
 0x5f0   : > { %3999 = vrsqrt.f32 %v5692_v37  ;;  %v2996_v59 = vmul.f32 %v2872_v12, %v5568_v62  ;;  %v2972_v32 = vsel %vm2971_vm11, %v3994_v24, %v2968_v52  ;;  %vm2900_vm13 = vweird.f32 %v3998_v16 }
 0x5f1   : > { %v3006_v54 = vmul.f32 %v2972_v32, %v5571_v56  ;;  %4001 = vrsqrt.f32 %v5697_v46  ;;  %v2895_v6 = vmul.f32 %v3998_v16, %v2894_v27  ;;  %v2886_v36 = vmul.f32 0.5, %v2885_v20  ;;  %vm2901_vm1 = vmor %vm2899_vm15, %vm2900_vm13 }
 0x5f2   : > { %v3016_v18 = vmul.f32 %v5629_v55, %v2996_v59  ;;  %vm2919_vm3 = vweird.f32 %v5692_v37  ;;  %vm2929_vm6 = vweird.f32 %v5697_v46 }
 0x5f3   : > { %v2792_v49 = vpop.xlane.xlu2 %2791  ;;  %v3026_v48 = vmul.f32 %v5629_v55, %v3006_v54  ;;  %v2896_v62 = vmul.f32 0.5, %v2895_v6  ;;  %v2887_v56 = vsub.f32 1.5, %v2886_v36 }
 0x5f4   : > { %v2794_v23 = vpop.xlane.xlu1 %2793  ;;  %v2812_v45 = vmul.f32 %v2792_v49, %v5527_v31  ;;  %3032 = vst [vmem:[%s4719_s16 + $0x18] sm:$0xff] %v3016_v18 }
 0x5f5   : > { %v2813_v1 = vmul.f32 %v2794_v23, %v5527_v31  ;;  %3042 = vst [vmem:[%s4719_s16 + $0x68] sm:$0xff] %v3026_v48  ;;  %v2897_v58 = vsub.f32 1.5, %v2896_v62  ;;  %v2888_v30 = vmul.f32 %v3996_v51, %v2887_v56 }
 0x5f6   : > { %v4000_v10 = vpop.eup %3999  ;;  %v5712_v7 = vadd.f32 1e-05, %v2812_v45 }
 0x5f7   : > { %v2914_v24 = vmul.f32 %v4000_v10, %v5692_v37  ;;  %v5715_v28 = vadd.f32 1e-05, %v2813_v1  ;;  %v4002_v34 = vpop.eup %4001  ;;  %v2898_v39 = vmul.f32 %v3998_v16, %v2897_v58  ;;  %v2892_v25 = vsel %vm2891_vm0, %v3996_v51, %v2888_v30 }
 0x5f8   : > { %4003 = vrsqrt.f32 %v5712_v7  ;;  %v2924_v42 = vmul.f32 %v4002_v34, %v5697_v46  ;;  %v2998_v63 = vmul.f32 %v2892_v25, %v5580_v9  ;;  %vm2920_vm2 = vweird.f32 %v4000_v10 }
 0x5f9   : > { %v2915_v60 = vmul.f32 %v4000_v10, %v2914_v24  ;;  %4005 = vrsqrt.f32 %v5715_v28  ;;  %v2902_v8 = vsel %vm2901_vm1, %v3998_v16, %v2898_v39  ;;  %vm2930_vm4 = vweird.f32 %v4002_v34  ;;  %vm2921_vm5 = vmor %vm2919_vm3, %vm2920_vm2 }
 0x5fa   : > { %v2925_v14 = vmul.f32 %v4002_v34, %v2924_v42  ;;  %v2999_v61 = vmul.f32 %v2902_v8, %v5583_v0  ;;  %v3018_v43 = vmul.f32 %v5629_v55, %v2998_v63  ;;  %vm2931_vm7 = vmor %vm2929_vm6, %vm2930_vm4  ;;  %vm2949_vm10 = vweird.f32 %v5712_v7 }
 0x5fb   : > { %v2916_v35 = vmul.f32 0.5, %v2915_v60  ;;  %v2798_v47 = vpop.xlane.xlu2 %2797  ;;  %vm2959_vm11 = vweird.f32 %v5715_v28 }
 0x5fc   : > { %v2800_v4 = vpop.xlane.xlu1 %2799  ;;  %v2815_v22 = vmul.f32 %v2798_v47, %v5527_v31  ;;  %v2926_v15 = vmul.f32 0.5, %v2925_v14  ;;  %v3019_v9 = vmul.f32 %v5629_v55, %v2999_v61  ;;  %3034 = vst [vmem:[%s4719_s16 + $0x28] sm:$0xff] %v3018_v43 }
 0x5fd   : > { %v2917_v44 = vsub.f32 1.5, %v2916_v35  ;;  %v2816_v29 = vmul.f32 %v2800_v4, %v5527_v31 }
 0x5fe   : > { %v4004_v5 = vpop.eup %4003  ;;  %v2831_v2 = vadd.f32 1e-05, %v2815_v22  ;;  %v2927_v11 = vsub.f32 1.5, %v2926_v15  ;;  %3035 = vst [vmem:[%s4719_s16 + $0x30] sm:$0xff] %v3019_v9 }
 0x5ff   : > { %v2918_v0 = vmul.f32 %v4000_v10, %v2917_v44  ;;  %v2944_v53 = vmul.f32 %v4004_v5, %v5712_v7  ;;  %v4006_v13 = vpop.eup %4005  ;;  %v2832_v3 = vadd.f32 1e-05, %v2816_v29  ;;  %vm2950_vm8 = vweird.f32 %v4004_v5 }
 0x600   : > { %4007 = vrsqrt.f32 %v2831_v2  ;;  %v2928_v26 = vmul.f32 %v4002_v34, %v2927_v11  ;;  %v2954_v51 = vmul.f32 %v4006_v13, %v5715_v28  ;;  %vm2960_vm9 = vweird.f32 %v4006_v13  ;;  %vm2951_vm12 = vmor %vm2949_vm10, %vm2950_vm8 }
 0x601   : > { %v2922_v31 = vsel %vm2921_vm5, %v4000_v10, %v2918_v0  ;;  %v2945_v50 = vmul.f32 %v4004_v5, %v2944_v53  ;;  %4009 = vrsqrt.f32 %v2832_v3  ;;  %vm2961_vm13 = vmor %vm2959_vm11, %vm2960_vm9  ;;  %vm2979_vm0 = vweird.f32 %v2831_v2 }
 0x602   : > { %v3001_v38 = vmul.f32 %v2922_v31, %v5592_v41  ;;  %v2932_v37 = vsel %vm2931_vm7, %v4002_v34, %v2928_v26  ;;  %v2955_v52 = vmul.f32 %v4006_v13, %v2954_v51  ;;  %vm2989_vm2 = vweird.f32 %v2832_v3 }
 0x603   : > { %v3002_v19 = vmul.f32 %v2932_v37, %v5595_v21  ;;  %v2946_v12 = vmul.f32 0.5, %v2945_v50 }
 0x604   : > { %v3021_v16 = vmul.f32 %v5629_v55, %v3001_v38  ;;  %v2956_v59 = vmul.f32 0.5, %v2955_v52 }
 0x605   : > { %v3022_v46 = vmul.f32 %v5629_v55, %v3002_v19  ;;  %v2947_v27 = vsub.f32 1.5, %v2946_v12 }
 0x606   : > { %v4008_v32 = vpop.eup %4007  ;;  %3037 = vst [vmem:[%s4719_s16 + $0x40] sm:$0xff] %v3021_v16  ;;  %v2957_v54 = vsub.f32 1.5, %v2956_v59 }
 0x607   : > { %v2974_v41 = vmul.f32 %v4008_v32, %v2831_v2  ;;  %v4010_v20 = vpop.eup %4009  ;;  %3038 = vst [vmem:[%s4719_s16 + $0x48] sm:$0xff] %v3022_v46  ;;  %v2948_v18 = vmul.f32 %v4004_v5, %v2947_v27  ;;  %vm2980_vm14 = vweird.f32 %v4008_v32 }
 0x608   : > { %v2958_v6 = vmul.f32 %v4006_v13, %v2957_v54  ;;  %v2984_v21 = vmul.f32 %v4010_v20, %v2832_v3  ;;  %vm2990_vm15 = vweird.f32 %v4010_v20  ;;  %vm2981_vm1 = vmor %vm2979_vm0, %vm2980_vm14 }
 0x609   : > { %v2975_v49 = vmul.f32 %v4008_v32, %v2974_v41  ;;  %v2952_v48 = vsel %vm2951_vm12, %v4004_v5, %v2948_v18  ;;  %vm2991_vm3 = vmor %vm2989_vm2, %vm2990_vm15 }
 0x60a   : > { %v2962_v36 = vsel %vm2961_vm13, %v4006_v13, %v2958_v6  ;;  %v3004_v23 = vmul.f32 %v2952_v48, %v5604_v40  ;;  %v2985_v45 = vmul.f32 %v4010_v20, %v2984_v21 }
 0x60b   : > { %v2976_v62 = vmul.f32 0.5, %v2975_v49  ;;  %v3005_v1 = vmul.f32 %v2962_v36, %v5607_v33 }
 0x60c   : > { %v3024_v10 = vmul.f32 %v5629_v55, %v3004_v23  ;;  %v2986_v56 = vmul.f32 0.5, %v2985_v45 }
 0x60d   : > { %v2977_v7 = vsub.f32 1.5, %v2976_v62  ;;  %v3025_v58 = vmul.f32 %v5629_v55, %v3005_v1 }
 0x60e   : > { %3040 = vst [vmem:[%s4719_s16 + $0x58] sm:$0xff] %v3024_v10  ;;  %v2987_v24 = vsub.f32 1.5, %v2986_v56 }
 0x60f   : > { %v2978_v28 = vmul.f32 %v4008_v32, %v2977_v7  ;;  %3041 = vst [vmem:[%s4719_s16 + $0x60] sm:$0xff] %v3025_v58 }
 0x610   : > { %v2988_v40 = vmul.f32 %v4010_v20, %v2987_v24 }
 0x611   : > { %v2982_v34 = vsel %vm2981_vm1, %v4008_v32, %v2978_v28 }
 0x612   : > { %v3007_v33 = vmul.f32 %v2982_v34, %v5616_v57  ;;  %v2992_v30 = vsel %vm2991_vm3, %v4010_v20, %v2988_v40 }
 0x613   : > { %v3008_v39 = vmul.f32 %v2992_v30, %v5619_v17 }
 0x614   : > { %v3027_v42 = vmul.f32 %v5629_v55, %v3007_v33 }
 0x615   : > { %v3028_v60 = vmul.f32 %v5629_v55, %v3008_v39 }
 0x616   : > { %3043 = vst [vmem:[%s4719_s16 + $0x70] sm:$0xff] %v3027_v42 }
 0x617   : > { %3044 = vst [vmem:[%s4719_s16 + $0x78] sm:$0xff] %v3028_v60 }
 0x618 PF: > { %s5980_s2 = sld [smem:[#allocation32_spill]]  ;;  %s3063_s8 = sshll.u32 %s4719_s16, 4  ;;  %s3064_s8 = int_to_ptr.vmem [resolvable:$true] %s3063_s8 }
 0x619   : > { %s5981_s26 = sld [smem:[#allocation34_spill]] }
 0x61a   : > { %s5982_s1 = sld [smem:[#allocation33_spill]] }
 0x61b   : > { %s5983_s5 = sld [smem:[#allocation23_spill]] }
 0x61c   : > { %s3594_s21 = scalar_select %p4566_p2, [#allocation6], [#allocation17] }
 0x61d   : > { %s5984_s4 = sld [smem:[#allocation64_spill]] }
 0x61e   : > { %s6032_s2 = smov (!%p4566_p2, %s5980_s2), 0 }
 0x61f   : > { %s3053_s0 = sld [smem:[%s3594_s21 + %s6032_s2]]  ;;  %s3500_s22 = sshll.u32 %s5981_s26, 7 }
 0x621   : > { %s5985_s11 = sand.u32 1, %s5983_s5  }
 0x622   : > { %s3046_s7 = scalar_lea.sflag [#allocation12], %s5985_s11 }
 0x623   : > { %s4111_s6 = scalar_lea.hbm %s5984_s4, 2048 }
 0x625   : > { %s3555_s9 = sshll.u32 %s3053_s0, 5 }
 0x626   : > { %s3058_s14 = sadd.s32 %s5982_s1, %s3555_s9 }
 0x627   : > { %s3060_s3 = sadd.s32 %s3500_s22, %s3058_s14 }
 0x628   : > { %s3501_s24 = sshll.u32 %s3060_s3, 3 }
 0x629   : > { %s3062_s25 = scalar_lea.hbm %s5984_s4, %s3501_s24 }
 0x62a   : > { %s3065_s12 = sshll.u32 %s3062_s25, 4  ;;  %s3066_s12 = int_to_ptr.hbm [resolvable:$true] %s3065_s12 }
 0x62b   : > { %s4105_s13 = sshra.s32 %s3066_s12, 4  ;;  %s4106_s13 = int_to_ptr.hbm [resolvable:$true] %s4105_s13 }
 0x62c   : > { %s4107_s17 = scalar_lea.hbm %s4106_s13, 128  ;;  %p4112_p4 = scmp.lt.s32.totalorder %s4106_s13, %s5984_s4 }
 0x62d   : > { %p4108_p1 = scmp.ne.s32.totalorder %s4106_s13, %s4107_s17  ;;  %p4113_p10 = scmp.lt.s32.totalorder %s4111_s6, %s4107_s17 }
 0x62f   : > { %p4109_p0 = pnand %p4108_p1, %p4566_p2  ;;  %p4114_p6 = por %p4113_p10, %p4112_p4 }
 0x631   : > { %p4110_p5 = pneg %p4109_p0 }
 0x633   : > { %p4115_p7 = pnand %p4114_p6, %p4110_p5 }
 0x635   : > { %4118 = shalt.err (!%p4115_p7)
}
 0x636   : > { %s4303_s23 = smov 128   ;;  %s4304_s29 = smov 256  }
 0x637   : > { %s4305_s2 = smov 8  }
 0x638   : > { %3596 = dma.vmem_to_hbm [thread:$0]  (%p4566_p2), %s3064_s8, 2048, %s3066_s12, %s3046_s7, %s4303_s23, %s4304_s29, %s4305_s2  }
 0x639 PF: > { %s5986_s26 = sld [smem:[#allocation22_spill]]  ;;  %p3602_p9 = scmp.ge.s32.totalorder %s4291_s30, 2 }
 0x63b   : > { %p3599_p8 = pnand %p3602_p9, %p4570_p3 }
 0x63d   : > { %p3600_p11 = pneg %p3599_p8 }
 0x63f   : > { %s3080_s5 = sand.u32 1, %s5986_s26  }
 0x640   : > { %s3081_s21 = scalar_lea.sflag [#allocation12], %s3080_s5 }
 0x641   : > { %4210 = dma.done.wait (%p3600_p11), %s3081_s21, 2048  }
 0x642   : > { %4212 = vsyncadd (%p3600_p11), %s3081_s21, 4294965248  ;;  %s40_s30 = sadd.s32 1, %s4291_s30   ;;  %s5990_s0 = sld [smem:[#allocation23_spill]] }
 0x643   : > { %p5783_p12 = scmp.ge.s32.totalorder %s40_s30, 42   ;;  %s5991_s13 = sld [smem:[#allocation24_spill]] }
 0x644   : > { %s5992_s1 = sld [smem:[#allocation48_spill]]  ;;  %s6008_s14 = smov %s4231_s15 }
 0x645   : > { %s5993_s18 = sld [smem:[#allocation25_spill]] }
 0x646   : > { %s5994_s16 = sld [smem:[#allocation45_spill]] }
 0x647   : > { %s5995_s17 = sld [smem:[#allocation26_spill]] }
 0x648   : > { %s5996_s8 = sld [smem:[#allocation27_spill]] }
 0x649   : > { %s5997_s19 = sld [smem:[#allocation44_spill]] }
 0x64a   : > { %s5998_s20 = sld [smem:[#allocation29_spill]] }
 0x64b   : > { %s5999_s21 = sld [smem:[#allocation43_spill]]  ;;  %s6009_s15 = smov %s5993_s18 }
 0x64c   : > { %s6000_s9 = sld [smem:[#allocation31_spill]] }
 0x64d   : > { %s6001_s23 = sld [smem:[#allocation42_spill]] }
 0x64e   : > { %s6002_s24 = sld [smem:[#allocation35_spill]]  ;;  %s6011_s18 = smov %s5996_s8 }
 0x64f   : > { %s6003_s25 = sld [smem:[#allocation36_spill]]  ;;  %39 = sbr.rel (!%p5783_p12) target bundleno = 28 (0x1c), region = 218 }
 0x650   : > { %s6004_s26 = sld [smem:[#allocation37_spill]] }
 0x651   : > { %s6005_s27 = sld [smem:[#allocation38_spill]] }
 0x652   : > { %s6006_s28 = sld [smem:[#allocation39_spill]]  ;;  %s6012_s22 = smov %s6000_s9 }
 0x653   : > { %s6007_s29 = sld [smem:[#allocation40_spill]] }
 0x654   :  { %3087 = vsyncpa [#allocation11], 1 }
 0x655   :  { %3089 = vsyncpa [#allocation11 + $0x1], 1 }
 0x656   :  { %3090 = vsyncpa [#allocation14], 1 }
 0x657   :  { %3092 = vsyncpa [#allocation14 + $0x1], 1 }
 0x658   :  { %3093 = vsyncpa [#allocation12], 1 }
 0x659   :  { %3095 = vsyncpa [#allocation12 + $0x1], 1 }

</bundles_post_ra>
